<compile_context>
chip_gen: v7x
topology: tpu7x:2x2x1
jax: 0.10.0
libtpu: 0.0.40
codegen_flags: <defaults>
</compile_context>

<pallas_src>
import functools

import jax
import jax.numpy as jnp
import numpy as np
from jax import lax
from jax.experimental import pallas as pl
from jax.experimental.pallas import tpu as pltpu

NEG_SLOPE = 0.01   # nn.LeakyReLU default
K4 = 4             # ConvTranspose3d kernel size
STRIDE = 2
PAD = 1


# --------------------- fused fc1 + LeakyReLU + fc2 + LeakyReLU ---------------
def _mlp_kernel(x_ref, w1_ref, b1_ref, w2_ref, b2_ref, o_ref):
    h = jnp.dot(x_ref[...], w1_ref[...], preferred_element_type=jnp.float32)
    h = h + b1_ref[...]
    h = jnp.where(h >= 0, h, NEG_SLOPE * h)
    h = jnp.dot(h, w2_ref[...], preferred_element_type=jnp.float32)
    h = h + b2_ref[...]
    o_ref[...] = jnp.where(h >= 0, h, NEG_SLOPE * h).astype(o_ref.dtype)


def fused_mlp(x, w1, b1, w2, b2):
    """Both Linear+LeakyReLU layers in one Pallas call (tiny; stays in VMEM)."""
    M = x.shape[0]
    N = w2.shape[1]
    return pl.pallas_call(
        _mlp_kernel,
        out_shape=jax.ShapeDtypeStruct((M, N), jnp.float32),
        in_specs=[pl.BlockSpec(memory_space=pltpu.MemorySpace.VMEM)] * 5,
        out_specs=pl.BlockSpec(memory_space=pltpu.MemorySpace.VMEM),
    )(x, w1, b1.reshape(1, -1), w2, b2.reshape(1, -1))


# ------------------- polyphase ConvTranspose3d (k=4, s=2, p=1) ---------------
def _build_poly_weight(w_pt):
    """PyTorch (Cin, Cout, 4, 4, 4) -> (8 taps, Cin, 8 parities * Cout).

    Rows (first dim): tap (jd, jh, jw) in {0,1}^3, jd-major.
    Cols (last dim):  parity (pd, ph, pw) in {0,1}^3, pd-major, Cout minor.
    For parity p and tap j along one axis the kernel index is k = 3 - p - 2*j.
    """
    Cin, Cout = w_pt.shape[0], w_pt.shape[1]
    j = np.arange(2)
    p = np.arange(2)
    k = 3 - p[None, :] - 2 * j[:, None]            # (j, p) -> kernel tap index
    blk = w_pt[:, :,
               k[:, None, None, :, None, None],
               k[None, :, None, None, :, None],
               k[None, None, :, None, None, :]]     # (Cin, Cout, jd, jh, jw, pd, ph, pw)
    blk = jnp.transpose(blk, (2, 3, 4, 0, 5, 6, 7, 1))
    return blk.reshape(8, Cin, 8 * Cout)


def _poly_conv_kernel(lo_ref, hi_ref, w_ref, b_ref, o_ref, *, w2, m2, act):
    """One (batch, depth-slab) step: out = act(patches @ W_stack + b).

    lo_ref / hi_ref : (S, Cin)   flattened padded-input slabs (depth taps 0 / 1)
    w_ref           : (8, Cin, 8*Cout) tap-major polyphase weights
    b_ref           : (1, 8*Cout)
    o_ref           : (M2, 8*Cout)
    The 8 patch taps are sublane-shifted slices of the two slabs — the im2col
    matrix never touches HBM.
    """
    acc = None
    tap = 0
    for slab in (lo_ref, hi_ref):            # jd = 0, 1
        for jh in range(2):
            for jw in range(2):
                col = slab[pl.ds(jh * w2 + jw, m2), :]
                part = jnp.dot(col, w_ref[tap],
                               preferred_element_type=jnp.float32)
                acc = part if acc is None else acc + part
                tap += 1
    acc = acc + b_ref[...]
    if act == "leaky_relu":
        acc = jnp.where(acc >= 0, acc, NEG_SLOPE * acc)
    elif act == "sigmoid":
        # divide on the EUP slot instead of VPU Newton iterations
        acc = pl.reciprocal(1.0 + jnp.exp(-acc), approx=True)
    o_ref[...] = acc.astype(o_ref.dtype)


def conv_transpose3d(x, w_pt, b, act, compute_dtype=jnp.float32):
    """ConvTranspose3d(kernel=4, stride=2, padding=1) + activation.

    x    : (N, D, H, W, Cin) channels-last
    w_pt : PyTorch layout (Cin, Cout, 4, 4, 4)
    b    : (Cout,)
    compute_dtype: set to jnp.bfloat16 on v6e/v7x for ~2x MXU throughput and
                   half the DMA bytes (accumulation stays f32); loosen the
                   reference tolerance accordingly.
    """
    N, D, H, W, Cin = x.shape
    Cout = w_pt.shape[1]
    Dp, Hp, Wp = D + 1, H + 1, W + 1      # polyphase patch grid per axis
    W2 = W + 2                            # padded width (one slab line)
    S = (H + 3) * W2                      # flat slab rows (+1 zero line so every
                                          #   tap slice stays in bounds)
    M2 = Hp * W2                          # matmul rows per slab (incl. 1 junk col)
    NCOL = 8 * Cout

    # pad by 1 on each side of D/W, by (1, 2) on H, flatten (H+3, W+2) -> rows
    xp = jnp.pad(x, ((0, 0), (1, 1), (1, 2), (1, 1), (0, 0)))
    xf = xp.reshape(N, D + 2, S, Cin).astype(compute_dtype)

    w_taps = _build_poly_weight(w_pt).astype(compute_dtype)        # (8, Cin, 8*Cout)
    b_cols = jnp.tile(b.astype(jnp.float32), 8).reshape(1, NCOL)   # (1, 8*Cout)

    kernel = functools.partial(_poly_conv_kernel, w2=W2, m2=M2, act=act)
    r = pl.pallas_call(
        kernel,
        out_shape=jax.ShapeDtypeStruct((N, Dp, M2, NCOL), jnp.float32),
        grid_spec=pltpu.PrefetchScalarGridSpec(
            num_scalar_prefetch=0,
            grid=(N, Dp),
            in_specs=[
                # depth slab jd = 0 and jd = 1 (same array, shifted window)
                pl.BlockSpec((None, None, S, Cin), lambda n, d: (n, d, 0, 0)),
                pl.BlockSpec((None, None, S, Cin), lambda n, d: (n, d + 1, 0, 0)),
                pl.BlockSpec((8, Cin, NCOL), lambda n, d: (0, 0, 0)),
                pl.BlockSpec((1, NCOL), lambda n, d: (0, 0)),
            ],
            out_specs=pl.BlockSpec((None, None, M2, NCOL),
                                   lambda n, d: (n, d, 0, 0)),
        ),
        compiler_params=pltpu.CompilerParams(
            dimension_semantics=("parallel", "parallel")),
    )(xf, xf, w_taps, b_cols)

    # de-interleave the 8 polyphase outputs into the stride-2 output grid
    r = r.reshape(N, Dp, Hp, W2, 8, Cout)[:, :, :, :Wp]   # drop the junk width col
    parts = [r[:, pd:pd + D, ph:ph + H, pw:pw + W, (pd * 2 + ph) * 2 + pw, :]
             for pd in range(2) for ph in range(2) for pw in range(2)]
    y = jnp.stack(parts, axis=4).reshape(N, D, H, W, 2, 2, 2, Cout)
    y = jnp.transpose(y, (0, 1, 4, 2, 5, 3, 6, 7))
    return y.reshape(N, 2 * D, 2 * H, 2 * W, Cout)


# ------------------------------- Forward pass --------------------------------
def video_decoder_forward(x, params, cfg):
    B = x.shape[0]
    T, Hh, Ww, C = cfg["input_shape"]
    hs = cfg["hidden_shape"]

    # Linear -> LeakyReLU -> Linear -> LeakyReLU (one fused Pallas call)
    h = fused_mlp(x, params["fc1_w"], params["fc1_b"],
                  params["fc2_w"], params["fc2_b"])
    # Dropout: identity at inference.
    # PyTorch Reshape to (B, hs[3], T/16, W/16, H/16), then channels-last.
    h = h.reshape(B, hs[3], T // 16, Ww // 16, Hh // 16)
    h = jnp.transpose(h, (0, 2, 3, 4, 1))

    h = conv_transpose3d(h, params["ct1_w"], params["ct1_b"], "leaky_relu")
    h = conv_transpose3d(h, params["ct2_w"], params["ct2_b"], "leaky_relu")
    h = conv_transpose3d(h, params["ct3_w"], params["ct3_b"], "leaky_relu")
    h = conv_transpose3d(h, params["ct4_w"], params["ct4_b"], "sigmoid")

    # single layout restore back to NCDHW (matches PyTorch output)
    return jnp.transpose(h, (0, 4, 1, 2, 3))


# --------------------------- Pure-JAX reference ------------------------------
def _leaky(x):
    return jnp.where(x >= 0, x, NEG_SLOPE * x)


def _conv_transpose3d_ref(x_ncdhw, w_pt, b):
    w_conv = jnp.transpose(jnp.flip(w_pt, axis=(2, 3, 4)), (1, 0, 2, 3, 4))  # OIDHW
    out = lax.conv_general_dilated(
        x_ncdhw, w_conv, window_strides=(1, 1, 1), padding=[(2, 2)] * 3,
        lhs_dilation=(2, 2, 2),
        dimension_numbers=("NCDHW", "OIDHW", "NCDHW"),
        precision=lax.Precision.HIGHEST)
    return out + b.reshape(1, -1, 1, 1, 1)


def forward_ref(x, params, cfg):
    B = x.shape[0]
    T, Hh, Ww, C = cfg["input_shape"]
    hs = cfg["hidden_shape"]
    hp = lax.Precision.HIGHEST
    h = _leaky(jnp.dot(x, params["fc1_w"], precision=hp) + params["fc1_b"])
    h = _leaky(jnp.dot(h, params["fc2_w"], precision=hp) + params["fc2_b"])
    h = h.reshape(B, hs[3], T // 16, Ww // 16, Hh // 16)
    h = _leaky(_conv_transpose3d_ref(h, params["ct1_w"], params["ct1_b"]))
    h = _leaky(_conv_transpose3d_ref(h, params["ct2_w"], params["ct2_b"]))
    h = _leaky(_conv_transpose3d_ref(h, params["ct3_w"], params["ct3_b"]))
    h = jax.nn.sigmoid(_conv_transpose3d_ref(h, params["ct4_w"], params["ct4_b"]))
    return h


# ------------------------------- Parameters ----------------------------------
def _kaiming_normal(key, shape, fan_in):
    # kaiming_normal_(mode='fan_in', nonlinearity='leaky_relu', a=0) -> std = sqrt(2/fan_in)
    std = float(np.sqrt(2.0 / fan_in))
    return std * jax.random.normal(key, shape, dtype=jnp.float32)


if __name__ == "__main__":
    key = jax.random.PRNGKey(0)

    # small, shape-consistent config
    B = 2
    latent_dim = 8
    hidden_dim = 32
    input_shape = (16, 16, 16, 3)     # (n_frames, height, width, n_channel)
    hs = (4, 4, 8, 8)                 # hidden_shape
    T, Hh, Ww, C = input_shape
    fc2_out = hs[3] * Ww * Hh * T // (16 ** 3)   # = 8

    ks = jax.random.split(key, 8)
    params = {
        "fc1_w": _kaiming_normal(ks[0], (latent_dim, hidden_dim), latent_dim),
        "fc1_b": jnp.zeros((hidden_dim,), jnp.float32),
        "fc2_w": _kaiming_normal(ks[1], (hidden_dim, fc2_out), hidden_dim),
        "fc2_b": jnp.zeros((fc2_out,), jnp.float32),
        # ConvTranspose3d weight layout (Cin, Cout, kD, kH, kW); PyTorch fan_in = Cout * k^3
        "ct1_w": _kaiming_normal(ks[2], (hs[3], hs[2], K4, K4, K4), hs[2] * K4 ** 3),
        "ct1_b": jnp.zeros((hs[2],), jnp.float32),
        "ct2_w": _kaiming_normal(ks[3], (hs[2], hs[1], K4, K4, K4), hs[1] * K4 ** 3),
        "ct2_b": jnp.zeros((hs[1],), jnp.float32),
        "ct3_w": _kaiming_normal(ks[4], (hs[1], hs[0], K4, K4, K4), hs[0] * K4 ** 3),
        "ct3_b": jnp.zeros((hs[0],), jnp.float32),
        "ct4_w": _kaiming_normal(ks[5], (hs[0], C, K4, K4, K4), C * K4 ** 3),
        "ct4_b": jnp.zeros((C,), jnp.float32),
    }

    x = jax.random.normal(ks[6], (B, latent_dim), dtype=jnp.float32)
    cfg = {"input_shape": input_shape, "hidden_shape": hs}

    fwd = jax.jit(lambda xx, pp: video_decoder_forward(xx, pp, cfg))
    out = jax.block_until_ready(fwd(x, params))
    assert out.shape == (B, C, T, Ww, Hh), out.shape   # NCDHW, like PyTorch

    ref_fn = jax.jit(lambda xx, pp: forward_ref(xx, pp, cfg))
    ref = jax.block_until_ready(ref_fn(x, params))
    np.testing.assert_allclose(np.asarray(out), np.asarray(ref), rtol=2e-3, atol=2e-3)

    print("KERNEL_OK")
</pallas_src>

<mosaic_0001>
module attributes {stable_mosaic.version = 11 : i64} {
  func.func @_mlp_kernel(%arg0: memref<2x8xf32, #tpu.memory_space<vmem>>, %arg1: memref<8x32xf32, #tpu.memory_space<vmem>>, %arg2: memref<1x32xf32, #tpu.memory_space<vmem>>, %arg3: memref<32x8xf32, #tpu.memory_space<vmem>>, %arg4: memref<1x8xf32, #tpu.memory_space<vmem>>, %arg5: memref<2x8xf32, #tpu.memory_space<vmem>>) attributes {dimension_semantics = [], scalar_prefetch = 0 : i64, scratch_operands = 0 : i64, tpu.core_type = #tpu.core_type<tc>} {
    %c0 = arith.constant 0 : index
    %c0_0 = arith.constant 0 : index
    %0 = vector.load %arg0[%c0, %c0_0] : memref<2x8xf32, #tpu.memory_space<vmem>>, vector<2x8xf32>
    %c0_1 = arith.constant 0 : index
    %c0_2 = arith.constant 0 : index
    %1 = vector.load %arg1[%c0_1, %c0_2] : memref<8x32xf32, #tpu.memory_space<vmem>>, vector<8x32xf32>
    %cst = arith.constant dense<0.000000e+00> : vector<2x32xf32>
    %2 = tpu.matmul %0, %1, %cst {dimension_numbers = #tpu.dot_dimension_numbers<[1], [0], [0], [1], [0, 0, 1, 1], [], []>} : vector<2x8xf32>, vector<8x32xf32>, vector<2x32xf32> -> vector<2x32xf32>
    %c0_3 = arith.constant 0 : index
    %c0_4 = arith.constant 0 : index
    %3 = vector.load %arg2[%c0_3, %c0_4] : memref<1x32xf32, #tpu.memory_space<vmem>>, vector<1x32xf32>
    %4 = vector.broadcast %3 : vector<1x32xf32> to vector<2x32xf32>
    %5 = arith.addf %2, %4 : vector<2x32xf32>
    %cst_5 = arith.constant 0.000000e+00 : f32
    %6 = vector.broadcast %cst_5 : f32 to vector<2x32xf32>
    %7 = arith.cmpf oge, %5, %6 : vector<2x32xf32>
    %cst_6 = arith.constant 0.00999999977 : f32
    %8 = vector.broadcast %cst_6 : f32 to vector<2x32xf32>
    %9 = arith.mulf %8, %5 : vector<2x32xf32>
    %10 = arith.select %7, %5, %9 : vector<2x32xi1>, vector<2x32xf32>
    %c0_7 = arith.constant 0 : index
    %c0_8 = arith.constant 0 : index
    %11 = vector.load %arg3[%c0_7, %c0_8] : memref<32x8xf32, #tpu.memory_space<vmem>>, vector<32x8xf32>
    %cst_9 = arith.constant dense<0.000000e+00> : vector<2x8xf32>
    %12 = tpu.matmul %10, %11, %cst_9 {dimension_numbers = #tpu.dot_dimension_numbers<[1], [0], [0], [1], [0, 0, 1, 1], [], []>} : vector<2x32xf32>, vector<32x8xf32>, vector<2x8xf32> -> vector<2x8xf32>
    %c0_10 = arith.constant 0 : index
    %c0_11 = arith.constant 0 : index
    %13 = vector.load %arg4[%c0_10, %c0_11] : memref<1x8xf32, #tpu.memory_space<vmem>>, vector<1x8xf32>
    %14 = vector.broadcast %13 : vector<1x8xf32> to vector<2x8xf32>
    %15 = arith.addf %12, %14 : vector<2x8xf32>
    %cst_12 = arith.constant 0.000000e+00 : f32
    %16 = vector.broadcast %cst_12 : f32 to vector<2x8xf32>
    %17 = arith.cmpf oge, %15, %16 : vector<2x8xf32>
    %cst_13 = arith.constant 0.00999999977 : f32
    %18 = vector.broadcast %cst_13 : f32 to vector<2x8xf32>
    %19 = arith.mulf %18, %15 : vector<2x8xf32>
    %20 = arith.select %17, %15, %19 : vector<2x8xi1>, vector<2x8xf32>
    %c0_14 = arith.constant 0 : index
    %c0_15 = arith.constant 0 : index
    %21 = vector.load %arg5[%c0_14, %c0_15] : memref<2x8xf32, #tpu.memory_space<vmem>>, vector<2x8xf32>
    tpu.vector_store %arg5[%c0_14, %c0_15], %20 {strides = array<i32>} : memref<2x8xf32, #tpu.memory_space<vmem>>, vector<2x8xf32>,
    return
  }
}

module attributes {stable_mosaic.version = 11 : i64} {
  func.func @_poly_conv_kernel(%arg0: i32, %arg1: i32, %arg2: memref<1x1x12x8xf32, #tpu.memory_space<vmem>>, %arg3: memref<1x1x12x8xf32, #tpu.memory_space<vmem>>, %arg4: memref<8x8x64xf32, #tpu.memory_space<vmem>>, %arg5: memref<1x64xf32, #tpu.memory_space<vmem>>, %arg6: memref<1x1x6x64xf32, #tpu.memory_space<vmem>>) attributes {dimension_semantics = [#tpu.dimension_semantics<parallel>, #tpu.dimension_semantics<parallel>], iteration_bounds = array<i64: 2, 2>, scalar_prefetch = 0 : i64, scratch_operands = 0 : i64, tpu.core_type = #tpu.core_type<tc>, window_params = [{transform_indices = @transform_0, window_bounds = array<i64: 1, 1, 12, 8>}, {transform_indices = @transform_1, window_bounds = array<i64: 1, 1, 12, 8>}, {pipeline_mode = #tpu.pipeline_mode<synchronous>, transform_indices = @transform_2, window_bounds = array<i64: 8, 8, 64>}, {pipeline_mode = #tpu.pipeline_mode<synchronous>, transform_indices = @transform_3, window_bounds = array<i64: 1, 64>}, {transform_indices = @transform_4, window_bounds = array<i64: 1, 1, 6, 64>}]} {
    %c0 = arith.constant 0 : index
    %c0_0 = arith.constant 0 : index
    %c0_1 = arith.constant 0 : index
    %c0_2 = arith.constant 0 : index
    %0 = vector.load %arg2[%c0, %c0_0, %c0_1, %c0_2] : memref<1x1x12x8xf32, #tpu.memory_space<vmem>>, vector<1x1x6x8xf32>
    %1 = vector.shape_cast %0 : vector<1x1x6x8xf32> to vector<6x8xf32>
    %c0_3 = arith.constant 0 : index
    %c0_4 = arith.constant 0 : index
    %c0_5 = arith.constant 0 : index
    %2 = vector.load %arg4[%c0_3, %c0_4, %c0_5] : memref<8x8x64xf32, #tpu.memory_space<vmem>>, vector<1x8x64xf32>
    %3 = vector.shape_cast %2 : vector<1x8x64xf32> to vector<8x64xf32>
    %cst = arith.constant dense<0.000000e+00> : vector<6x64xf32>
    %4 = tpu.matmul %1, %3, %cst {dimension_numbers = #tpu.dot_dimension_numbers<[1], [0], [0], [1], [0, 0, 1, 1], [], []>} : vector<6x8xf32>, vector<8x64xf32>, vector<6x64xf32> -> vector<6x64xf32>
    %c0_6 = arith.constant 0 : index
    %c0_7 = arith.constant 0 : index
    %c1 = arith.constant 1 : index
    %c0_8 = arith.constant 0 : index
    %5 = vector.load %arg2[%c0_6, %c0_7, %c1, %c0_8] : memref<1x1x12x8xf32, #tpu.memory_space<vmem>>, vector<1x1x6x8xf32>
    %6 = vector.shape_cast %5 : vector<1x1x6x8xf32> to vector<6x8xf32>
    %c1_9 = arith.constant 1 : index
    %c0_10 = arith.constant 0 : index
    %c0_11 = arith.constant 0 : index
    %7 = vector.load %arg4[%c1_9, %c0_10, %c0_11] : memref<8x8x64xf32, #tpu.memory_space<vmem>>, vector<1x8x64xf32>
    %8 = vector.shape_cast %7 : vector<1x8x64xf32> to vector<8x64xf32>
    %cst_12 = arith.constant dense<0.000000e+00> : vector<6x64xf32>
    %9 = tpu.matmul %6, %8, %cst_12 {dimension_numbers = #tpu.dot_dimension_numbers<[1], [0], [0], [1], [0, 0, 1, 1], [], []>} : vector<6x8xf32>, vector<8x64xf32>, vector<6x64xf32> -> vector<6x64xf32>
    %10 = arith.addf %4, %9 : vector<6x64xf32>
    %c0_13 = arith.constant 0 : index
    %c0_14 = arith.constant 0 : index
    %c3 = arith.constant 3 : index
    %c0_15 = arith.constant 0 : index
    %11 = vector.load %arg2[%c0_13, %c0_14, %c3, %c0_15] : memref<1x1x12x8xf32, #tpu.memory_space<vmem>>, vector<1x1x6x8xf32>
    %12 = vector.shape_cast %11 : vector<1x1x6x8xf32> to vector<6x8xf32>
    %c2 = arith.constant 2 : index
    %c0_16 = arith.constant 0 : index
    %c0_17 = arith.constant 0 : index
    %13 = vector.load %arg4[%c2, %c0_16, %c0_17] : memref<8x8x64xf32, #tpu.memory_space<vmem>>, vector<1x8x64xf32>
    %14 = vector.shape_cast %13 : vector<1x8x64xf32> to vector<8x64xf32>
    %cst_18 = arith.constant dense<0.000000e+00> : vector<6x64xf32>
    %15 = tpu.matmul %12, %14, %cst_18 {dimension_numbers = #tpu.dot_dimension_numbers<[1], [0], [0], [1], [0, 0, 1, 1], [], []>} : vector<6x8xf32>, vector<8x64xf32>, vector<6x64xf32> -> vector<6x64xf32>
    %16 = arith.addf %10, %15 : vector<6x64xf32>
    %c0_19 = arith.constant 0 : index
    %c0_20 = arith.constant 0 : index
    %c4 = arith.constant 4 : index
    %c0_21 = arith.constant 0 : index
    %17 = vector.load %arg2[%c0_19, %c0_20, %c4, %c0_21] : memref<1x1x12x8xf32, #tpu.memory_space<vmem>>, vector<1x1x6x8xf32>
    %18 = vector.shape_cast %17 : vector<1x1x6x8xf32> to vector<6x8xf32>
    %c3_22 = arith.constant 3 : index
    %c0_23 = arith.constant 0 : index
    %c0_24 = arith.constant 0 : index
    %19 = vector.load %arg4[%c3_22, %c0_23, %c0_24] : memref<8x8x64xf32, #tpu.memory_space<vmem>>, vector<1x8x64xf32>
    %20 = vector.shape_cast %19 : vector<1x8x64xf32> to vector<8x64xf32>
    %cst_25 = arith.constant dense<0.000000e+00> : vector<6x64xf32>
    %21 = tpu.matmul %18, %20, %cst_25 {dimension_numbers = #tpu.dot_dimension_numbers<[1], [0], [0], [1], [0, 0, 1, 1], [], []>} : vector<6x8xf32>, vector<8x64xf32>, vector<6x64xf32> -> vector<6x64xf32>
    %22 = arith.addf %16, %21 : vector<6x64xf32>
    %c0_26 = arith.constant 0 : index
    %c0_27 = arith.constant 0 : index
    %c0_28 = arith.constant 0 : index
    %c0_29 = arith.constant 0 : index
    %23 = vector.load %arg3[%c0_26, %c0_27, %c0_28, %c0_29] : memref<1x1x12x8xf32, #tpu.memory_space<vmem>>, vector<1x1x6x8xf32>
    %24 = vector.shape_cast %23 : vector<1x1x6x8xf32> to vector<6x8xf32>
    %c4_30 = arith.constant 4 : index
    %c0_31 = arith.constant 0 : index
    %c0_32 = arith.constant 0 : index
    %25 = vector.load %arg4[%c4_30, %c0_31, %c0_32] : memref<8x8x64xf32, #tpu.memory_space<vmem>>, vector<1x8x64xf32>
    %26 = vector.shape_cast %25 : vector<1x8x64xf32> to vector<8x64xf32>
    %cst_33 = arith.constant dense<0.000000e+00> : vector<6x64xf32>
    %27 = tpu.matmul %24, %26, %cst_33 {dimension_numbers = #tpu.dot_dimension_numbers<[1], [0], [0], [1], [0, 0, 1, 1], [], []>} : vector<6x8xf32>, vector<8x64xf32>, vector<6x64xf32> -> vector<6x64xf32>
    %28 = arith.addf %22, %27 : vector<6x64xf32>
    %c0_34 = arith.constant 0 : index
    %c0_35 = arith.constant 0 : index
    %c1_36 = arith.constant 1 : index
    %c0_37 = arith.constant 0 : index
    %29 = vector.load %arg3[%c0_34, %c0_35, %c1_36, %c0_37] : memref<1x1x12x8xf32, #tpu.memory_space<vmem>>, vector<1x1x6x8xf32>
    %30 = vector.shape_cast %29 : vector<1x1x6x8xf32> to vector<6x8xf32>
    %c5 = arith.constant 5 : index
    %c0_38 = arith.constant 0 : index
    %c0_39 = arith.constant 0 : index
    %31 = vector.load %arg4[%c5, %c0_38, %c0_39] : memref<8x8x64xf32, #tpu.memory_space<vmem>>, vector<1x8x64xf32>
    %32 = vector.shape_cast %31 : vector<1x8x64xf32> to vector<8x64xf32>
    %cst_40 = arith.constant dense<0.000000e+00> : vector<6x64xf32>
    %33 = tpu.matmul %30, %32, %cst_40 {dimension_numbers = #tpu.dot_dimension_numbers<[1], [0], [0], [1], [0, 0, 1, 1], [], []>} : vector<6x8xf32>, vector<8x64xf32>, vector<6x64xf32> -> vector<6x64xf32>
    %34 = arith.addf %28, %33 : vector<6x64xf32>
    %c0_41 = arith.constant 0 : index
    %c0_42 = arith.constant 0 : index
    %c3_43 = arith.constant 3 : index
    %c0_44 = arith.constant 0 : index
    %35 = vector.load %arg3[%c0_41, %c0_42, %c3_43, %c0_44] : memref<1x1x12x8xf32, #tpu.memory_space<vmem>>, vector<1x1x6x8xf32>
    %36 = vector.shape_cast %35 : vector<1x1x6x8xf32> to vector<6x8xf32>
    %c6 = arith.constant 6 : index
    %c0_45 = arith.constant 0 : index
    %c0_46 = arith.constant 0 : index
    %37 = vector.load %arg4[%c6, %c0_45, %c0_46] : memref<8x8x64xf32, #tpu.memory_space<vmem>>, vector<1x8x64xf32>
    %38 = vector.shape_cast %37 : vector<1x8x64xf32> to vector<8x64xf32>
    %cst_47 = arith.constant dense<0.000000e+00> : vector<6x64xf32>
    %39 = tpu.matmul %36, %38, %cst_47 {dimension_numbers = #tpu.dot_dimension_numbers<[1], [0], [0], [1], [0, 0, 1, 1], [], []>} : vector<6x8xf32>, vector<8x64xf32>, vector<6x64xf32> -> vector<6x64xf32>
    %40 = arith.addf %34, %39 : vector<6x64xf32>
    %c0_48 = arith.constant 0 : index
    %c0_49 = arith.constant 0 : index
    %c4_50 = arith.constant 4 : index
    %c0_51 = arith.constant 0 : index
    %41 = vector.load %arg3[%c0_48, %c0_49, %c4_50, %c0_51] : memref<1x1x12x8xf32, #tpu.memory_space<vmem>>, vector<1x1x6x8xf32>
    %42 = vector.shape_cast %41 : vector<1x1x6x8xf32> to vector<6x8xf32>
    %c7 = arith.constant 7 : index
    %c0_52 = arith.constant 0 : index
    %c0_53 = arith.constant 0 : index
    %43 = vector.load %arg4[%c7, %c0_52, %c0_53] : memref<8x8x64xf32, #tpu.memory_space<vmem>>, vector<1x8x64xf32>
    %44 = vector.shape_cast %43 : vector<1x8x64xf32> to vector<8x64xf32>
    %cst_54 = arith.constant dense<0.000000e+00> : vector<6x64xf32>
    %45 = tpu.matmul %42, %44, %cst_54 {dimension_numbers = #tpu.dot_dimension_numbers<[1], [0], [0], [1], [0, 0, 1, 1], [], []>} : vector<6x8xf32>, vector<8x64xf32>, vector<6x64xf32> -> vector<6x64xf32>
    %46 = arith.addf %40, %45 : vector<6x64xf32>
    %c0_55 = arith.constant 0 : index
    %c0_56 = arith.constant 0 : index
    %47 = vector.load %arg5[%c0_55, %c0_56] : memref<1x64xf32, #tpu.memory_space<vmem>>, vector<1x64xf32>
    %48 = vector.broadcast %47 : vector<1x64xf32> to vector<6x64xf32>
    %49 = arith.addf %46, %48 : vector<6x64xf32>
    %cst_57 = arith.constant 0.000000e+00 : f32
    %50 = vector.broadcast %cst_57 : f32 to vector<6x64xf32>
    %51 = arith.cmpf oge, %49, %50 : vector<6x64xf32>
    %cst_58 = arith.constant 0.00999999977 : f32
    %52 = vector.broadcast %cst_58 : f32 to vector<6x64xf32>
    %53 = arith.mulf %52, %49 : vector<6x64xf32>
    %54 = arith.select %51, %49, %53 : vector<6x64xi1>, vector<6x64xf32>
    %c0_59 = arith.constant 0 : index
    %c0_60 = arith.constant 0 : index
    %c0_61 = arith.constant 0 : index
    %c0_62 = arith.constant 0 : index
    %55 = vector.load %arg6[%c0_59, %c0_60, %c0_61, %c0_62] : memref<1x1x6x64xf32, #tpu.memory_space<vmem>>, vector<1x1x6x64xf32>
    %56 = vector.shape_cast %55 : vector<1x1x6x64xf32> to vector<6x64xf32>
    %57 = vector.shape_cast %54 : vector<6x64xf32> to vector<1x1x6x64xf32>
    tpu.vector_store %arg6[%c0_59, %c0_60, %c0_61, %c0_62], %57 {strides = array<i32>} : memref<1x1x6x64xf32, #tpu.memory_space<vmem>>, vector<1x1x6x64xf32>,
    return
  }
  func.func @transform_0(%arg0: i32, %arg1: i32) -> (i32, i32, i32, i32) {
    %c0_i32 = arith.constant 0 : i32
    %c0_i32_0 = arith.constant 0 : i32
    %c0_i32_1 = arith.constant 0 : i32
    return %arg0, %arg1, %c0_i32, %c0_i32_0 : i32, i32, i32, i32
  }
  func.func @transform_1(%arg0: i32, %arg1: i32) -> (i32, i32, i32, i32) {
    %c1_i32 = arith.constant 1 : i32
    %0 = arith.addi %arg1, %c1_i32 : i32
    %c0_i32 = arith.constant 0 : i32
    %c0_i32_0 = arith.constant 0 : i32
    %c0_i32_1 = arith.constant 0 : i32
    return %arg0, %0, %c0_i32, %c0_i32_0 : i32, i32, i32, i32
  }
  func.func @transform_2(%arg0: i32, %arg1: i32) -> (i32, i32, i32) {
    %c0_i32 = arith.constant 0 : i32
    %c0_i32_0 = arith.constant 0 : i32
    %c0_i32_1 = arith.constant 0 : i32
    %c0_i32_2 = arith.constant 0 : i32
    return %c0_i32, %c0_i32_0, %c0_i32_1 : i32, i32, i32
  }
  func.func @transform_3(%arg0: i32, %arg1: i32) -> (i32, i32) {
    %c0_i32 = arith.constant 0 : i32
    %c0_i32_0 = arith.constant 0 : i32
    %c0_i32_1 = arith.constant 0 : i32
    return %c0_i32, %c0_i32_0 : i32, i32
  }
  func.func @transform_4(%arg0: i32, %arg1: i32) -> (i32, i32, i32, i32) {
    %c0_i32 = arith.constant 0 : i32
    %c0_i32_0 = arith.constant 0 : i32
    %c0_i32_1 = arith.constant 0 : i32
    return %arg0, %arg1, %c0_i32, %c0_i32_0 : i32, i32, i32, i32
  }
}

module attributes {stable_mosaic.version = 11 : i64} {
  func.func @_poly_conv_kernel(%arg0: i32, %arg1: i32, %arg2: memref<1x1x20x8xf32, #tpu.memory_space<vmem>>, %arg3: memref<1x1x20x8xf32, #tpu.memory_space<vmem>>, %arg4: memref<8x8x32xf32, #tpu.memory_space<vmem>>, %arg5: memref<1x32xf32, #tpu.memory_space<vmem>>, %arg6: memref<1x1x12x32xf32, #tpu.memory_space<vmem>>) attributes {dimension_semantics = [#tpu.dimension_semantics<parallel>, #tpu.dimension_semantics<parallel>], iteration_bounds = array<i64: 2, 3>, scalar_prefetch = 0 : i64, scratch_operands = 0 : i64, tpu.core_type = #tpu.core_type<tc>, window_params = [{transform_indices = @transform_0, window_bounds = array<i64: 1, 1, 20, 8>}, {transform_indices = @transform_1, window_bounds = array<i64: 1, 1, 20, 8>}, {pipeline_mode = #tpu.pipeline_mode<synchronous>, transform_indices = @transform_2, window_bounds = array<i64: 8, 8, 32>}, {pipeline_mode = #tpu.pipeline_mode<synchronous>, transform_indices = @transform_3, window_bounds = array<i64: 1, 32>}, {transform_indices = @transform_4, window_bounds = array<i64: 1, 1, 12, 32>}]} {
    %c0 = arith.constant 0 : index
    %c0_0 = arith.constant 0 : index
    %c0_1 = arith.constant 0 : index
    %c0_2 = arith.constant 0 : index
    %0 = vector.load %arg2[%c0, %c0_0, %c0_1, %c0_2] : memref<1x1x20x8xf32, #tpu.memory_space<vmem>>, vector<1x1x12x8xf32>
    %1 = vector.shape_cast %0 : vector<1x1x12x8xf32> to vector<12x8xf32>
    %c0_3 = arith.constant 0 : index
    %c0_4 = arith.constant 0 : index
    %c0_5 = arith.constant 0 : index
    %2 = vector.load %arg4[%c0_3, %c0_4, %c0_5] : memref<8x8x32xf32, #tpu.memory_space<vmem>>, vector<1x8x32xf32>
    %3 = vector.shape_cast %2 : vector<1x8x32xf32> to vector<8x32xf32>
    %cst = arith.constant dense<0.000000e+00> : vector<12x32xf32>
    %4 = tpu.matmul %1, %3, %cst {dimension_numbers = #tpu.dot_dimension_numbers<[1], [0], [0], [1], [0, 0, 1, 1], [], []>} : vector<12x8xf32>, vector<8x32xf32>, vector<12x32xf32> -> vector<12x32xf32>
    %c0_6 = arith.constant 0 : index
    %c0_7 = arith.constant 0 : index
    %c1 = arith.constant 1 : index
    %c0_8 = arith.constant 0 : index
    %5 = vector.load %arg2[%c0_6, %c0_7, %c1, %c0_8] : memref<1x1x20x8xf32, #tpu.memory_space<vmem>>, vector<1x1x12x8xf32>
    %6 = vector.shape_cast %5 : vector<1x1x12x8xf32> to vector<12x8xf32>
    %c1_9 = arith.constant 1 : index
    %c0_10 = arith.constant 0 : index
    %c0_11 = arith.constant 0 : index
    %7 = vector.load %arg4[%c1_9, %c0_10, %c0_11] : memref<8x8x32xf32, #tpu.memory_space<vmem>>, vector<1x8x32xf32>
    %8 = vector.shape_cast %7 : vector<1x8x32xf32> to vector<8x32xf32>
    %cst_12 = arith.constant dense<0.000000e+00> : vector<12x32xf32>
    %9 = tpu.matmul %6, %8, %cst_12 {dimension_numbers = #tpu.dot_dimension_numbers<[1], [0], [0], [1], [0, 0, 1, 1], [], []>} : vector<12x8xf32>, vector<8x32xf32>, vector<12x32xf32> -> vector<12x32xf32>
    %10 = arith.addf %4, %9 : vector<12x32xf32>
    %c0_13 = arith.constant 0 : index
    %c0_14 = arith.constant 0 : index
    %c4 = arith.constant 4 : index
    %c0_15 = arith.constant 0 : index
    %11 = vector.load %arg2[%c0_13, %c0_14, %c4, %c0_15] : memref<1x1x20x8xf32, #tpu.memory_space<vmem>>, vector<1x1x12x8xf32>
    %12 = vector.shape_cast %11 : vector<1x1x12x8xf32> to vector<12x8xf32>
    %c2 = arith.constant 2 : index
    %c0_16 = arith.constant 0 : index
    %c0_17 = arith.constant 0 : index
    %13 = vector.load %arg4[%c2, %c0_16, %c0_17] : memref<8x8x32xf32, #tpu.memory_space<vmem>>, vector<1x8x32xf32>
    %14 = vector.shape_cast %13 : vector<1x8x32xf32> to vector<8x32xf32>
    %cst_18 = arith.constant dense<0.000000e+00> : vector<12x32xf32>
    %15 = tpu.matmul %12, %14, %cst_18 {dimension_numbers = #tpu.dot_dimension_numbers<[1], [0], [0], [1], [0, 0, 1, 1], [], []>} : vector<12x8xf32>, vector<8x32xf32>, vector<12x32xf32> -> vector<12x32xf32>
    %16 = arith.addf %10, %15 : vector<12x32xf32>
    %c0_19 = arith.constant 0 : index
    %c0_20 = arith.constant 0 : index
    %c5 = arith.constant 5 : index
    %c0_21 = arith.constant 0 : index
    %17 = vector.load %arg2[%c0_19, %c0_20, %c5, %c0_21] : memref<1x1x20x8xf32, #tpu.memory_space<vmem>>, vector<1x1x12x8xf32>
    %18 = vector.shape_cast %17 : vector<1x1x12x8xf32> to vector<12x8xf32>
    %c3 = arith.constant 3 : index
    %c0_22 = arith.constant 0 : index
    %c0_23 = arith.constant 0 : index
    %19 = vector.load %arg4[%c3, %c0_22, %c0_23] : memref<8x8x32xf32, #tpu.memory_space<vmem>>, vector<1x8x32xf32>
    %20 = vector.shape_cast %19 : vector<1x8x32xf32> to vector<8x32xf32>
    %cst_24 = arith.constant dense<0.000000e+00> : vector<12x32xf32>
    %21 = tpu.matmul %18, %20, %cst_24 {dimension_numbers = #tpu.dot_dimension_numbers<[1], [0], [0], [1], [0, 0, 1, 1], [], []>} : vector<12x8xf32>, vector<8x32xf32>, vector<12x32xf32> -> vector<12x32xf32>
    %22 = arith.addf %16, %21 : vector<12x32xf32>
    %c0_25 = arith.constant 0 : index
    %c0_26 = arith.constant 0 : index
    %c0_27 = arith.constant 0 : index
    %c0_28 = arith.constant 0 : index
    %23 = vector.load %arg3[%c0_25, %c0_26, %c0_27, %c0_28] : memref<1x1x20x8xf32, #tpu.memory_space<vmem>>, vector<1x1x12x8xf32>
    %24 = vector.shape_cast %23 : vector<1x1x12x8xf32> to vector<12x8xf32>
    %c4_29 = arith.constant 4 : index
    %c0_30 = arith.constant 0 : index
    %c0_31 = arith.constant 0 : index
    %25 = vector.load %arg4[%c4_29, %c0_30, %c0_31] : memref<8x8x32xf32, #tpu.memory_space<vmem>>, vector<1x8x32xf32>
    %26 = vector.shape_cast %25 : vector<1x8x32xf32> to vector<8x32xf32>
    %cst_32 = arith.constant dense<0.000000e+00> : vector<12x32xf32>
    %27 = tpu.matmul %24, %26, %cst_32 {dimension_numbers = #tpu.dot_dimension_numbers<[1], [0], [0], [1], [0, 0, 1, 1], [], []>} : vector<12x8xf32>, vector<8x32xf32>, vector<12x32xf32> -> vector<12x32xf32>
    %28 = arith.addf %22, %27 : vector<12x32xf32>
    %c0_33 = arith.constant 0 : index
    %c0_34 = arith.constant 0 : index
    %c1_35 = arith.constant 1 : index
    %c0_36 = arith.constant 0 : index
    %29 = vector.load %arg3[%c0_33, %c0_34, %c1_35, %c0_36] : memref<1x1x20x8xf32, #tpu.memory_space<vmem>>, vector<1x1x12x8xf32>
    %30 = vector.shape_cast %29 : vector<1x1x12x8xf32> to vector<12x8xf32>
    %c5_37 = arith.constant 5 : index
    %c0_38 = arith.constant 0 : index
    %c0_39 = arith.constant 0 : index
    %31 = vector.load %arg4[%c5_37, %c0_38, %c0_39] : memref<8x8x32xf32, #tpu.memory_space<vmem>>, vector<1x8x32xf32>
    %32 = vector.shape_cast %31 : vector<1x8x32xf32> to vector<8x32xf32>
    %cst_40 = arith.constant dense<0.000000e+00> : vector<12x32xf32>
    %33 = tpu.matmul %30, %32, %cst_40 {dimension_numbers = #tpu.dot_dimension_numbers<[1], [0], [0], [1], [0, 0, 1, 1], [], []>} : vector<12x8xf32>, vector<8x32xf32>, vector<12x32xf32> -> vector<12x32xf32>
    %34 = arith.addf %28, %33 : vector<12x32xf32>
    %c0_41 = arith.constant 0 : index
    %c0_42 = arith.constant 0 : index
    %c4_43 = arith.constant 4 : index
    %c0_44 = arith.constant 0 : index
    %35 = vector.load %arg3[%c0_41, %c0_42, %c4_43, %c0_44] : memref<1x1x20x8xf32, #tpu.memory_space<vmem>>, vector<1x1x12x8xf32>
    %36 = vector.shape_cast %35 : vector<1x1x12x8xf32> to vector<12x8xf32>
    %c6 = arith.constant 6 : index
    %c0_45 = arith.constant 0 : index
    %c0_46 = arith.constant 0 : index
    %37 = vector.load %arg4[%c6, %c0_45, %c0_46] : memref<8x8x32xf32, #tpu.memory_space<vmem>>, vector<1x8x32xf32>
    %38 = vector.shape_cast %37 : vector<1x8x32xf32> to vector<8x32xf32>
    %cst_47 = arith.constant dense<0.000000e+00> : vector<12x32xf32>
    %39 = tpu.matmul %36, %38, %cst_47 {dimension_numbers = #tpu.dot_dimension_numbers<[1], [0], [0], [1], [0, 0, 1, 1], [], []>} : vector<12x8xf32>, vector<8x32xf32>, vector<12x32xf32> -> vector<12x32xf32>
    %40 = arith.addf %34, %39 : vector<12x32xf32>
    %c0_48 = arith.constant 0 : index
    %c0_49 = arith.constant 0 : index
    %c5_50 = arith.constant 5 : index
    %c0_51 = arith.constant 0 : index
    %41 = vector.load %arg3[%c0_48, %c0_49, %c5_50, %c0_51] : memref<1x1x20x8xf32, #tpu.memory_space<vmem>>, vector<1x1x12x8xf32>
    %42 = vector.shape_cast %41 : vector<1x1x12x8xf32> to vector<12x8xf32>
    %c7 = arith.constant 7 : index
    %c0_52 = arith.constant 0 : index
    %c0_53 = arith.constant 0 : index
    %43 = vector.load %arg4[%c7, %c0_52, %c0_53] : memref<8x8x32xf32, #tpu.memory_space<vmem>>, vector<1x8x32xf32>
    %44 = vector.shape_cast %43 : vector<1x8x32xf32> to vector<8x32xf32>
    %cst_54 = arith.constant dense<0.000000e+00> : vector<12x32xf32>
    %45 = tpu.matmul %42, %44, %cst_54 {dimension_numbers = #tpu.dot_dimension_numbers<[1], [0], [0], [1], [0, 0, 1, 1], [], []>} : vector<12x8xf32>, vector<8x32xf32>, vector<12x32xf32> -> vector<12x32xf32>
    %46 = arith.addf %40, %45 : vector<12x32xf32>
    %c0_55 = arith.constant 0 : index
    %c0_56 = arith.constant 0 : index
    %47 = vector.load %arg5[%c0_55, %c0_56] : memref<1x32xf32, #tpu.memory_space<vmem>>, vector<1x32xf32>
    %48 = vector.broadcast %47 : vector<1x32xf32> to vector<12x32xf32>
    %49 = arith.addf %46, %48 : vector<12x32xf32>
    %cst_57 = arith.constant 0.000000e+00 : f32
    %50 = vector.broadcast %cst_57 : f32 to vector<12x32xf32>
    %51 = arith.cmpf oge, %49, %50 : vector<12x32xf32>
    %cst_58 = arith.constant 0.00999999977 : f32
    %52 = vector.broadcast %cst_58 : f32 to vector<12x32xf32>
    %53 = arith.mulf %52, %49 : vector<12x32xf32>
    %54 = arith.select %51, %49, %53 : vector<12x32xi1>, vector<12x32xf32>
    %c0_59 = arith.constant 0 : index
    %c0_60 = arith.constant 0 : index
    %c0_61 = arith.constant 0 : index
    %c0_62 = arith.constant 0 : index
    %55 = vector.load %arg6[%c0_59, %c0_60, %c0_61, %c0_62] : memref<1x1x12x32xf32, #tpu.memory_space<vmem>>, vector<1x1x12x32xf32>
    %56 = vector.shape_cast %55 : vector<1x1x12x32xf32> to vector<12x32xf32>
    %57 = vector.shape_cast %54 : vector<12x32xf32> to vector<1x1x12x32xf32>
    tpu.vector_store %arg6[%c0_59, %c0_60, %c0_61, %c0_62], %57 {strides = array<i32>} : memref<1x1x12x32xf32, #tpu.memory_space<vmem>>, vector<1x1x12x32xf32>,
    return
  }
  func.func @transform_0(%arg0: i32, %arg1: i32) -> (i32, i32, i32, i32) {
    %c0_i32 = arith.constant 0 : i32
    %c0_i32_0 = arith.constant 0 : i32
    %c0_i32_1 = arith.constant 0 : i32
    return %arg0, %arg1, %c0_i32, %c0_i32_0 : i32, i32, i32, i32
  }
  func.func @transform_1(%arg0: i32, %arg1: i32) -> (i32, i32, i32, i32) {
    %c1_i32 = arith.constant 1 : i32
    %0 = arith.addi %arg1, %c1_i32 : i32
    %c0_i32 = arith.constant 0 : i32
    %c0_i32_0 = arith.constant 0 : i32
    %c0_i32_1 = arith.constant 0 : i32
    return %arg0, %0, %c0_i32, %c0_i32_0 : i32, i32, i32, i32
  }
  func.func @transform_2(%arg0: i32, %arg1: i32) -> (i32, i32, i32) {
    %c0_i32 = arith.constant 0 : i32
    %c0_i32_0 = arith.constant 0 : i32
    %c0_i32_1 = arith.constant 0 : i32
    %c0_i32_2 = arith.constant 0 : i32
    return %c0_i32, %c0_i32_0, %c0_i32_1 : i32, i32, i32
  }
  func.func @transform_3(%arg0: i32, %arg1: i32) -> (i32, i32) {
    %c0_i32 = arith.constant 0 : i32
    %c0_i32_0 = arith.constant 0 : i32
    %c0_i32_1 = arith.constant 0 : i32
    return %c0_i32, %c0_i32_0 : i32, i32
  }
  func.func @transform_4(%arg0: i32, %arg1: i32) -> (i32, i32, i32, i32) {
    %c0_i32 = arith.constant 0 : i32
    %c0_i32_0 = arith.constant 0 : i32
    %c0_i32_1 = arith.constant 0 : i32
    return %arg0, %arg1, %c0_i32, %c0_i32_0 : i32, i32, i32, i32
  }
}

module attributes {stable_mosaic.version = 11 : i64} {
  func.func @_poly_conv_kernel(%arg0: i32, %arg1: i32, %arg2: memref<1x1x42x4xf32, #tpu.memory_space<vmem>>, %arg3: memref<1x1x42x4xf32, #tpu.memory_space<vmem>>, %arg4: memref<8x4x32xf32, #tpu.memory_space<vmem>>, %arg5: memref<1x32xf32, #tpu.memory_space<vmem>>, %arg6: memref<1x1x30x32xf32, #tpu.memory_space<vmem>>) attributes {dimension_semantics = [#tpu.dimension_semantics<parallel>, #tpu.dimension_semantics<parallel>], iteration_bounds = array<i64: 2, 5>, scalar_prefetch = 0 : i64, scratch_operands = 0 : i64, tpu.core_type = #tpu.core_type<tc>, window_params = [{transform_indices = @transform_0, window_bounds = array<i64: 1, 1, 42, 4>}, {transform_indices = @transform_1, window_bounds = array<i64: 1, 1, 42, 4>}, {pipeline_mode = #tpu.pipeline_mode<synchronous>, transform_indices = @transform_2, window_bounds = array<i64: 8, 4, 32>}, {pipeline_mode = #tpu.pipeline_mode<synchronous>, transform_indices = @transform_3, window_bounds = array<i64: 1, 32>}, {transform_indices = @transform_4, window_bounds = array<i64: 1, 1, 30, 32>}]} {
    %c0 = arith.constant 0 : index
    %c0_0 = arith.constant 0 : index
    %c0_1 = arith.constant 0 : index
    %c0_2 = arith.constant 0 : index
    %0 = vector.load %arg2[%c0, %c0_0, %c0_1, %c0_2] : memref<1x1x42x4xf32, #tpu.memory_space<vmem>>, vector<1x1x30x4xf32>
    %1 = vector.shape_cast %0 : vector<1x1x30x4xf32> to vector<30x4xf32>
    %c0_3 = arith.constant 0 : index
    %c0_4 = arith.constant 0 : index
    %c0_5 = arith.constant 0 : index
    %2 = vector.load %arg4[%c0_3, %c0_4, %c0_5] : memref<8x4x32xf32, #tpu.memory_space<vmem>>, vector<1x4x32xf32>
    %3 = vector.shape_cast %2 : vector<1x4x32xf32> to vector<4x32xf32>
    %cst = arith.constant dense<0.000000e+00> : vector<30x32xf32>
    %4 = tpu.matmul %1, %3, %cst {dimension_numbers = #tpu.dot_dimension_numbers<[1], [0], [0], [1], [0, 0, 1, 1], [], []>} : vector<30x4xf32>, vector<4x32xf32>, vector<30x32xf32> -> vector<30x32xf32>
    %c0_6 = arith.constant 0 : index
    %c0_7 = arith.constant 0 : index
    %c1 = arith.constant 1 : index
    %c0_8 = arith.constant 0 : index
    %5 = vector.load %arg2[%c0_6, %c0_7, %c1, %c0_8] : memref<1x1x42x4xf32, #tpu.memory_space<vmem>>, vector<1x1x30x4xf32>
    %6 = vector.shape_cast %5 : vector<1x1x30x4xf32> to vector<30x4xf32>
    %c1_9 = arith.constant 1 : index
    %c0_10 = arith.constant 0 : index
    %c0_11 = arith.constant 0 : index
    %7 = vector.load %arg4[%c1_9, %c0_10, %c0_11] : memref<8x4x32xf32, #tpu.memory_space<vmem>>, vector<1x4x32xf32>
    %8 = vector.shape_cast %7 : vector<1x4x32xf32> to vector<4x32xf32>
    %cst_12 = arith.constant dense<0.000000e+00> : vector<30x32xf32>
    %9 = tpu.matmul %6, %8, %cst_12 {dimension_numbers = #tpu.dot_dimension_numbers<[1], [0], [0], [1], [0, 0, 1, 1], [], []>} : vector<30x4xf32>, vector<4x32xf32>, vector<30x32xf32> -> vector<30x32xf32>
    %10 = arith.addf %4, %9 : vector<30x32xf32>
    %c0_13 = arith.constant 0 : index
    %c0_14 = arith.constant 0 : index
    %c6 = arith.constant 6 : index
    %c0_15 = arith.constant 0 : index
    %11 = vector.load %arg2[%c0_13, %c0_14, %c6, %c0_15] : memref<1x1x42x4xf32, #tpu.memory_space<vmem>>, vector<1x1x30x4xf32>
    %12 = vector.shape_cast %11 : vector<1x1x30x4xf32> to vector<30x4xf32>
    %c2 = arith.constant 2 : index
    %c0_16 = arith.constant 0 : index
    %c0_17 = arith.constant 0 : index
    %13 = vector.load %arg4[%c2, %c0_16, %c0_17] : memref<8x4x32xf32, #tpu.memory_space<vmem>>, vector<1x4x32xf32>
    %14 = vector.shape_cast %13 : vector<1x4x32xf32> to vector<4x32xf32>
    %cst_18 = arith.constant dense<0.000000e+00> : vector<30x32xf32>
    %15 = tpu.matmul %12, %14, %cst_18 {dimension_numbers = #tpu.dot_dimension_numbers<[1], [0], [0], [1], [0, 0, 1, 1], [], []>} : vector<30x4xf32>, vector<4x32xf32>, vector<30x32xf32> -> vector<30x32xf32>
    %16 = arith.addf %10, %15 : vector<30x32xf32>
    %c0_19 = arith.constant 0 : index
    %c0_20 = arith.constant 0 : index
    %c7 = arith.constant 7 : index
    %c0_21 = arith.constant 0 : index
    %17 = vector.load %arg2[%c0_19, %c0_20, %c7, %c0_21] : memref<1x1x42x4xf32, #tpu.memory_space<vmem>>, vector<1x1x30x4xf32>
    %18 = vector.shape_cast %17 : vector<1x1x30x4xf32> to vector<30x4xf32>
    %c3 = arith.constant 3 : index
    %c0_22 = arith.constant 0 : index
    %c0_23 = arith.constant 0 : index
    %19 = vector.load %arg4[%c3, %c0_22, %c0_23] : memref<8x4x32xf32, #tpu.memory_space<vmem>>, vector<1x4x32xf32>
    %20 = vector.shape_cast %19 : vector<1x4x32xf32> to vector<4x32xf32>
    %cst_24 = arith.constant dense<0.000000e+00> : vector<30x32xf32>
    %21 = tpu.matmul %18, %20, %cst_24 {dimension_numbers = #tpu.dot_dimension_numbers<[1], [0], [0], [1], [0, 0, 1, 1], [], []>} : vector<30x4xf32>, vector<4x32xf32>, vector<30x32xf32> -> vector<30x32xf32>
    %22 = arith.addf %16, %21 : vector<30x32xf32>
    %c0_25 = arith.constant 0 : index
    %c0_26 = arith.constant 0 : index
    %c0_27 = arith.constant 0 : index
    %c0_28 = arith.constant 0 : index
    %23 = vector.load %arg3[%c0_25, %c0_26, %c0_27, %c0_28] : memref<1x1x42x4xf32, #tpu.memory_space<vmem>>, vector<1x1x30x4xf32>
    %24 = vector.shape_cast %23 : vector<1x1x30x4xf32> to vector<30x4xf32>
    %c4 = arith.constant 4 : index
    %c0_29 = arith.constant 0 : index
    %c0_30 = arith.constant 0 : index
    %25 = vector.load %arg4[%c4, %c0_29, %c0_30] : memref<8x4x32xf32, #tpu.memory_space<vmem>>, vector<1x4x32xf32>
    %26 = vector.shape_cast %25 : vector<1x4x32xf32> to vector<4x32xf32>
    %cst_31 = arith.constant dense<0.000000e+00> : vector<30x32xf32>
    %27 = tpu.matmul %24, %26, %cst_31 {dimension_numbers = #tpu.dot_dimension_numbers<[1], [0], [0], [1], [0, 0, 1, 1], [], []>} : vector<30x4xf32>, vector<4x32xf32>, vector<30x32xf32> -> vector<30x32xf32>
    %28 = arith.addf %22, %27 : vector<30x32xf32>
    %c0_32 = arith.constant 0 : index
    %c0_33 = arith.constant 0 : index
    %c1_34 = arith.constant 1 : index
    %c0_35 = arith.constant 0 : index
    %29 = vector.load %arg3[%c0_32, %c0_33, %c1_34, %c0_35] : memref<1x1x42x4xf32, #tpu.memory_space<vmem>>, vector<1x1x30x4xf32>
    %30 = vector.shape_cast %29 : vector<1x1x30x4xf32> to vector<30x4xf32>
    %c5 = arith.constant 5 : index
    %c0_36 = arith.constant 0 : index
    %c0_37 = arith.constant 0 : index
    %31 = vector.load %arg4[%c5, %c0_36, %c0_37] : memref<8x4x32xf32, #tpu.memory_space<vmem>>, vector<1x4x32xf32>
    %32 = vector.shape_cast %31 : vector<1x4x32xf32> to vector<4x32xf32>
    %cst_38 = arith.constant dense<0.000000e+00> : vector<30x32xf32>
    %33 = tpu.matmul %30, %32, %cst_38 {dimension_numbers = #tpu.dot_dimension_numbers<[1], [0], [0], [1], [0, 0, 1, 1], [], []>} : vector<30x4xf32>, vector<4x32xf32>, vector<30x32xf32> -> vector<30x32xf32>
    %34 = arith.addf %28, %33 : vector<30x32xf32>
    %c0_39 = arith.constant 0 : index
    %c0_40 = arith.constant 0 : index
    %c6_41 = arith.constant 6 : index
    %c0_42 = arith.constant 0 : index
    %35 = vector.load %arg3[%c0_39, %c0_40, %c6_41, %c0_42] : memref<1x1x42x4xf32, #tpu.memory_space<vmem>>, vector<1x1x30x4xf32>
    %36 = vector.shape_cast %35 : vector<1x1x30x4xf32> to vector<30x4xf32>
    %c6_43 = arith.constant 6 : index
    %c0_44 = arith.constant 0 : index
    %c0_45 = arith.constant 0 : index
    %37 = vector.load %arg4[%c6_43, %c0_44, %c0_45] : memref<8x4x32xf32, #tpu.memory_space<vmem>>, vector<1x4x32xf32>
    %38 = vector.shape_cast %37 : vector<1x4x32xf32> to vector<4x32xf32>
    %cst_46 = arith.constant dense<0.000000e+00> : vector<30x32xf32>
    %39 = tpu.matmul %36, %38, %cst_46 {dimension_numbers = #tpu.dot_dimension_numbers<[1], [0], [0], [1], [0, 0, 1, 1], [], []>} : vector<30x4xf32>, vector<4x32xf32>, vector<30x32xf32> -> vector<30x32xf32>
    %40 = arith.addf %34, %39 : vector<30x32xf32>
    %c0_47 = arith.constant 0 : index
    %c0_48 = arith.constant 0 : index
    %c7_49 = arith.constant 7 : index
    %c0_50 = arith.constant 0 : index
    %41 = vector.load %arg3[%c0_47, %c0_48, %c7_49, %c0_50] : memref<1x1x42x4xf32, #tpu.memory_space<vmem>>, vector<1x1x30x4xf32>
    %42 = vector.shape_cast %41 : vector<1x1x30x4xf32> to vector<30x4xf32>
    %c7_51 = arith.constant 7 : index
    %c0_52 = arith.constant 0 : index
    %c0_53 = arith.constant 0 : index
    %43 = vector.load %arg4[%c7_51, %c0_52, %c0_53] : memref<8x4x32xf32, #tpu.memory_space<vmem>>, vector<1x4x32xf32>
    %44 = vector.shape_cast %43 : vector<1x4x32xf32> to vector<4x32xf32>
    %cst_54 = arith.constant dense<0.000000e+00> : vector<30x32xf32>
    %45 = tpu.matmul %42, %44, %cst_54 {dimension_numbers = #tpu.dot_dimension_numbers<[1], [0], [0], [1], [0, 0, 1, 1], [], []>} : vector<30x4xf32>, vector<4x32xf32>, vector<30x32xf32> -> vector<30x32xf32>
    %46 = arith.addf %40, %45 : vector<30x32xf32>
    %c0_55 = arith.constant 0 : index
    %c0_56 = arith.constant 0 : index
    %47 = vector.load %arg5[%c0_55, %c0_56] : memref<1x32xf32, #tpu.memory_space<vmem>>, vector<1x32xf32>
    %48 = vector.broadcast %47 : vector<1x32xf32> to vector<30x32xf32>
    %49 = arith.addf %46, %48 : vector<30x32xf32>
    %cst_57 = arith.constant 0.000000e+00 : f32
    %50 = vector.broadcast %cst_57 : f32 to vector<30x32xf32>
    %51 = arith.cmpf oge, %49, %50 : vector<30x32xf32>
    %cst_58 = arith.constant 0.00999999977 : f32
    %52 = vector.broadcast %cst_58 : f32 to vector<30x32xf32>
    %53 = arith.mulf %52, %49 : vector<30x32xf32>
    %54 = arith.select %51, %49, %53 : vector<30x32xi1>, vector<30x32xf32>
    %c0_59 = arith.constant 0 : index
    %c0_60 = arith.constant 0 : index
    %c0_61 = arith.constant 0 : index
    %c0_62 = arith.constant 0 : index
    %55 = vector.load %arg6[%c0_59, %c0_60, %c0_61, %c0_62] : memref<1x1x30x32xf32, #tpu.memory_space<vmem>>, vector<1x1x30x32xf32>
    %56 = vector.shape_cast %55 : vector<1x1x30x32xf32> to vector<30x32xf32>
    %57 = vector.shape_cast %54 : vector<30x32xf32> to vector<1x1x30x32xf32>
    tpu.vector_store %arg6[%c0_59, %c0_60, %c0_61, %c0_62], %57 {strides = array<i32>} : memref<1x1x30x32xf32, #tpu.memory_space<vmem>>, vector<1x1x30x32xf32>,
    return
  }
  func.func @transform_0(%arg0: i32, %arg1: i32) -> (i32, i32, i32, i32) {
    %c0_i32 = arith.constant 0 : i32
    %c0_i32_0 = arith.constant 0 : i32
    %c0_i32_1 = arith.constant 0 : i32
    return %arg0, %arg1, %c0_i32, %c0_i32_0 : i32, i32, i32, i32
  }
  func.func @transform_1(%arg0: i32, %arg1: i32) -> (i32, i32, i32, i32) {
    %c1_i32 = arith.constant 1 : i32
    %0 = arith.addi %arg1, %c1_i32 : i32
    %c0_i32 = arith.constant 0 : i32
    %c0_i32_0 = arith.constant 0 : i32
    %c0_i32_1 = arith.constant 0 : i32
    return %arg0, %0, %c0_i32, %c0_i32_0 : i32, i32, i32, i32
  }
  func.func @transform_2(%arg0: i32, %arg1: i32) -> (i32, i32, i32) {
    %c0_i32 = arith.constant 0 : i32
    %c0_i32_0 = arith.constant 0 : i32
    %c0_i32_1 = arith.constant 0 : i32
    %c0_i32_2 = arith.constant 0 : i32
    return %c0_i32, %c0_i32_0, %c0_i32_1 : i32, i32, i32
  }
  func.func @transform_3(%arg0: i32, %arg1: i32) -> (i32, i32) {
    %c0_i32 = arith.constant 0 : i32
    %c0_i32_0 = arith.constant 0 : i32
    %c0_i32_1 = arith.constant 0 : i32
    return %c0_i32, %c0_i32_0 : i32, i32
  }
  func.func @transform_4(%arg0: i32, %arg1: i32) -> (i32, i32, i32, i32) {
    %c0_i32 = arith.constant 0 : i32
    %c0_i32_0 = arith.constant 0 : i32
    %c0_i32_1 = arith.constant 0 : i32
    return %arg0, %arg1, %c0_i32, %c0_i32_0 : i32, i32, i32, i32
  }
}

module attributes {stable_mosaic.version = 11 : i64} {
  func.func @_poly_conv_kernel(%arg0: i32, %arg1: i32, %arg2: memref<1x1x110x4xf32, #tpu.memory_space<vmem>>, %arg3: memref<1x1x110x4xf32, #tpu.memory_space<vmem>>, %arg4: memref<8x4x24xf32, #tpu.memory_space<vmem>>, %arg5: memref<1x24xf32, #tpu.memory_space<vmem>>, %arg6: memref<1x1x90x24xf32, #tpu.memory_space<vmem>>) attributes {dimension_semantics = [#tpu.dimension_semantics<parallel>, #tpu.dimension_semantics<parallel>], iteration_bounds = array<i64: 2, 9>, scalar_prefetch = 0 : i64, scratch_operands = 0 : i64, tpu.core_type = #tpu.core_type<tc>, window_params = [{transform_indices = @transform_0, window_bounds = array<i64: 1, 1, 110, 4>}, {transform_indices = @transform_1, window_bounds = array<i64: 1, 1, 110, 4>}, {pipeline_mode = #tpu.pipeline_mode<synchronous>, transform_indices = @transform_2, window_bounds = array<i64: 8, 4, 24>}, {pipeline_mode = #tpu.pipeline_mode<synchronous>, transform_indices = @transform_3, window_bounds = array<i64: 1, 24>}, {transform_indices = @transform_4, window_bounds = array<i64: 1, 1, 90, 24>}]} {
    %c0 = arith.constant 0 : index
    %c0_0 = arith.constant 0 : index
    %c0_1 = arith.constant 0 : index
    %c0_2 = arith.constant 0 : index
    %0 = vector.load %arg2[%c0, %c0_0, %c0_1, %c0_2] : memref<1x1x110x4xf32, #tpu.memory_space<vmem>>, vector<1x1x90x4xf32>
    %1 = vector.shape_cast %0 : vector<1x1x90x4xf32> to vector<90x4xf32>
    %c0_3 = arith.constant 0 : index
    %c0_4 = arith.constant 0 : index
    %c0_5 = arith.constant 0 : index
    %2 = vector.load %arg4[%c0_3, %c0_4, %c0_5] : memref<8x4x24xf32, #tpu.memory_space<vmem>>, vector<1x4x24xf32>
    %3 = vector.shape_cast %2 : vector<1x4x24xf32> to vector<4x24xf32>
    %cst = arith.constant dense<0.000000e+00> : vector<90x24xf32>
    %4 = tpu.matmul %1, %3, %cst {dimension_numbers = #tpu.dot_dimension_numbers<[1], [0], [0], [1], [0, 0, 1, 1], [], []>} : vector<90x4xf32>, vector<4x24xf32>, vector<90x24xf32> -> vector<90x24xf32>
    %c0_6 = arith.constant 0 : index
    %c0_7 = arith.constant 0 : index
    %c1 = arith.constant 1 : index
    %c0_8 = arith.constant 0 : index
    %5 = vector.load %arg2[%c0_6, %c0_7, %c1, %c0_8] : memref<1x1x110x4xf32, #tpu.memory_space<vmem>>, vector<1x1x90x4xf32>
    %6 = vector.shape_cast %5 : vector<1x1x90x4xf32> to vector<90x4xf32>
    %c1_9 = arith.constant 1 : index
    %c0_10 = arith.constant 0 : index
    %c0_11 = arith.constant 0 : index
    %7 = vector.load %arg4[%c1_9, %c0_10, %c0_11] : memref<8x4x24xf32, #tpu.memory_space<vmem>>, vector<1x4x24xf32>
    %8 = vector.shape_cast %7 : vector<1x4x24xf32> to vector<4x24xf32>
    %cst_12 = arith.constant dense<0.000000e+00> : vector<90x24xf32>
    %9 = tpu.matmul %6, %8, %cst_12 {dimension_numbers = #tpu.dot_dimension_numbers<[1], [0], [0], [1], [0, 0, 1, 1], [], []>} : vector<90x4xf32>, vector<4x24xf32>, vector<90x24xf32> -> vector<90x24xf32>
    %10 = arith.addf %4, %9 : vector<90x24xf32>
    %c0_13 = arith.constant 0 : index
    %c0_14 = arith.constant 0 : index
    %c10 = arith.constant 10 : index
    %c0_15 = arith.constant 0 : index
    %11 = vector.load %arg2[%c0_13, %c0_14, %c10, %c0_15] : memref<1x1x110x4xf32, #tpu.memory_space<vmem>>, vector<1x1x90x4xf32>
    %12 = vector.shape_cast %11 : vector<1x1x90x4xf32> to vector<90x4xf32>
    %c2 = arith.constant 2 : index
    %c0_16 = arith.constant 0 : index
    %c0_17 = arith.constant 0 : index
    %13 = vector.load %arg4[%c2, %c0_16, %c0_17] : memref<8x4x24xf32, #tpu.memory_space<vmem>>, vector<1x4x24xf32>
    %14 = vector.shape_cast %13 : vector<1x4x24xf32> to vector<4x24xf32>
    %cst_18 = arith.constant dense<0.000000e+00> : vector<90x24xf32>
    %15 = tpu.matmul %12, %14, %cst_18 {dimension_numbers = #tpu.dot_dimension_numbers<[1], [0], [0], [1], [0, 0, 1, 1], [], []>} : vector<90x4xf32>, vector<4x24xf32>, vector<90x24xf32> -> vector<90x24xf32>
    %16 = arith.addf %10, %15 : vector<90x24xf32>
    %c0_19 = arith.constant 0 : index
    %c0_20 = arith.constant 0 : index
    %c11 = arith.constant 11 : index
    %c0_21 = arith.constant 0 : index
    %17 = vector.load %arg2[%c0_19, %c0_20, %c11, %c0_21] : memref<1x1x110x4xf32, #tpu.memory_space<vmem>>, vector<1x1x90x4xf32>
    %18 = vector.shape_cast %17 : vector<1x1x90x4xf32> to vector<90x4xf32>
    %c3 = arith.constant 3 : index
    %c0_22 = arith.constant 0 : index
    %c0_23 = arith.constant 0 : index
    %19 = vector.load %arg4[%c3, %c0_22, %c0_23] : memref<8x4x24xf32, #tpu.memory_space<vmem>>, vector<1x4x24xf32>
    %20 = vector.shape_cast %19 : vector<1x4x24xf32> to vector<4x24xf32>
    %cst_24 = arith.constant dense<0.000000e+00> : vector<90x24xf32>
    %21 = tpu.matmul %18, %20, %cst_24 {dimension_numbers = #tpu.dot_dimension_numbers<[1], [0], [0], [1], [0, 0, 1, 1], [], []>} : vector<90x4xf32>, vector<4x24xf32>, vector<90x24xf32> -> vector<90x24xf32>
    %22 = arith.addf %16, %21 : vector<90x24xf32>
    %c0_25 = arith.constant 0 : index
    %c0_26 = arith.constant 0 : index
    %c0_27 = arith.constant 0 : index
    %c0_28 = arith.constant 0 : index
    %23 = vector.load %arg3[%c0_25, %c0_26, %c0_27, %c0_28] : memref<1x1x110x4xf32, #tpu.memory_space<vmem>>, vector<1x1x90x4xf32>
    %24 = vector.shape_cast %23 : vector<1x1x90x4xf32> to vector<90x4xf32>
    %c4 = arith.constant 4 : index
    %c0_29 = arith.constant 0 : index
    %c0_30 = arith.constant 0 : index
    %25 = vector.load %arg4[%c4, %c0_29, %c0_30] : memref<8x4x24xf32, #tpu.memory_space<vmem>>, vector<1x4x24xf32>
    %26 = vector.shape_cast %25 : vector<1x4x24xf32> to vector<4x24xf32>
    %cst_31 = arith.constant dense<0.000000e+00> : vector<90x24xf32>
    %27 = tpu.matmul %24, %26, %cst_31 {dimension_numbers = #tpu.dot_dimension_numbers<[1], [0], [0], [1], [0, 0, 1, 1], [], []>} : vector<90x4xf32>, vector<4x24xf32>, vector<90x24xf32> -> vector<90x24xf32>
    %28 = arith.addf %22, %27 : vector<90x24xf32>
    %c0_32 = arith.constant 0 : index
    %c0_33 = arith.constant 0 : index
    %c1_34 = arith.constant 1 : index
    %c0_35 = arith.constant 0 : index
    %29 = vector.load %arg3[%c0_32, %c0_33, %c1_34, %c0_35] : memref<1x1x110x4xf32, #tpu.memory_space<vmem>>, vector<1x1x90x4xf32>
    %30 = vector.shape_cast %29 : vector<1x1x90x4xf32> to vector<90x4xf32>
    %c5 = arith.constant 5 : index
    %c0_36 = arith.constant 0 : index
    %c0_37 = arith.constant 0 : index
    %31 = vector.load %arg4[%c5, %c0_36, %c0_37] : memref<8x4x24xf32, #tpu.memory_space<vmem>>, vector<1x4x24xf32>
    %32 = vector.shape_cast %31 : vector<1x4x24xf32> to vector<4x24xf32>
    %cst_38 = arith.constant dense<0.000000e+00> : vector<90x24xf32>
    %33 = tpu.matmul %30, %32, %cst_38 {dimension_numbers = #tpu.dot_dimension_numbers<[1], [0], [0], [1], [0, 0, 1, 1], [], []>} : vector<90x4xf32>, vector<4x24xf32>, vector<90x24xf32> -> vector<90x24xf32>
    %34 = arith.addf %28, %33 : vector<90x24xf32>
    %c0_39 = arith.constant 0 : index
    %c0_40 = arith.constant 0 : index
    %c10_41 = arith.constant 10 : index
    %c0_42 = arith.constant 0 : index
    %35 = vector.load %arg3[%c0_39, %c0_40, %c10_41, %c0_42] : memref<1x1x110x4xf32, #tpu.memory_space<vmem>>, vector<1x1x90x4xf32>
    %36 = vector.shape_cast %35 : vector<1x1x90x4xf32> to vector<90x4xf32>
    %c6 = arith.constant 6 : index
    %c0_43 = arith.constant 0 : index
    %c0_44 = arith.constant 0 : index
    %37 = vector.load %arg4[%c6, %c0_43, %c0_44] : memref<8x4x24xf32, #tpu.memory_space<vmem>>, vector<1x4x24xf32>
    %38 = vector.shape_cast %37 : vector<1x4x24xf32> to vector<4x24xf32>
    %cst_45 = arith.constant dense<0.000000e+00> : vector<90x24xf32>
    %39 = tpu.matmul %36, %38, %cst_45 {dimension_numbers = #tpu.dot_dimension_numbers<[1], [0], [0], [1], [0, 0, 1, 1], [], []>} : vector<90x4xf32>, vector<4x24xf32>, vector<90x24xf32> -> vector<90x24xf32>
    %40 = arith.addf %34, %39 : vector<90x24xf32>
    %c0_46 = arith.constant 0 : index
    %c0_47 = arith.constant 0 : index
    %c11_48 = arith.constant 11 : index
    %c0_49 = arith.constant 0 : index
    %41 = vector.load %arg3[%c0_46, %c0_47, %c11_48, %c0_49] : memref<1x1x110x4xf32, #tpu.memory_space<vmem>>, vector<1x1x90x4xf32>
    %42 = vector.shape_cast %41 : vector<1x1x90x4xf32> to vector<90x4xf32>
    %c7 = arith.constant 7 : index
    %c0_50 = arith.constant 0 : index
    %c0_51 = arith.constant 0 : index
    %43 = vector.load %arg4[%c7, %c0_50, %c0_51] : memref<8x4x24xf32, #tpu.memory_space<vmem>>, vector<1x4x24xf32>
    %44 = vector.shape_cast %43 : vector<1x4x24xf32> to vector<4x24xf32>
    %cst_52 = arith.constant dense<0.000000e+00> : vector<90x24xf32>
    %45 = tpu.matmul %42, %44, %cst_52 {dimension_numbers = #tpu.dot_dimension_numbers<[1], [0], [0], [1], [0, 0, 1, 1], [], []>} : vector<90x4xf32>, vector<4x24xf32>, vector<90x24xf32> -> vector<90x24xf32>
    %46 = arith.addf %40, %45 : vector<90x24xf32>
    %c0_53 = arith.constant 0 : index
    %c0_54 = arith.constant 0 : index
    %47 = vector.load %arg5[%c0_53, %c0_54] : memref<1x24xf32, #tpu.memory_space<vmem>>, vector<1x24xf32>
    %48 = vector.broadcast %47 : vector<1x24xf32> to vector<90x24xf32>
    %49 = arith.addf %46, %48 : vector<90x24xf32>
    %cst_55 = arith.constant 0.000000e+00 : f32
    %50 = vector.broadcast %cst_55 : f32 to vector<90x24xf32>
    %51 = arith.subf %50, %49 : vector<90x24xf32>
    %52 = math.exp %51 : vector<90x24xf32>
    %cst_56 = arith.constant 1.000000e+00 : f32
    %53 = vector.broadcast %cst_56 : f32 to vector<90x24xf32>
    %54 = arith.addf %53, %52 : vector<90x24xf32>
    %55 = tpu.reciprocal %54 {approx = true} : vector<90x24xf32> -> vector<90x24xf32>
    %c0_57 = arith.constant 0 : index
    %c0_58 = arith.constant 0 : index
    %c0_59 = arith.constant 0 : index
    %c0_60 = arith.constant 0 : index
    %56 = vector.load %arg6[%c0_57, %c0_58, %c0_59, %c0_60] : memref<1x1x90x24xf32, #tpu.memory_space<vmem>>, vector<1x1x90x24xf32>
    %57 = vector.shape_cast %56 : vector<1x1x90x24xf32> to vector<90x24xf32>
    %58 = vector.shape_cast %55 : vector<90x24xf32> to vector<1x1x90x24xf32>
    tpu.vector_store %arg6[%c0_57, %c0_58, %c0_59, %c0_60], %58 {strides = array<i32>} : memref<1x1x90x24xf32, #tpu.memory_space<vmem>>, vector<1x1x90x24xf32>,
    return
  }
  func.func @transform_0(%arg0: i32, %arg1: i32) -> (i32, i32, i32, i32) {
    %c0_i32 = arith.constant 0 : i32
    %c0_i32_0 = arith.constant 0 : i32
    %c0_i32_1 = arith.constant 0 : i32
    return %arg0, %arg1, %c0_i32, %c0_i32_0 : i32, i32, i32, i32
  }
  func.func @transform_1(%arg0: i32, %arg1: i32) -> (i32, i32, i32, i32) {
    %c1_i32 = arith.constant 1 : i32
    %0 = arith.addi %arg1, %c1_i32 : i32
    %c0_i32 = arith.constant 0 : i32
    %c0_i32_0 = arith.constant 0 : i32
    %c0_i32_1 = arith.constant 0 : i32
    return %arg0, %0, %c0_i32, %c0_i32_0 : i32, i32, i32, i32
  }
  func.func @transform_2(%arg0: i32, %arg1: i32) -> (i32, i32, i32) {
    %c0_i32 = arith.constant 0 : i32
    %c0_i32_0 = arith.constant 0 : i32
    %c0_i32_1 = arith.constant 0 : i32
    %c0_i32_2 = arith.constant 0 : i32
    return %c0_i32, %c0_i32_0, %c0_i32_1 : i32, i32, i32
  }
  func.func @transform_3(%arg0: i32, %arg1: i32) -> (i32, i32) {
    %c0_i32 = arith.constant 0 : i32
    %c0_i32_0 = arith.constant 0 : i32
    %c0_i32_1 = arith.constant 0 : i32
    return %c0_i32, %c0_i32_0 : i32, i32
  }
  func.func @transform_4(%arg0: i32, %arg1: i32) -> (i32, i32, i32, i32) {
    %c0_i32 = arith.constant 0 : i32
    %c0_i32_0 = arith.constant 0 : i32
    %c0_i32_1 = arith.constant 0 : i32
    return %arg0, %arg1, %c0_i32, %c0_i32_0 : i32, i32, i32, i32
  }
}

</mosaic_0001>

<bundles_post_ra>
// kernel: tile.29
= control target key start
LH: loop header
LB: loop body
LE: loop exit
PB: predicated region body
PF: predicated region fallthrough
CT: control target
= control target key end

     0   :  { %s67_s10 = smov 28   ;;  %s68_s11 = smov 20   ;;  %vm3_vm0 = vcmask 31744   ;;  %vm9_vm1 = vcmask 261344   ;;  %vm15_vm2 = vcmask 228544   ;;  %vm21_vm3 = vcmask 195744   ;;  %s111_s0 = inlined_call_operand.vmem [shape: f32[8,4], index: 0, kind: input, shape index: {}]   ;;  %s112_s1 = inlined_call_operand.vmem [shape: f32[1,32], index: 1, kind: output, shape index: {}]  }
   0x1   :  { %v53_v0 = vld [vmem:[%s111_s0 + $0x7] sm:$0x1]   ;;  %v55_v1 = vld [vmem:[%s111_s0 + $0x5] sm:$0x1]   ;;  %v54_v2 = vld [vmem:[%s111_s0 + $0x6] sm:$0x1]  }
   0x2   :  { %7 = vrot.lane.b32.xlu0 %v53_v0, %s67_s10  ;;  %19 = vrot.lane.b32.xlu1 %v55_v1, %s68_s11  ;;  %v56_v3 = vld [vmem:[%s111_s0 + $0x4] sm:$0x1]   ;;  %v2_v4 = vld [vmem:[%s111_s0] sm:$0x1]   ;;  %s69_s18 = smov 24   ;;  %s70_s19 = smov 16  }
   0x3   :  { %4 = vst.msk [vmem:[#allocation0] sm:$0x1] %vm3_vm0, %v2_v4   ;;  %v57_v5 = vld [vmem:[%s111_s0 + $0x3] sm:$0x1]   ;;  %v58_v6 = vld [vmem:[%s111_s0 + $0x2] sm:$0x1]  }
   0x4   :  { %s71_s24 = smov 12   ;;  %s72_s25 = smov 8   ;;  %v59_v7 = vld [vmem:[%s111_s0 + $0x1] sm:$0x1]   ;;  %vm27_vm4 = vcmask 162944   ;;  %vm33_vm5 = vcmask 130144  }
   0x5   :  { %s73_s0 = smov 4   ;;  %vm39_vm6 = vcmask 97344   ;;  %vm45_vm7 = vcmask 64544  }
   0x6   :  { %13 = vrot.lane.b32.xlu0 %v54_v2, %s69_s18  ;;  %25 = vrot.lane.b32.xlu1 %v56_v3, %s70_s19 }
   0xa   :  { %31 = vrot.lane.b32.xlu0 %v57_v5, %s71_s24  ;;  %37 = vrot.lane.b32.xlu1 %v58_v6, %s72_s25 }
   0xe   :  { %43 = vrot.lane.b32.xlu0 %v59_v7, %s73_s0 }
  0x74   :  { %v8_v8 = vpop.permute.xlu0 %7   ;;  %v20_v9 = vpop.permute.xlu1 %19  }
  0x75   :  { %10 = vst.msk [vmem:[#allocation0] sm:$0x1] %vm9_vm1, %v8_v8  }
  0x78   :  { %v14_v10 = vpop.permute.xlu0 %13   ;;  %v26_v11 = vpop.permute.xlu1 %25  }
  0x79   :  { %16 = vst.msk [vmem:[#allocation0] sm:$0x1] %vm15_vm2, %v14_v10  }
  0x7a   :  { %22 = vst.msk [vmem:[#allocation0] sm:$0x1] %vm21_vm3, %v20_v9  }
  0x7b   :  { %28 = vst.msk [vmem:[#allocation0] sm:$0x1] %vm27_vm4, %v26_v11  }
  0x7c   :  { %v32_v12 = vpop.permute.xlu0 %31   ;;  %v38_v13 = vpop.permute.xlu1 %37  }
  0x7d   :  { %34 = vst.msk [vmem:[#allocation0] sm:$0x1] %vm33_vm5, %v32_v12  }
  0x7e   :  { %40 = vst.msk [vmem:[#allocation0] sm:$0x1] %vm39_vm6, %v38_v13  }
  0x80   :  { %v44_v14 = vpop.permute.xlu0 %43  }
  0x81   :  { %46 = vst.msk [vmem:[#allocation0] sm:$0x1] %vm45_vm7, %v44_v14  }
  0x88   :  { %v50_v15 = vld [vmem:[#allocation0] sm:$0x1] }
  0x89   :  { %52 = vst [vmem:[%s112_s1] sm:$0x1] %v50_v15 }

// kernel: tile.24
= control target key start
LH: loop header
LB: loop body
LE: loop exit
PB: predicated region body
PF: predicated region fallthrough
CT: control target
= control target key end

     0   :  { %s67_s10 = smov 56   ;;  %s68_s11 = smov 40   ;;  %vm3_vm0 = vcmask 64512   ;;  %vm9_vm1 = vcmask 523712   ;;  %vm15_vm2 = vcmask 458112   ;;  %vm21_vm3 = vcmask 392512   ;;  %s111_s0 = inlined_call_operand.vmem [shape: f32[8,8], index: 0, kind: input, shape index: {}]   ;;  %s112_s1 = inlined_call_operand.vmem [shape: f32[1,64], index: 1, kind: output, shape index: {}]  }
   0x1   :  { %v53_v0 = vld [vmem:[%s111_s0 + $0x7] sm:$0x1]   ;;  %v55_v1 = vld [vmem:[%s111_s0 + $0x5] sm:$0x1]   ;;  %v54_v2 = vld [vmem:[%s111_s0 + $0x6] sm:$0x1]  }
   0x2   :  { %7 = vrot.lane.b32.xlu0 %v53_v0, %s67_s10  ;;  %19 = vrot.lane.b32.xlu1 %v55_v1, %s68_s11  ;;  %v56_v3 = vld [vmem:[%s111_s0 + $0x4] sm:$0x1]   ;;  %v2_v4 = vld [vmem:[%s111_s0] sm:$0x1]   ;;  %s69_s18 = smov 48   ;;  %s70_s19 = smov 32  }
   0x3   :  { %4 = vst.msk [vmem:[#allocation0] sm:$0x1] %vm3_vm0, %v2_v4   ;;  %v57_v5 = vld [vmem:[%s111_s0 + $0x3] sm:$0x1]   ;;  %v58_v6 = vld [vmem:[%s111_s0 + $0x2] sm:$0x1]  }
   0x4   :  { %s71_s24 = smov 24   ;;  %s72_s25 = smov 16   ;;  %v59_v7 = vld [vmem:[%s111_s0 + $0x1] sm:$0x1]   ;;  %vm27_vm4 = vcmask 326912   ;;  %vm33_vm5 = vcmask 261312  }
   0x5   :  { %s73_s0 = smov 8   ;;  %vm39_vm6 = vcmask 195712   ;;  %vm45_vm7 = vcmask 130112  }
   0x6   :  { %13 = vrot.lane.b32.xlu0 %v54_v2, %s69_s18  ;;  %25 = vrot.lane.b32.xlu1 %v56_v3, %s70_s19 }
   0xa   :  { %31 = vrot.lane.b32.xlu0 %v57_v5, %s71_s24  ;;  %37 = vrot.lane.b32.xlu1 %v58_v6, %s72_s25 }
   0xe   :  { %43 = vrot.lane.b32.xlu0 %v59_v7, %s73_s0 }
  0x74   :  { %v8_v8 = vpop.permute.xlu0 %7   ;;  %v20_v9 = vpop.permute.xlu1 %19  }
  0x75   :  { %10 = vst.msk [vmem:[#allocation0] sm:$0x1] %vm9_vm1, %v8_v8  }
  0x78   :  { %v14_v10 = vpop.permute.xlu0 %13   ;;  %v26_v11 = vpop.permute.xlu1 %25  }
  0x79   :  { %16 = vst.msk [vmem:[#allocation0] sm:$0x1] %vm15_vm2, %v14_v10  }
  0x7a   :  { %22 = vst.msk [vmem:[#allocation0] sm:$0x1] %vm21_vm3, %v20_v9  }
  0x7b   :  { %28 = vst.msk [vmem:[#allocation0] sm:$0x1] %vm27_vm4, %v26_v11  }
  0x7c   :  { %v32_v12 = vpop.permute.xlu0 %31   ;;  %v38_v13 = vpop.permute.xlu1 %37  }
  0x7d   :  { %34 = vst.msk [vmem:[#allocation0] sm:$0x1] %vm33_vm5, %v32_v12  }
  0x7e   :  { %40 = vst.msk [vmem:[#allocation0] sm:$0x1] %vm39_vm6, %v38_v13  }
  0x80   :  { %v44_v14 = vpop.permute.xlu0 %43  }
  0x81   :  { %46 = vst.msk [vmem:[#allocation0] sm:$0x1] %vm45_vm7, %v44_v14  }
  0x88   :  { %v50_v15 = vld [vmem:[#allocation0] sm:$0x1] }
  0x89   :  { %52 = vst [vmem:[%s112_s1] sm:$0x1] %v50_v15 }

// kernel: tile.23
= control target key start
LH: loop header
LB: loop body
LE: loop exit
PB: predicated region body
PF: predicated region fallthrough
CT: control target
= control target key end

     0   :  { %2 = vsyncpa [#allocation1], 0  ;;  %s44_s6 = smov [#allocation0]   ;;  %s70_s0 = inlined_call_operand.hbm [shape: f32[8], index: 0, kind: input, shape index: {}]   ;;  %s71_s1 = inlined_call_operand.vmem [shape: f32[8,8], index: 1, kind: output, shape index: {}]  }
   0x1   :  { %s9_s7 = sshll.u32 %s44_s6, 4  ;;  %s20_s10 = scalar_lea.hbm %s70_s0, 16  ;;  %s10_s7 = int_to_ptr.vmem [resolvable:$true] %s9_s7 }
   0x2   :  { %p21_p0 = scmp.ne.s32.totalorder %s70_s0, %s20_s10  ;;  %p24_p1 = scmp.lt.u32.totalorder %s20_s10, %s70_s0 }
   0x4   :  { %p26_p2 = pnand %p24_p1, %p21_p0 }
   0x6   :  { %29 = shalt.err (!%p26_p2)
}
   0x7   :  { %s30_s15 = scalar_lea.vmem %s10_s7, 16  ;;  %s34_s16 = scalar_lea.vmem %s10_s7, 32 }
   0x8   :  { %p31_p3 = scmp.ne.s32.totalorder %s10_s7, %s30_s15  ;;  %p35_p4 = scmp.lt.s32.totalorder %s10_s7, %s10_s7 }
   0x9   :  { %p36_p5 = scmp.lt.s32.totalorder %s34_s16, %s30_s15 }
   0xb   :  { %p37_p6 = por %p36_p5, %p35_p4 }
   0xd   :  { %p38_p7 = pnand %p37_p6, %p31_p3 }
   0xf   :  { %41 = shalt.err (!%p38_p7)
}
  0x10   :  { %12 = dma.hbm_to_vmem [thread:$0]  %s70_s0, 16, %s10_s7, [#allocation1]  }
  0x11   :  { %42 = dma.done.wait [#allocation1], 16  }
  0x12   :  { %43 = vsyncadd [#allocation1], 4294967280  ;;  %v16_v0 = vld [vmem:[#allocation0] ss:$0 sm:$0xff] }
  0x13   :  { %17 = vst [vmem:[%s71_s1] sm:$0xff] %v16_v0 }
  0x14   :  { %18 = vsyncpa [#allocation1], 1 }

// kernel: tile.28
= control target key start
LH: loop header
LB: loop body
LE: loop exit
PB: predicated region body
PF: predicated region fallthrough
CT: control target
= control target key end

     0   :  { %2 = vsyncpa [#allocation1], 0  ;;  %s44_s6 = smov [#allocation0]   ;;  %s70_s0 = inlined_call_operand.hbm [shape: f32[4], index: 0, kind: input, shape index: {}]   ;;  %s71_s1 = inlined_call_operand.vmem [shape: f32[8,4], index: 1, kind: output, shape index: {}]  }
   0x1   :  { %s9_s7 = sshll.u32 %s44_s6, 4  ;;  %s20_s10 = scalar_lea.hbm %s70_s0, 16  ;;  %s10_s7 = int_to_ptr.vmem [resolvable:$true] %s9_s7 }
   0x2   :  { %p21_p0 = scmp.ne.s32.totalorder %s70_s0, %s20_s10  ;;  %p24_p1 = scmp.lt.u32.totalorder %s20_s10, %s70_s0 }
   0x4   :  { %p26_p2 = pnand %p24_p1, %p21_p0 }
   0x6   :  { %29 = shalt.err (!%p26_p2)
}
   0x7   :  { %s30_s15 = scalar_lea.vmem %s10_s7, 16  ;;  %s34_s16 = scalar_lea.vmem %s10_s7, 32 }
   0x8   :  { %p31_p3 = scmp.ne.s32.totalorder %s10_s7, %s30_s15  ;;  %p35_p4 = scmp.lt.s32.totalorder %s10_s7, %s10_s7 }
   0x9   :  { %p36_p5 = scmp.lt.s32.totalorder %s34_s16, %s30_s15 }
   0xb   :  { %p37_p6 = por %p36_p5, %p35_p4 }
   0xd   :  { %p38_p7 = pnand %p37_p6, %p31_p3 }
   0xf   :  { %41 = shalt.err (!%p38_p7)
}
  0x10   :  { %12 = dma.hbm_to_vmem [thread:$0]  %s70_s0, 16, %s10_s7, [#allocation1]  }
  0x11   :  { %42 = dma.done.wait [#allocation1], 16  }
  0x12   :  { %43 = vsyncadd [#allocation1], 4294967280  ;;  %v16_v0 = vld [vmem:[#allocation0] ss:$0 sm:$0xff] }
  0x13   :  { %17 = vst [vmem:[%s71_s1] sm:$0xff] %v16_v0 }
  0x14   :  { %18 = vsyncpa [#allocation1], 1 }

// kernel: tile.39
= control target key start
LH: loop header
LB: loop body
LE: loop exit
PB: predicated region body
PF: predicated region fallthrough
CT: control target
= control target key end

     0   :  { %s67_s10 = smov 21   ;;  %s68_s11 = smov 15   ;;  %vm3_vm0 = vcmask 23552   ;;  %vm9_vm1 = vcmask 195752   ;;  %vm15_vm2 = vcmask 171152   ;;  %vm21_vm3 = vcmask 146552   ;;  %s111_s0 = inlined_call_operand.vmem [shape: f32[8,3], index: 0, kind: input, shape index: {}]   ;;  %s112_s1 = inlined_call_operand.vmem [shape: f32[1,24], index: 1, kind: output, shape index: {}]  }
   0x1   :  { %v53_v0 = vld [vmem:[%s111_s0 + $0x7] sm:$0x1]   ;;  %v55_v1 = vld [vmem:[%s111_s0 + $0x5] sm:$0x1]   ;;  %v54_v2 = vld [vmem:[%s111_s0 + $0x6] sm:$0x1]  }
   0x2   :  { %7 = vrot.lane.b32.xlu0 %v53_v0, %s67_s10  ;;  %19 = vrot.lane.b32.xlu1 %v55_v1, %s68_s11  ;;  %v56_v3 = vld [vmem:[%s111_s0 + $0x4] sm:$0x1]   ;;  %v2_v4 = vld [vmem:[%s111_s0] sm:$0x1]   ;;  %s69_s18 = smov 18   ;;  %s70_s19 = smov 12  }
   0x3   :  { %4 = vst.msk [vmem:[#allocation0] sm:$0x1] %vm3_vm0, %v2_v4   ;;  %v57_v5 = vld [vmem:[%s111_s0 + $0x3] sm:$0x1]   ;;  %v58_v6 = vld [vmem:[%s111_s0 + $0x2] sm:$0x1]  }
   0x4   :  { %s71_s24 = smov 9   ;;  %s72_s25 = smov 6   ;;  %v59_v7 = vld [vmem:[%s111_s0 + $0x1] sm:$0x1]   ;;  %vm27_vm4 = vcmask 121952   ;;  %vm33_vm5 = vcmask 97352  }
   0x5   :  { %s73_s0 = smov 3   ;;  %vm39_vm6 = vcmask 72752   ;;  %vm45_vm7 = vcmask 48152  }
   0x6   :  { %13 = vrot.lane.b32.xlu0 %v54_v2, %s69_s18  ;;  %25 = vrot.lane.b32.xlu1 %v56_v3, %s70_s19 }
   0xa   :  { %31 = vrot.lane.b32.xlu0 %v57_v5, %s71_s24  ;;  %37 = vrot.lane.b32.xlu1 %v58_v6, %s72_s25 }
   0xe   :  { %43 = vrot.lane.b32.xlu0 %v59_v7, %s73_s0 }
  0x74   :  { %v8_v8 = vpop.permute.xlu0 %7   ;;  %v20_v9 = vpop.permute.xlu1 %19  }
  0x75   :  { %10 = vst.msk [vmem:[#allocation0] sm:$0x1] %vm9_vm1, %v8_v8  }
  0x78   :  { %v14_v10 = vpop.permute.xlu0 %13   ;;  %v26_v11 = vpop.permute.xlu1 %25  }
  0x79   :  { %16 = vst.msk [vmem:[#allocation0] sm:$0x1] %vm15_vm2, %v14_v10  }
  0x7a   :  { %22 = vst.msk [vmem:[#allocation0] sm:$0x1] %vm21_vm3, %v20_v9  }
  0x7b   :  { %28 = vst.msk [vmem:[#allocation0] sm:$0x1] %vm27_vm4, %v26_v11  }
  0x7c   :  { %v32_v12 = vpop.permute.xlu0 %31   ;;  %v38_v13 = vpop.permute.xlu1 %37  }
  0x7d   :  { %34 = vst.msk [vmem:[#allocation0] sm:$0x1] %vm33_vm5, %v32_v12  }
  0x7e   :  { %40 = vst.msk [vmem:[#allocation0] sm:$0x1] %vm39_vm6, %v38_v13  }
  0x80   :  { %v44_v14 = vpop.permute.xlu0 %43  }
  0x81   :  { %46 = vst.msk [vmem:[#allocation0] sm:$0x1] %vm45_vm7, %v44_v14  }
  0x88   :  { %v50_v15 = vld [vmem:[#allocation0] sm:$0x1] }
  0x89   :  { %52 = vst [vmem:[%s112_s1] sm:$0x1] %v50_v15 }

// kernel: tile.38
= control target key start
LH: loop header
LB: loop body
LE: loop exit
PB: predicated region body
PF: predicated region fallthrough
CT: control target
= control target key end

     0   :  { %2 = vsyncpa [#allocation1], 0  ;;  %s44_s6 = smov [#allocation0]   ;;  %s70_s0 = inlined_call_operand.hbm [shape: f32[3], index: 0, kind: input, shape index: {}]   ;;  %s71_s1 = inlined_call_operand.vmem [shape: f32[8,3], index: 1, kind: output, shape index: {}]  }
   0x1   :  { %s9_s7 = sshll.u32 %s44_s6, 4  ;;  %s20_s10 = scalar_lea.hbm %s70_s0, 16  ;;  %s10_s7 = int_to_ptr.vmem [resolvable:$true] %s9_s7 }
   0x2   :  { %p21_p0 = scmp.ne.s32.totalorder %s70_s0, %s20_s10  ;;  %p24_p1 = scmp.lt.u32.totalorder %s20_s10, %s70_s0 }
   0x4   :  { %p26_p2 = pnand %p24_p1, %p21_p0 }
   0x6   :  { %29 = shalt.err (!%p26_p2)
}
   0x7   :  { %s30_s15 = scalar_lea.vmem %s10_s7, 16  ;;  %s34_s16 = scalar_lea.vmem %s10_s7, 32 }
   0x8   :  { %p31_p3 = scmp.ne.s32.totalorder %s10_s7, %s30_s15  ;;  %p35_p4 = scmp.lt.s32.totalorder %s10_s7, %s10_s7 }
   0x9   :  { %p36_p5 = scmp.lt.s32.totalorder %s34_s16, %s30_s15 }
   0xb   :  { %p37_p6 = por %p36_p5, %p35_p4 }
   0xd   :  { %p38_p7 = pnand %p37_p6, %p31_p3 }
   0xf   :  { %41 = shalt.err (!%p38_p7)
}
  0x10   :  { %12 = dma.hbm_to_vmem [thread:$0]  %s70_s0, 16, %s10_s7, [#allocation1]  }
  0x11   :  { %42 = dma.done.wait [#allocation1], 16  }
  0x12   :  { %43 = vsyncadd [#allocation1], 4294967280  ;;  %v16_v0 = vld [vmem:[#allocation0] ss:$0 sm:$0xff] }
  0x13   :  { %17 = vst [vmem:[%s71_s1] sm:$0xff] %v16_v0 }
  0x14   :  { %18 = vsyncpa [#allocation1], 1 }

// kernel: _lambda_.5
= control target key start
LH: loop header
LB: loop body
LE: loop exit
PB: predicated region body
PF: predicated region fallthrough
CT: control target
= control target key end

     0   :  { %10 = vsyncpa [#allocation3], 0  ;;  %s484_s0 = inlined_call_operand.hbm [shape: f32[2,8], index: 0, kind: input, shape index: {}]   ;;  %s485_s1 = inlined_call_operand.hbm [shape: f32[8,32], index: 1, kind: input, shape index: {}]   ;;  %s486_s2 = inlined_call_operand.hbm [shape: f32[1,32], index: 2, kind: input, shape index: {}]   ;;  %s487_s3 = inlined_call_operand.vmem [shape: f32[32,8], index: 3, kind: input, shape index: {}]   ;;  %s488_s4 = inlined_call_operand.hbm [shape: f32[1,8], index: 4, kind: input, shape index: {}]   ;;  %s489_s5 = inlined_call_operand.vmem [shape: f32[2,8], index: 5, kind: output, shape index: {}]  }
   0x1   :  { %11 = vsyncpa [#allocation5], 0 }
   0x2   :  { %12 = vsyncpa [#allocation8], 0  ;;  %s384_s18 = smov [#allocation4]   ;;  %s385_s20 = smov [#allocation2]  }
   0x3   :  { %s29_s19 = sshll.u32 %s384_s18, 4  ;;  %s19_s21 = sshll.u32 %s385_s20, 4  ;;  %s30_s19 = int_to_ptr.vmem [resolvable:$true] %s29_s19  ;;  %s20_s21 = int_to_ptr.vmem [resolvable:$true] %s19_s21 }
   0x4   :  { %s290_s24 = scalar_lea.hbm %s485_s1, 128 }
   0x5   :  { %p291_p0 = scmp.ne.s32.totalorder %s485_s1, %s290_s24  ;;  %p294_p1 = scmp.lt.u32.totalorder %s290_s24, %s485_s1 }
   0x7   :  { %p296_p2 = pnand %p294_p1, %p291_p0 }
   0x9   :  { %299 = shalt.err (!%p296_p2)
}
   0xa   :  { %s300_s29 = scalar_lea.vmem %s30_s19, 128  ;;  %p305_p4 = scmp.lt.s32.totalorder %s30_s19, %s30_s19 }
   0xb   :  { %p301_p3 = scmp.ne.s32.totalorder %s30_s19, %s300_s29  ;;  %p306_p5 = scmp.lt.s32.totalorder %s300_s29, %s300_s29 }
   0xd   :  { %p307_p6 = por %p306_p5, %p305_p4 }
   0xf   :  { %p308_p7 = pnand %p307_p6, %p301_p3 }
  0x11   :  { %311 = shalt.err (!%p308_p7)
}
  0x12   :  { %32 = dma.hbm_to_vmem [thread:$0]  %s485_s1, 128, %s30_s19, [#allocation5]  }
  0x13   :  { %s312_s9 = scalar_lea.hbm %s484_s0, 32 }
  0x14   :  { %p313_p8 = scmp.ne.s32.totalorder %s484_s0, %s312_s9  ;;  %p316_p9 = scmp.lt.u32.totalorder %s312_s9, %s484_s0 }
  0x16   :  { %p318_p10 = pnand %p316_p9, %p313_p8 }
  0x18   :  { %321 = shalt.err (!%p318_p10)
}
  0x19   :  { %s322_s14 = scalar_lea.vmem %s20_s21, 32  ;;  %p327_p12 = scmp.lt.s32.totalorder %s20_s21, %s20_s21 }
  0x1a   :  { %p323_p11 = scmp.ne.s32.totalorder %s20_s21, %s322_s14  ;;  %p328_p13 = scmp.lt.s32.totalorder %s322_s14, %s322_s14 }
  0x1c   :  { %p329_p0 = por %p328_p13, %p327_p12 }
  0x1e   :  { %p330_p1 = pnand %p329_p0, %p323_p11 }
  0x20   :  { %333 = shalt.err (!%p330_p1)
}
  0x21   :  { %22 = dma.hbm_to_vmem [thread:$0]  %s484_s0, 32, %s20_s21, [#allocation3]  }
  0x22   :  { %s386_s16 = smov [#allocation6]   ;;  %s387_s18 = smov [#allocation7]  }
  0x23   :  { %s39_s17 = sshll.u32 %s386_s16, 4  ;;  %s51_s19 = sshll.u32 %s387_s18, 4  ;;  %s40_s17 = int_to_ptr.vmem [resolvable:$true] %s39_s17  ;;  %s52_s19 = int_to_ptr.vmem [resolvable:$true] %s51_s19 }
  0x24   :  { %s334_s23 = scalar_lea.hbm %s486_s2, 16 }
  0x25   :  { %p335_p2 = scmp.ne.s32.totalorder %s486_s2, %s334_s23  ;;  %p338_p3 = scmp.lt.u32.totalorder %s334_s23, %s486_s2 }
  0x27   :  { %p340_p4 = pnand %p338_p3, %p335_p2 }
  0x29   :  { %343 = shalt.err (!%p340_p4)
}
  0x2a   :  { %s344_s0 = scalar_lea.vmem %s40_s17, 16  ;;  %s348_s21 = scalar_lea.vmem %s40_s17, 32 }
  0x2b   :  { %p345_p5 = scmp.ne.s32.totalorder %s40_s17, %s344_s0  ;;  %p349_p6 = scmp.lt.s32.totalorder %s40_s17, %s40_s17 }
  0x2c   :  { %p350_p7 = scmp.lt.s32.totalorder %s348_s21, %s344_s0 }
  0x2e   :  { %p351_p8 = por %p350_p7, %p349_p6 }
  0x30   :  { %p352_p9 = pnand %p351_p8, %p345_p5 }
  0x32   :  { %355 = shalt.err (!%p352_p9)
}
  0x33   :  { %42 = dma.hbm_to_vmem [thread:$0]  %s486_s2, 16, %s40_s17, [#allocation5]  }
  0x34   :  { %s356_s7 = scalar_lea.hbm %s488_s4, 16 }
  0x35   :  { %p357_p10 = scmp.ne.s32.totalorder %s488_s4, %s356_s7  ;;  %p360_p11 = scmp.lt.u32.totalorder %s356_s7, %s488_s4 }
  0x37   :  { %p362_p12 = pnand %p360_p11, %p357_p10 }
  0x39   :  { %365 = shalt.err (!%p362_p12)
}
  0x3a   :  { %s366_s12 = scalar_lea.vmem %s52_s19, 16  ;;  %s370_s13 = scalar_lea.vmem %s52_s19, 32 }
  0x3b   :  { %p367_p13 = scmp.ne.s32.totalorder %s52_s19, %s366_s12  ;;  %p371_p0 = scmp.lt.s32.totalorder %s52_s19, %s52_s19 }
  0x3c   :  { %p372_p1 = scmp.lt.s32.totalorder %s370_s13, %s366_s12 }
  0x3e   :  { %p373_p2 = por %p372_p1, %p371_p0 }
  0x40   :  { %p374_p3 = pnand %p373_p2, %p367_p13 }
  0x42   :  { %377 = shalt.err (!%p374_p3)
}
  0x43   :  { %54 = dma.hbm_to_vmem [thread:$0]  %s488_s4, 16, %s52_s19, [#allocation8]  }
  0x44   :  { %378 = dma.done.wait [#allocation3], 32  }
  0x45   :  { %379 = vsyncadd [#allocation3], 4294967264 }
  0x46   :  { %380 = dma.done.wait [#allocation5], 144  }
  0x47   :  { %381 = vsyncadd [#allocation5], 4294967152 }
  0x48   :  { %382 = dma.done.wait [#allocation8], 16  }
  0x49   :  { %383 = vsyncadd [#allocation8], 4294967280  ;;  %v388_v0 = vmov 0.0   ;;  %vm389_vm0 = vmmov 0   ;;  %v390_v1 = vmov 0.0|0.0   ;;  %vm76_vm1 = vcmask 64512  }
  0x4a   :  { %261 = vmatprep.subr.mxu0 %v388_v0  ;;  %263 = vmatprep.mubr.msk.f32.mxu0 %vm389_vm0, %v388_v0  ;;  %v68_v2 = vld [vmem:[#allocation4] sm:$0xff]  ;;  %v67_v3 = vld [vmem:[#allocation2] sm:$0x3]  ;;  %v155_v7 = vld [vmem:[%s487_s3 + $0x10] sm:$0xff]  ;;  %vm164_vm3 = vcmask 261120   ;;  %vm241_vm5 = vcmask 58368  }
  0x4b   :  { %277 = vmatprep.subr.bf16.mxu1 %v390_v1  ;;  %274 = vmatprep.mubr.msk.f32.mxu1 %vm389_vm0, %v388_v0  ;;  %v153_v4 = vld [vmem:[%s487_s3] sm:$0xff]  ;;  %v154_v5 = vld [vmem:[%s487_s3 + $0x8] sm:$0xff]  ;;  %v156_v8 = vld [vmem:[%s487_s3 + $0x18] sm:$0xff] }
  0x4c   :  { %262 = vmatpush3.msra.mxu0 %v68_v2  ;;  %v278_v6 = vpack.c.bf16 %v154_v5, %v153_v4  ;;  %v281_v9 = vpack.c.bf16 %v156_v8, %v155_v7  ;;  %v250_v10 = vld [vmem:[#allocation6] ss:$0 sm:$0xff]  ;;  %v252_v16 = vld [vmem:[#allocation7] ss:$0 sm:$0xff] }
  0x4d   :  { %264 = vmatmul.mubr.msk.f32.vlgmr.msra.gmra.mrb[0].mxu0 %vm76_vm1, %v67_v3 }
  0x4e   :  { %279 = vmatpush3.bf16.msra.mxu1 %v278_v6 }
  0x4f   :  { %280 = vmatprep.subr.bf16.mxu1 %v390_v1 }
  0x52   :  { %282 = vmatpush3.bf16.msra.mxu1 %v281_v9 }
 0x120   :  { %v146_v11 = vpop.f32.mrb[0].mxu0 }
 0x121   :  { %v147_v12 = vadd.f32 %v250_v10, %v146_v11  ;;  %v265_v13 = vpop.f32.mrb[1].mxu0 }
 0x123   :  { %vm150_vm2 = vcmp.ge.f32.partialorder %v147_v12, 0.0  ;;  %v151_v14 = vmul.f32 0.01, %v147_v12 }
 0x125   :  { %v152_v15 = vsel %vm150_vm2, %v147_v12, %v151_v14 }
 0x126   :  { %275 = vmatmul.mubr.msk.f32.vlgmr.msra.gmra.mrb[0].mxu1 %vm164_vm3, %v152_v15 }
 0x1f9   :  { %v234_v17 = vpop.f32.mrb[0].mxu1 }
 0x1fa   :  { %v235_v18 = vadd.f32 %v252_v16, %v234_v17  ;;  %v276_v19 = vpop.f32.mrb[1].mxu1 }
 0x1fc   :  { %vm238_vm4 = vcmp.ge.f32.partialorder %v235_v18, 0.0  ;;  %v239_v20 = vmul.f32 0.01, %v235_v18 }
 0x1fe   :  { %v240_v21 = vsel %vm238_vm4, %v235_v18, %v239_v20 }
 0x1ff   :  { %242 = vst.msk [vmem:[%s489_s5] sm:$0x3] %vm241_vm5, %v240_v21 }
 0x200   :  { %247 = vsyncpa [#allocation3], 1 }
 0x201   :  { %248 = vsyncpa [#allocation5], 1 }
 0x202   :  { %249 = vsyncpa [#allocation8], 1 }

// kernel: _lambda_.6
= control target key start
LH: loop header
LB: loop body
LE: loop exit
PB: predicated region body
PF: predicated region fallthrough
CT: control target
= control target key end

     0   :  { %s1205_s15 = smov 0   ;;  %s1207_s16 = smov 0   ;;  %s1313_s0 = inlined_call_operand.vmem [shape: f32[2,3,12,8], index: 0, kind: input, shape index: {}, may-alias: {0,1}]   ;;  %s1314_s1 = inlined_call_operand.vmem [shape: f32[2,3,12,8], index: 1, kind: input, shape index: {}, may-alias: {0,1}]   ;;  %s1315_s2 = inlined_call_operand.vmem [shape: f32[8,8,64], index: 2, kind: input, shape index: {}]   ;;  %s1316_s3 = inlined_call_operand.vmem [shape: f32[1,64], index: 3, kind: input, shape index: {}]   ;;  %s1317_s4 = inlined_call_operand.vmem [shape: f32[2,2,6,64], index: 4, kind: output, shape index: {}]  }
   0x1   :  { %s1209_s17 = smov 0   ;;  %s1211_s18 = smov 0  }
   0x2   :  { %s1213_s19 = smov 0  }
   0x3 LB: > { %s23_s20 = sadd.s32 1, %s1168_s17  ;;  %s26_s21 = sadd.s32 1, %s1172_s18  ;;  %s1176_s19 = sphi %s1213_s19, %s14_s19   ;;  %s1172_s18 = sphi %s1211_s18, %s1321_s18   ;;  %s1168_s17 = sphi %s1209_s17, %s1320_s17   ;;  %s1164_s16 = sphi %s1207_s16, %s1319_s16   ;;  %s1160_s15 = sphi %s1205_s15, %s1318_s15  }
   0x4   : > { %p24_p0 = scmp.ge.s32.totalorder %s23_s20, 2  ;;  %p1014_p1 = scmp.ge.s32.totalorder %s1176_s19, 1 }
   0x5   : > { %p202_p2 = scmp.lt.s32.totalorder %s1176_s19, 5 }
   0x6   : > { %s1323_s20 = smov (%p24_p0, %s23_s20), 0  ;;  %s1325_s21 = smov (!%p24_p0, %s26_s21), %s1172_s18 }
   0x7   : > { %p203_p3 = pnand %p1014_p1, %p202_p2  ;;  %p28_p4 = scmp.ge.s32.totalorder %s1325_s21, 2 }
   0x8   : > { %v1021_v0 = vld [vmem:[%s1315_s2 + $0x8] sm:$0xff] (!%p203_p3)  ;;  %v274_v1 = vld [vmem:[%s1315_s2] sm:$0xff] (!%p203_p3)  ;;  %p245_p5 = scmp.lt.s32.totalorder (!%p203_p3), %s1164_s16, 1  ;;  %p247_p6 = scmp.lt.s32.totalorder (!%p203_p3), %s1160_s15, 2  ;;  %v1178_v2 = vmov (!%p203_p3), 0.0   ;;  %vm1179_vm0 = vmmov (!%p203_p3), 0  }
   0x9   : > { %s1327_s21 = smov (%p28_p4, %s1325_s21), 0  ;;  %206 = sbr.rel (%p203_p3) target bundleno = 258 (0x102), region = 36 }
   0xa   : > { %1055 = vmatprep.subr.mxu0 (!%p203_p3), %v1178_v2  ;;  %1060 = vmatprep.subr.mxu1 (!%p203_p3), %v1178_v2  ;;  %s254_s26 = sadd.s32 (!%p203_p3), 1, %s1160_s15  ;;  %vm278_vm1 = vcmask (!%p203_p3), 64512   ;;  %v1024_v3 = vld [vmem:[%s1315_s2 + $0x10] sm:$0xff] (!%p203_p3)  ;;  %v1026_v4 = vld [vmem:[%s1315_s2 + $0x18] sm:$0xff] (!%p203_p3)  ;;  %v1028_v9 = vld [vmem:[%s1315_s2 + $0x20] sm:$0xff] (!%p203_p3)  ;;  %p267_p8 = scmp.lt.s32.totalorder (!%p203_p3), %s1160_s15, 1 }
   0xb   : > { %1056 = vmatpush3.msra.mxu0 (!%p203_p3), %v1021_v0  ;;  %1057 = vmatprep.mubr.msk.f32.mxu0 (!%p203_p3), %vm1179_vm0, %v1178_v2  ;;  %p257_p7 = scmp.lt.s32.totalorder (!%p203_p3), %s254_s26, 2  ;;  %v1030_v10 = vld [vmem:[%s1315_s2 + $0x28] sm:$0xff] (!%p203_p3)  ;;  %v1032_v11 = vld [vmem:[%s1315_s2 + $0x30] sm:$0xff] (!%p203_p3)  ;;  %v1034_v14 = vld [vmem:[%s1315_s2 + $0x38] sm:$0xff] (!%p203_p3)  ;;  %vm898_vm3 = vcmask (!%p203_p3), 521216  }
   0xc   : > { %1061 = vmatpush3.msra.mxu1 (!%p203_p3), %v274_v1  ;;  %1062 = vmatprep.mubr.msk.f32.mxu1 (!%p203_p3), %vm1179_vm0, %v1178_v2  ;;  %v1036_v39 = vld [vmem:[%s1316_s3] ss:$0 sm:$0xff] (!%p203_p3) }
   0xd   : > { %1065 = vmatprep.subr.mxu0 (!%p203_p3), %v1178_v2  ;;  %1070 = vmatprep.subr.mxu1 (!%p203_p3), %v1178_v2 }
  0x10   : > { %s1329_s16 = smov (!%p245_p5, %s1164_s16), 1  ;;  %s1331_s26 = smov (!%p257_p7, %s254_s26), 2 }
  0x11   : > { %s248_s27 = scalar_select %p247_p6, %s1160_s15, 2 }
  0x12   : > { %s1095_s28 = smul.u32 6, %s1329_s16  ;;  %s1017_s24 = sshll.u32 %s1331_s26, 1 }
  0x13   : > { %s1015_s29 = sshll.u32 %s248_s27, 1  ;;  %s1333_s15 = smov (!%p267_p8, %s1160_s15), 1 }
  0x14   : > { %s251_s30 = sadd.s32 %s1095_s28, %s1015_s29  ;;  %s261_s25 = sadd.s32 %s1095_s28, %s1017_s24 }
  0x15   : > { %s1016_s5 = sshll.u32 %s251_s30, 3  ;;  %s1018_s27 = sshll.u32 %s261_s25, 3 }
  0x16   : > { %s253_s8 = scalar_lea.vmem %s1313_s0, %s1016_s5  ;;  %s263_s5 = scalar_lea.vmem %s1314_s1, %s1018_s27 }
  0x17   : > { %v275_v5 = vld [vmem:[%s253_s8 + $0x1] sm:$0x3f] }
  0x18   : > { %v273_v6 = vld [vmem:[%s253_s8] sm:$0x3f]  ;;  %1058 = vmatmul.mubr.msk.f32.vlgmr.msra.gmra.mrb[0].mxu0 %vm278_vm1, %v275_v5 }
  0x19   : > { %1063 = vmatmul.mubr.msk.f32.vlgmr.msra.gmra.mrb[0].mxu1 %vm278_vm1, %v273_v6  ;;  %1066 = vmatpush3.msra.mxu0 %v1024_v3  ;;  %v425_v7 = vld [vmem:[%s253_s8 + $0x3] sm:$0x3f] }
  0x1a   : > { %1071 = vmatpush3.msra.mxu1 %v1026_v4  ;;  %v502_v8 = vld [vmem:[%s253_s8 + $0x4] sm:$0x3f]  ;;  %1067 = vmatprep.mubr.msk.f32.mxu0 %vm1179_vm0, %v1178_v2  ;;  %s1019_s8 = sshll.u32 %s1329_s16, 1 }
  0x1b   : > { %1075 = vmatprep.subr.mxu0 %v1178_v2  ;;  %1072 = vmatprep.mubr.msk.f32.mxu1 %vm1179_vm0, %v1178_v2  ;;  %v579_v12 = vld [vmem:[%s263_s5] sm:$0x3f]  ;;  %s270_s9 = sadd.s32 %s1019_s8, %s1333_s15 }
  0x1c   : > { %1080 = vmatprep.subr.mxu1 %v1178_v2  ;;  %1068 = vmatmul.mubr.msk.f32.vlgmr.msra.gmra.mrb[2].mxu0 %vm278_vm1, %v425_v7  ;;  %v656_v13 = vld [vmem:[%s263_s5 + $0x1] sm:$0x3f]  ;;  %s1020_s12 = sshll.u32 %s270_s9, 3 }
  0x1d   : > { %1073 = vmatmul.mubr.msk.f32.vlgmr.msra.gmra.mrb[2].mxu1 %vm278_vm1, %v502_v8  ;;  %1076 = vmatpush3.msra.mxu0 %v1028_v9  ;;  %v733_v15 = vld [vmem:[%s263_s5 + $0x3] sm:$0x3f]  ;;  %s272_s22 = scalar_lea.vmem %s1317_s4, %s1020_s12 }
  0x1e   : > { %1081 = vmatpush3.msra.mxu1 %v1030_v10  ;;  %1077 = vmatprep.mubr.msk.f32.mxu0 %vm1179_vm0, %v1178_v2  ;;  %v810_v16 = vld [vmem:[%s263_s5 + $0x4] sm:$0x3f] }
  0x1f   : > { %1085 = vmatprep.subr.mxu0 %v1178_v2  ;;  %1082 = vmatprep.mubr.msk.f32.mxu1 %vm1179_vm0, %v1178_v2 }
  0x20   : > { %1090 = vmatprep.subr.mxu1 %v1178_v2  ;;  %1078 = vmatmul.mubr.msk.f32.vlgmr.msra.gmra.mrb[4].mxu0 %vm278_vm1, %v579_v12 }
  0x21   : > { %1083 = vmatmul.mubr.msk.f32.vlgmr.msra.gmra.mrb[4].mxu1 %vm278_vm1, %v656_v13  ;;  %1086 = vmatpush3.msra.mxu0 %v1032_v11 }
  0x22   : > { %1091 = vmatpush3.msra.mxu1 %v1034_v14  ;;  %1087 = vmatprep.mubr.msk.f32.mxu0 %vm1179_vm0, %v1178_v2 }
  0x23   : > { %1092 = vmatprep.mubr.msk.f32.mxu1 %vm1179_vm0, %v1178_v2 }
  0x24   : > { %1088 = vmatmul.mubr.msk.f32.vlgmr.msra.gmra.mrb[6].mxu0 %vm278_vm1, %v733_v15 }
  0x25   : > { %1093 = vmatmul.mubr.msk.f32.vlgmr.msra.gmra.mrb[6].mxu1 %vm278_vm1, %v810_v16 }
  0xeb   : > { %v348_v17 = vpop.f32.mrb[0].mxu0 }
  0xec   : > { %v421_v18 = vpop.f32.mrb[0].mxu1  ;;  %v1059_v20 = vpop.f32.mrb[1].mxu0 }
  0xed   : > { %v422_v19 = vadd.f32 %v421_v18, %v348_v17  ;;  %v1064_v21 = vpop.f32.mrb[1].mxu1 }
  0xef   : > { %v497_v22 = vpop.f32.mrb[2].mxu0 }
  0xf0   : > { %v574_v23 = vpop.f32.mrb[2].mxu1  ;;  %v501_v24 = vadd.f32 %v497_v22, %v422_v19  ;;  %v1069_v25 = vpop.f32.mrb[3].mxu0 }
  0xf1   : > { %v1074_v26 = vpop.f32.mrb[3].mxu1 }
  0xf2   : > { %v578_v27 = vadd.f32 %v574_v23, %v501_v24 }
  0xf3   : > { %v651_v28 = vpop.f32.mrb[4].mxu0 }
  0xf4   : > { %v728_v29 = vpop.f32.mrb[4].mxu1  ;;  %v655_v30 = vadd.f32 %v651_v28, %v578_v27  ;;  %v1079_v31 = vpop.f32.mrb[5].mxu0 }
  0xf5   : > { %v1084_v32 = vpop.f32.mrb[5].mxu1 }
  0xf6   : > { %v732_v33 = vadd.f32 %v728_v29, %v655_v30 }
  0xf7   : > { %v805_v34 = vpop.f32.mrb[6].mxu0 }
  0xf8   : > { %v882_v35 = vpop.f32.mrb[6].mxu1  ;;  %v809_v36 = vadd.f32 %v805_v34, %v732_v33  ;;  %v1089_v37 = vpop.f32.mrb[7].mxu0 }
  0xf9   : > { %v1094_v38 = vpop.f32.mrb[7].mxu1 }
  0xfa   : > { %v886_v40 = vadd.f32 %v882_v35, %v809_v36 }
  0xfc   : > { %v894_v41 = vadd.f32 %v1036_v39, %v886_v40 }
  0xfe   : > { %vm895_vm2 = vcmp.ge.f32.partialorder %v894_v41, 0.0  ;;  %v896_v42 = vmul.f32 0.01, %v894_v41 }
 0x100   : > { %v897_v43 = vsel %vm895_vm2, %v894_v41, %v896_v42 }
 0x101   : > { %899 = vst.msk [vmem:[%s272_s22] sm:$0x3f] %vm898_vm3, %v897_v43 }
 0x102 PF: > { %s14_s19 = sadd.s32 1, %s1176_s19   ;;  %s1318_s15 = smov %s1168_s17 }
 0x103   : > { %p11_p9 = scmp.ge.s32.totalorder %s14_s19, 6   ;;  %s1319_s16 = smov %s1172_s18 }
 0x104   : > { %s1320_s17 = smov %s1323_s20  ;;  %s1321_s18 = smov %s1327_s21 }
 0x105   :  { %13 = sbr.rel (!%p11_p9) target bundleno = 3 (0x3), region = 76 }

// kernel: _lambda_.7
= control target key start
LH: loop header
LB: loop body
LE: loop exit
PB: predicated region body
PF: predicated region fallthrough
CT: control target
= control target key end

     0   :  { %s1324_s15 = smov 0   ;;  %s1326_s16 = smov 0   ;;  %s1452_s0 = inlined_call_operand.vmem [shape: f32[2,4,20,8], index: 0, kind: input, shape index: {}, may-alias: {0,1}]   ;;  %s1453_s1 = inlined_call_operand.vmem [shape: f32[2,4,20,8], index: 1, kind: input, shape index: {}, may-alias: {0,1}]   ;;  %s1454_s2 = inlined_call_operand.vmem [shape: f32[8,8,32], index: 2, kind: input, shape index: {}]   ;;  %s1455_s3 = inlined_call_operand.vmem [shape: f32[1,32], index: 3, kind: input, shape index: {}]   ;;  %s1456_s4 = inlined_call_operand.vmem [shape: f32[2,3,12,32], index: 4, kind: output, shape index: {}]  }
   0x1   :  { %s1328_s17 = smov 0   ;;  %s1330_s18 = smov 0  }
   0x2   :  { %s1332_s19 = smov 0  }
   0x3 LB: > { %s23_s20 = sadd.s32 1, %s1289_s17  ;;  %s26_s21 = sadd.s32 1, %s1293_s18  ;;  %s1297_s19 = sphi %s1332_s19, %s14_s19   ;;  %s1293_s18 = sphi %s1330_s18, %s1460_s18   ;;  %s1289_s17 = sphi %s1328_s17, %s1459_s17   ;;  %s1285_s16 = sphi %s1326_s16, %s1458_s16   ;;  %s1281_s15 = sphi %s1324_s15, %s1457_s15  }
   0x4   : > { %p24_p0 = scmp.ge.s32.totalorder %s23_s20, 3  ;;  %p1106_p1 = scmp.ge.s32.totalorder %s1297_s19, 1 }
   0x5   : > { %p202_p2 = scmp.lt.s32.totalorder %s1297_s19, 7 }
   0x6   : > { %s1462_s20 = smov (%p24_p0, %s23_s20), 0  ;;  %s1464_s21 = smov (!%p24_p0, %s26_s21), %s1293_s18 }
   0x7   : > { %p203_p3 = pnand %p1106_p1, %p202_p2  ;;  %p28_p4 = scmp.ge.s32.totalorder %s1464_s21, 2 }
   0x8   : > { %v1111_v0 = vld [vmem:[%s1454_s2 + $0x8] sm:$0xff] (!%p203_p3)  ;;  %v1122_v1 = vld [vmem:[%s1454_s2 + $0x20] sm:$0xff] (!%p203_p3)  ;;  %p246_p5 = scmp.lt.s32.totalorder (!%p203_p3), %s1285_s16, 1  ;;  %p248_p6 = scmp.lt.s32.totalorder (!%p203_p3), %s1281_s15, 3  ;;  %vm282_vm0 = vcmask (!%p203_p3), 64512   ;;  %v1116_v7 = vld [vmem:[%s1454_s2 + $0x10] sm:$0xff] (!%p203_p3) }
   0x9   : > { %s1466_s21 = smov (%p28_p4, %s1464_s21), 0  ;;  %206 = sbr.rel (%p203_p3) target bundleno = 274 (0x112), region = 36 }
   0xa   : > { %v277_v2 = vld [vmem:[%s1454_s2] sm:$0xff] (!%p203_p3)  ;;  %1161 = vmatprep.subr.mxu1 (!%p203_p3), %v1111_v0  ;;  %1181 = vmatprep.subr.mxu0 (!%p203_p3), %v1122_v1  ;;  %s255_s28 = sadd.s32 (!%p203_p3), 1, %s1281_s15  ;;  %v1125_v3 = vld [vmem:[%s1454_s2 + $0x28] sm:$0xff] (!%p203_p3)  ;;  %v1128_v11 = vld [vmem:[%s1454_s2 + $0x30] sm:$0xff] (!%p203_p3)  ;;  %p268_p8 = scmp.lt.s32.totalorder (!%p203_p3), %s1281_s15, 2  ;;  %vm984_vm2 = vcmask (!%p203_p3), 257024  }
   0xb   : > { %1162 = vmatpush3.msra.mxu1 (!%p203_p3), %v1111_v0  ;;  %1182 = vmatpush3.msra.mxu0 (!%p203_p3), %v1122_v1  ;;  %p258_p7 = scmp.lt.s32.totalorder (!%p203_p3), %s255_s28, 3  ;;  %v1119_v14 = vld [vmem:[%s1454_s2 + $0x18] sm:$0xff] (!%p203_p3)  ;;  %v1134_v27 = vld [vmem:[%s1455_s3] ss:$0 sm:$0xff] (!%p203_p3)  ;;  %vm982_vm4 = vcmask (!%p203_p3), 261120  }
   0xc   : > { %1166 = vmatprep.subr.mxu1 (!%p203_p3), %v277_v2  ;;  %1186 = vmatprep.subr.mxu0 (!%p203_p3), %v1125_v3  ;;  %v1131_v17 = vld [vmem:[%s1454_s2 + $0x38] sm:$0xff] (!%p203_p3) }
  0x10   : > { %s1468_s16 = smov (!%p246_p5, %s1285_s16), 1  ;;  %s1470_s28 = smov (!%p258_p7, %s255_s28), 3 }
  0x11   : > { %s249_s5 = scalar_select %p248_p6, %s1281_s15, 3 }
  0x12   : > { %s1216_s6 = smul.u32 12, %s1468_s16  ;;  %s1472_s15 = smov (!%p268_p8, %s1281_s15), 2 }
  0x13   : > { %s1215_s7 = smul.u32 3, %s249_s5 }
  0x14   : > { %s1217_s10 = smul.u32 3, %s1470_s28 }
  0x15   : > { %s252_s8 = sadd.s32 %s1216_s6, %s1215_s7 }
  0x16   : > { %s1107_s9 = sshll.u32 %s252_s8, 3  ;;  %s262_s14 = sadd.s32 %s1217_s10, %s1216_s6 }
  0x17   : > { %s1377_s13 = scalar_lea.vmem %s1452_s0, %s1107_s9  ;;  %s1108_s22 = sshll.u32 %s262_s14, 3 }
  0x18   : > { %v278_v4 = vld [vmem:[%s1377_s13 + $0x1] sm:$0xff]  ;;  %v279_v5 = vld [vmem:[%s1377_s13 + $0x9] sm:$0xf]  ;;  %s1390_s27 = scalar_lea.vmem %s1453_s1, %s1108_s22  ;;  %v533_v22 = vld [vmem:[%s1377_s13 + $0xd] sm:$0xf]  ;;  %s1218_s8 = smul.u32 6, %s1468_s16 }
  0x19   : > { %v275_v6 = vld [vmem:[%s1377_s13] sm:$0xff]  ;;  %1163 = vmatprep.mubr.msk.f32.mxu1 %vm282_vm0, %v278_v4  ;;  %v620_v9 = vld [vmem:[%s1390_s27 + $0x8] sm:$0xf]  ;;  %v446_v18 = vld [vmem:[%s1377_s13 + $0xc] sm:$0xf]  ;;  %s1109_s9 = sshll.u32 %s1472_s15, 1 }
  0x1a   : > { %1164 = vmatmul.mubr.msk.f32.vlgmr.msra.gmra.mrb[0].mxu1 %vm282_vm0, %v279_v5  ;;  %v619_v8 = vld [vmem:[%s1390_s27] sm:$0xff]  ;;  %v276_v12 = vld [vmem:[%s1377_s13 + $0x8] sm:$0xf]  ;;  %v794_v20 = vld [vmem:[%s1390_s27 + $0xc] sm:$0xf]  ;;  %s272_s10 = sadd.s32 %s1218_s8, %s1109_s9 }
  0x1b   : > { %1167 = vmatpush3.msra.mxu1 %v277_v2  ;;  %1168 = vmatprep.mubr.msk.f32.mxu1 %vm282_vm0, %v275_v6  ;;  %v706_v10 = vld [vmem:[%s1390_s27 + $0x1] sm:$0xff]  ;;  %v707_v15 = vld [vmem:[%s1390_s27 + $0x9] sm:$0xf]  ;;  %v881_v23 = vld [vmem:[%s1390_s27 + $0xd] sm:$0xf] }
  0x1c   : > { %1183 = vmatprep.mubr.msk.f32.mxu0 %vm282_vm0, %v619_v8  ;;  %1171 = vmatprep.subr.mxu1 %v1116_v7  ;;  %v445_v13 = vld [vmem:[%s1377_s13 + $0x4] sm:$0xff] }
  0x1d   : > { %1184 = vmatmul.mubr.msk.f32.vlgmr.msra.gmra.mrb[0].mxu0 %vm282_vm0, %v620_v9  ;;  %v793_v16 = vld [vmem:[%s1390_s27 + $0x4] sm:$0xff] }
  0x1e   : > { %1187 = vmatpush3.msra.mxu0 %v1125_v3  ;;  %1188 = vmatprep.mubr.msk.f32.mxu0 %vm282_vm0, %v706_v10  ;;  %v532_v19 = vld [vmem:[%s1377_s13 + $0x5] sm:$0xff]  ;;  %s1110_s13 = sshll.u32 %s272_s10, 3 }
  0x1f   : > { %1191 = vmatprep.subr.mxu0 %v1128_v11  ;;  %v880_v21 = vld [vmem:[%s1390_s27 + $0x5] sm:$0xff]  ;;  %s274_s23 = scalar_lea.vmem %s1456_s4, %s1110_s13 }
  0x22   : > { %1169 = vmatmul.mubr.msk.f32.vlgmr.msra.gmra.mrb[0].mxu1 %vm282_vm0, %v276_v12 }
  0x23   : > { %1172 = vmatpush3.msra.mxu1 %v1116_v7  ;;  %1173 = vmatprep.mubr.msk.f32.mxu1 %vm282_vm0, %v445_v13 }
  0x24   : > { %1176 = vmatprep.subr.mxu1 %v1119_v14 }
  0x25   : > { %1189 = vmatmul.mubr.msk.f32.vlgmr.msra.gmra.mrb[0].mxu0 %vm282_vm0, %v707_v15 }
  0x26   : > { %1192 = vmatpush3.msra.mxu0 %v1128_v11  ;;  %1193 = vmatprep.mubr.msk.f32.mxu0 %vm282_vm0, %v793_v16 }
  0x27   : > { %1196 = vmatprep.subr.mxu0 %v1131_v17 }
  0x2a   : > { %1174 = vmatmul.mubr.msk.f32.vlgmr.msra.gmra.mrb[0].mxu1 %vm282_vm0, %v446_v18 }
  0x2b   : > { %1177 = vmatpush3.msra.mxu1 %v1119_v14  ;;  %1178 = vmatprep.mubr.msk.f32.mxu1 %vm282_vm0, %v532_v19 }
  0x2d   : > { %1194 = vmatmul.mubr.msk.f32.vlgmr.msra.gmra.mrb[0].mxu0 %vm282_vm0, %v794_v20 }
  0x2e   : > { %1197 = vmatpush3.msra.mxu0 %v1131_v17  ;;  %1198 = vmatprep.mubr.msk.f32.mxu0 %vm282_vm0, %v880_v21 }
  0x32   : > { %1179 = vmatmul.mubr.msk.f32.vlgmr.msra.gmra.mrb[0].mxu1 %vm282_vm0, %v533_v22 }
  0x35   : > { %1199 = vmatmul.mubr.msk.f32.vlgmr.msra.gmra.mrb[0].mxu0 %vm282_vm0, %v881_v23 }
 0x105   : > { %v1180_v24 = vpop.f32.mrb[0].mxu1 }
 0x106   : > { %v608_v25 = vpop.f32.mrb[1].mxu1 }
 0x108   : > { %v1200_v26 = vpop.f32.mrb[0].mxu0 }
 0x109   : > { %v1201_v28 = vadd.f32 %v1200_v26, %v1180_v24  ;;  %v956_v29 = vpop.f32.mrb[1].mxu0 }
 0x10a   : > { %v1202_v30 = vadd.f32 %v956_v29, %v608_v25 }
 0x10b   : > { %v975_v31 = vadd.f32 %v1201_v28, %v1134_v27 }
 0x10c   : > { %v974_v32 = vadd.f32 %v1202_v30, %v1134_v27 }
 0x10d   : > { %vm977_vm1 = vcmp.ge.f32.partialorder %v975_v31, 0.0  ;;  %v979_v33 = vmul.f32 0.01, %v975_v31 }
 0x10e   : > { %vm976_vm3 = vcmp.ge.f32.partialorder %v974_v32, 0.0  ;;  %v978_v34 = vmul.f32 0.01, %v974_v32 }
 0x10f   : > { %v981_v35 = vsel %vm977_vm1, %v975_v31, %v979_v33 }
 0x110   : > { %985 = vst.msk [vmem:[%s274_s23 + $0x8] sm:$0xf] %vm984_vm2, %v981_v35  ;;  %v980_v36 = vsel %vm976_vm3, %v974_v32, %v978_v34 }
 0x111   : > { %983 = vst.msk [vmem:[%s274_s23] sm:$0xff] %vm982_vm4, %v980_v36 }
 0x112 PF: > { %s14_s19 = sadd.s32 1, %s1297_s19   ;;  %s1457_s15 = smov %s1289_s17 }
 0x113   : > { %p11_p9 = scmp.ge.s32.totalorder %s14_s19, 8   ;;  %s1458_s16 = smov %s1293_s18 }
 0x114   : > { %s1459_s17 = smov %s1462_s20  ;;  %s1460_s18 = smov %s1466_s21 }
 0x115   :  { %13 = sbr.rel (!%p11_p9) target bundleno = 3 (0x3), region = 76 }

// kernel: _lambda_.8
= control target key start
LH: loop header
LB: loop body
LE: loop exit
PB: predicated region body
PF: predicated region fallthrough
CT: control target
= control target key end

     0   :  { %s1593_s15 = smov 0   ;;  %s1595_s16 = smov 0   ;;  %s1772_s0 = inlined_call_operand.vmem [shape: f32[2,6,42,4], index: 0, kind: input, shape index: {}, may-alias: {0,1}]   ;;  %s1773_s1 = inlined_call_operand.vmem [shape: f32[2,6,42,4], index: 1, kind: input, shape index: {}, may-alias: {0,1}]   ;;  %s1774_s2 = inlined_call_operand.vmem [shape: f32[8,4,32], index: 2, kind: input, shape index: {}]   ;;  %s1775_s3 = inlined_call_operand.vmem [shape: f32[1,32], index: 3, kind: input, shape index: {}]   ;;  %s1776_s4 = inlined_call_operand.vmem [shape: f32[2,5,30,32], index: 4, kind: output, shape index: {}]  }
   0x1   :  { %s1597_s17 = smov 0   ;;  %s1599_s18 = smov 0  }
   0x2   :  { %s1601_s19 = smov 0  }
   0x3 LB: > { %s23_s20 = sadd.s32 1, %s1558_s17  ;;  %s26_s21 = sadd.s32 1, %s1562_s18  ;;  %s1566_s19 = sphi %s1601_s19, %s14_s19   ;;  %s1562_s18 = sphi %s1599_s18, %s1780_s18   ;;  %s1558_s17 = sphi %s1597_s17, %s1779_s17   ;;  %s1554_s16 = sphi %s1595_s16, %s1778_s16   ;;  %s1550_s15 = sphi %s1593_s15, %s1777_s15  }
   0x4   : > { %p24_p0 = scmp.ge.s32.totalorder %s23_s20, 5  ;;  %p1297_p1 = scmp.ge.s32.totalorder %s1566_s19, 1 }
   0x5   : > { %p202_p2 = scmp.lt.s32.totalorder %s1566_s19, 11 }
   0x6   : > { %s1782_s20 = smov (%p24_p0, %s23_s20), 0  ;;  %s1784_s21 = smov (!%p24_p0, %s26_s21), %s1562_s18 }
   0x7   : > { %p203_p3 = pnand %p1297_p1, %p202_p2  ;;  %p28_p4 = scmp.ge.s32.totalorder %s1784_s21, 2 }
   0x8   : > { %v1302_v0 = vld [vmem:[%s1774_s2 + $0x4] sm:$0xf] (!%p203_p3)  ;;  %vm299_vm0 = vcmask (!%p203_p3), 1043456   ;;  %v1325_v1 = vld [vmem:[%s1774_s2 + $0x10] sm:$0xf] (!%p203_p3)  ;;  %p246_p5 = scmp.lt.s32.totalorder (!%p203_p3), %s1554_s16, 1 }
   0x9   : > { %s1786_s21 = smov (%p28_p4, %s1784_s21), 0  ;;  %206 = sbr.rel (%p203_p3) target bundleno = 277 (0x115), region = 36 }
   0xa   : > { %1392 = vmatprep.subr.msk.mxu1 (!%p203_p3), %vm299_vm0, %v1302_v0  ;;  %1424 = vmatprep.subr.msk.mxu0 (!%p203_p3), %vm299_vm0, %v1325_v1  ;;  %p248_p6 = scmp.lt.s32.totalorder (!%p203_p3), %s1550_s15, 5  ;;  %v279_v2 = vld [vmem:[%s1774_s2] sm:$0xf] (!%p203_p3)  ;;  %s255_s28 = sadd.s32 (!%p203_p3), 1, %s1550_s15  ;;  %v1331_v3 = vld [vmem:[%s1774_s2 + $0x14] sm:$0xf] (!%p203_p3) }
   0xb   : > { %1393 = vmatpush3.msk.msra.mxu1 (!%p203_p3), %vm299_vm0, %v1302_v0  ;;  %1425 = vmatpush3.msk.msra.mxu0 (!%p203_p3), %vm299_vm0, %v1325_v1  ;;  %p258_p7 = scmp.lt.s32.totalorder (!%p203_p3), %s255_s28, 5  ;;  %vm286_vm1 = vcmask (!%p203_p3), 31744   ;;  %v1313_v7 = vld [vmem:[%s1774_s2 + $0x8] sm:$0xf] (!%p203_p3)  ;;  %v1337_v13 = vld [vmem:[%s1774_s2 + $0x18] sm:$0xf] (!%p203_p3) }
   0xc   : > { %1400 = vmatprep.subr.msk.mxu1 (!%p203_p3), %vm299_vm0, %v279_v2  ;;  %1432 = vmatprep.subr.msk.mxu0 (!%p203_p3), %vm299_vm0, %v1331_v3  ;;  %v1319_v18 = vld [vmem:[%s1774_s2 + $0xc] sm:$0xf] (!%p203_p3)  ;;  %v1343_v23 = vld [vmem:[%s1774_s2 + $0x1c] sm:$0xf] (!%p203_p3)  ;;  %p268_p8 = scmp.lt.s32.totalorder (!%p203_p3), %s1550_s15, 4  ;;  %vm1171_vm3 = vcmask (!%p203_p3), 261120  }
   0xd   : > { %v1349_v43 = vld [vmem:[%s1775_s3] ss:$0 sm:$0xff] (!%p203_p3)  ;;  %vm1175_vm6 = vcmask (!%p203_p3), 259072  }
  0x10   : > { %s1788_s16 = smov (!%p246_p5, %s1554_s16), 1  ;;  %s1790_s28 = smov (!%p258_p7, %s255_s28), 5 }
  0x11   : > { %s249_s5 = scalar_select %p248_p6, %s1550_s15, 5 }
  0x12   : > { %s1485_s6 = smul.u32 36, %s1788_s16  ;;  %s1792_s15 = smov (!%p268_p8, %s1550_s15), 4 }
  0x13   : > { %s1484_s7 = smul.u32 6, %s249_s5 }
  0x14   : > { %s1486_s10 = smul.u32 6, %s1790_s28 }
  0x15   : > { %s252_s8 = sadd.s32 %s1485_s6, %s1484_s7 }
  0x16   : > { %s1298_s9 = sshll.u32 %s252_s8, 3  ;;  %s262_s14 = sadd.s32 %s1486_s10, %s1485_s6 }
  0x17   : > { %s1652_s13 = scalar_lea.vmem %s1772_s0, %s1298_s9  ;;  %s1299_s22 = sshll.u32 %s262_s14, 3 }
  0x18   : > { %v280_v4 = vld [vmem:[%s1652_s13 + $0x1] sm:$0xff]  ;;  %v281_v5 = vld [vmem:[%s1652_s13 + $0x9] sm:$0xff]  ;;  %v282_v6 = vld [vmem:[%s1652_s13 + $0x11] sm:$0xff]  ;;  %s1665_s27 = scalar_lea.vmem %s1773_s1, %s1299_s22  ;;  %s1487_s8 = smul.u32 20, %s1788_s16 }
  0x19   : > { %1394 = vmatprep.mubr.msk.f32.mxu1 %vm286_vm1, %v280_v4  ;;  %v708_v8 = vld [vmem:[%s1665_s27] sm:$0xff]  ;;  %v709_v9 = vld [vmem:[%s1665_s27 + $0x8] sm:$0xff]  ;;  %v283_v10 = vld [vmem:[%s1652_s13 + $0x19] sm:$0x3f]  ;;  %s1300_s9 = sshll.u32 %s1792_s15, 2 }
  0x1a   : > { %1395 = vmatmul.mubr.msk.f32.vlgmr.msra.gmra.mrb[0].mxu1 %vm286_vm1, %v281_v5  ;;  %1426 = vmatprep.mubr.msk.f32.mxu0 %vm286_vm1, %v708_v8  ;;  %v710_v11 = vld [vmem:[%s1665_s27 + $0x10] sm:$0xff]  ;;  %v275_v12 = vld [vmem:[%s1652_s13] sm:$0xff]  ;;  %v711_v14 = vld [vmem:[%s1665_s27 + $0x18] sm:$0x3f]  ;;  %s272_s10 = sadd.s32 %s1487_s8, %s1300_s9 }
  0x1b   : > { %1401 = vmatpush3.msk.msra.mxu1 %vm299_vm0, %v279_v2  ;;  %1397 = vmatprep.mubr.msk.f32.mxu1 %vm286_vm1, %v282_v6  ;;  %v276_v15 = vld [vmem:[%s1652_s13 + $0x8] sm:$0xff]  ;;  %v277_v17 = vld [vmem:[%s1652_s13 + $0x10] sm:$0xff]  ;;  %v278_v20 = vld [vmem:[%s1652_s13 + $0x18] sm:$0x3f] }
  0x1c   : > { %1408 = vmatprep.subr.msk.mxu1 %vm299_vm0, %v1313_v7  ;;  %1427 = vmatmul.mubr.msk.f32.vlgmr.msra.gmra.mrb[0].mxu0 %vm286_vm1, %v709_v9  ;;  %v818_v16 = vld [vmem:[%s1665_s27 + $0x1] sm:$0xff]  ;;  %v819_v19 = vld [vmem:[%s1665_s27 + $0x9] sm:$0xff]  ;;  %v820_v21 = vld [vmem:[%s1665_s27 + $0x11] sm:$0xff] }
  0x1d   : > { %1433 = vmatpush3.msk.msra.mxu0 %vm299_vm0, %v1331_v3  ;;  %1429 = vmatprep.mubr.msk.f32.mxu0 %vm286_vm1, %v710_v11  ;;  %v488_v22 = vld [vmem:[%s1652_s13 + $0x6] sm:$0xff]  ;;  %v821_v24 = vld [vmem:[%s1665_s27 + $0x19] sm:$0x3f]  ;;  %v489_v25 = vld [vmem:[%s1652_s13 + $0xe] sm:$0xff] }
  0x1e   : > { %1398 = vmatmul.mubr.msk.f32.gmra.mrb[2].mxu1 %vm286_vm1, %v283_v10  ;;  %1440 = vmatprep.subr.msk.mxu0 %vm299_vm0, %v1337_v13  ;;  %v928_v26 = vld [vmem:[%s1665_s27 + $0x6] sm:$0xff]  ;;  %v490_v27 = vld [vmem:[%s1652_s13 + $0x16] sm:$0xff]  ;;  %v929_v28 = vld [vmem:[%s1665_s27 + $0xe] sm:$0xff] }
  0x1f   : > { %1402 = vmatprep.mubr.msk.f32.mxu1 %vm286_vm1, %v275_v12  ;;  %v491_v29 = vld [vmem:[%s1652_s13 + $0x1e] sm:$0x3f]  ;;  %v930_v30 = vld [vmem:[%s1665_s27 + $0x16] sm:$0xff]  ;;  %v598_v31 = vld [vmem:[%s1652_s13 + $0x7] sm:$0xff] }
  0x20   : > { %1430 = vmatmul.mubr.msk.f32.gmra.mrb[2].mxu0 %vm286_vm1, %v711_v14  ;;  %v931_v32 = vld [vmem:[%s1665_s27 + $0x1e] sm:$0x3f]  ;;  %v599_v33 = vld [vmem:[%s1652_s13 + $0xf] sm:$0xff]  ;;  %v1038_v34 = vld [vmem:[%s1665_s27 + $0x7] sm:$0xff] }
  0x21   : > { %1434 = vmatprep.mubr.msk.f32.mxu0 %vm286_vm1, %v818_v16  ;;  %v600_v35 = vld [vmem:[%s1652_s13 + $0x17] sm:$0xff]  ;;  %v1039_v36 = vld [vmem:[%s1665_s27 + $0xf] sm:$0xff]  ;;  %v601_v37 = vld [vmem:[%s1652_s13 + $0x1f] sm:$0x3f]  ;;  %s1301_s13 = sshll.u32 %s272_s10, 3 }
  0x22   : > { %1403 = vmatmul.mubr.msk.f32.vlgmr.msra.gmra.mrb[0].mxu1 %vm286_vm1, %v276_v15  ;;  %v1040_v38 = vld [vmem:[%s1665_s27 + $0x17] sm:$0xff]  ;;  %v1041_v39 = vld [vmem:[%s1665_s27 + $0x1f] sm:$0x3f]  ;;  %s274_s15 = scalar_lea.vmem %s1776_s4, %s1301_s13 }
  0x23   : > { %1409 = vmatpush3.msk.msra.mxu1 %vm299_vm0, %v1313_v7  ;;  %1405 = vmatprep.mubr.msk.f32.mxu1 %vm286_vm1, %v277_v17 }
  0x24   : > { %1416 = vmatprep.subr.msk.mxu1 %vm299_vm0, %v1319_v18  ;;  %1435 = vmatmul.mubr.msk.f32.vlgmr.msra.gmra.mrb[0].mxu0 %vm286_vm1, %v819_v19 }
  0x25   : > { %1441 = vmatpush3.msk.msra.mxu0 %vm299_vm0, %v1337_v13  ;;  %1437 = vmatprep.mubr.msk.f32.mxu0 %vm286_vm1, %v820_v21 }
  0x26   : > { %1406 = vmatmul.mubr.msk.f32.gmra.mrb[2].mxu1 %vm286_vm1, %v278_v20  ;;  %1448 = vmatprep.subr.msk.mxu0 %vm299_vm0, %v1343_v23 }
  0x27   : > { %1410 = vmatprep.mubr.msk.f32.mxu1 %vm286_vm1, %v488_v22 }
  0x28   : > { %1438 = vmatmul.mubr.msk.f32.gmra.mrb[2].mxu0 %vm286_vm1, %v821_v24 }
  0x29   : > { %1442 = vmatprep.mubr.msk.f32.mxu0 %vm286_vm1, %v928_v26 }
  0x2a   : > { %1411 = vmatmul.mubr.msk.f32.vlgmr.msra.gmra.mrb[0].mxu1 %vm286_vm1, %v489_v25 }
  0x2b   : > { %1417 = vmatpush3.msk.msra.mxu1 %vm299_vm0, %v1319_v18  ;;  %1413 = vmatprep.mubr.msk.f32.mxu1 %vm286_vm1, %v490_v27 }
  0x2c   : > { %1443 = vmatmul.mubr.msk.f32.vlgmr.msra.gmra.mrb[0].mxu0 %vm286_vm1, %v929_v28 }
  0x2d   : > { %1449 = vmatpush3.msk.msra.mxu0 %vm299_vm0, %v1343_v23  ;;  %1445 = vmatprep.mubr.msk.f32.mxu0 %vm286_vm1, %v930_v30 }
  0x2e   : > { %1414 = vmatmul.mubr.msk.f32.gmra.mrb[2].mxu1 %vm286_vm1, %v491_v29 }
  0x2f   : > { %1418 = vmatprep.mubr.msk.f32.mxu1 %vm286_vm1, %v598_v31 }
  0x30   : > { %1446 = vmatmul.mubr.msk.f32.gmra.mrb[2].mxu0 %vm286_vm1, %v931_v32 }
  0x31   : > { %1450 = vmatprep.mubr.msk.f32.mxu0 %vm286_vm1, %v1038_v34 }
  0x32   : > { %1419 = vmatmul.mubr.msk.f32.vlgmr.msra.gmra.mrb[0].mxu1 %vm286_vm1, %v599_v33 }
  0x33   : > { %1421 = vmatprep.mubr.msk.f32.mxu1 %vm286_vm1, %v600_v35 }
  0x34   : > { %1451 = vmatmul.mubr.msk.f32.vlgmr.msra.gmra.mrb[0].mxu0 %vm286_vm1, %v1039_v36 }
  0x35   : > { %1453 = vmatprep.mubr.msk.f32.mxu0 %vm286_vm1, %v1040_v38 }
  0x36   : > { %1422 = vmatmul.mubr.msk.f32.gmra.mrb[2].mxu1 %vm286_vm1, %v601_v37 }
  0x38   : > { %1454 = vmatmul.mubr.msk.f32.gmra.mrb[2].mxu0 %vm286_vm1, %v1041_v39 }
 0x105   : > { %v1420_v40 = vpop.f32.mrb[0].mxu1 }
 0x106   : > { %v685_v41 = vpop.f32.mrb[1].mxu1 }
 0x107   : > { %v1452_v42 = vpop.f32.mrb[0].mxu0 }
 0x108   : > { %v1456_v44 = vadd.f32 %v1452_v42, %v1420_v40  ;;  %v1125_v45 = vpop.f32.mrb[1].mxu0 }
 0x109   : > { %v1423_v46 = vpop.f32.mrb[2].mxu1  ;;  %v1457_v47 = vadd.f32 %v1125_v45, %v685_v41 }
 0x10a   : > { %v695_v48 = vpop.f32.mrb[3].mxu1  ;;  %v1156_v49 = vadd.f32 %v1456_v44, %v1349_v43 }
 0x10b   : > { %v1155_v50 = vadd.f32 %v1457_v47, %v1349_v43  ;;  %v1455_v51 = vpop.f32.mrb[2].mxu0 }
 0x10c   : > { %vm1160_vm2 = vcmp.ge.f32.partialorder %v1156_v49, 0.0  ;;  %v1164_v52 = vmul.f32 0.01, %v1156_v49  ;;  %v1458_v53 = vadd.f32 %v1455_v51, %v1423_v46  ;;  %v1135_v54 = vpop.f32.mrb[3].mxu0 }
 0x10d   : > { %vm1159_vm4 = vcmp.ge.f32.partialorder %v1155_v50, 0.0  ;;  %v1163_v55 = vmul.f32 0.01, %v1155_v50  ;;  %v1459_v56 = vadd.f32 %v1135_v54, %v695_v48 }
 0x10e   : > { %v1168_v57 = vsel %vm1160_vm2, %v1156_v49, %v1164_v52  ;;  %v1158_v58 = vadd.f32 %v1458_v53, %v1349_v43 }
 0x10f   : > { %1173 = vst.msk [vmem:[%s274_s15 + $0x8] sm:$0xff] %vm1171_vm3, %v1168_v57  ;;  %v1167_v59 = vsel %vm1159_vm4, %v1155_v50, %v1163_v55  ;;  %v1157_v60 = vadd.f32 %v1459_v56, %v1349_v43 }
 0x110   : > { %1172 = vst.msk [vmem:[%s274_s15] sm:$0xff] %vm1171_vm3, %v1167_v59  ;;  %vm1162_vm5 = vcmp.ge.f32.partialorder %v1158_v58, 0.0  ;;  %v1166_v61 = vmul.f32 0.01, %v1158_v58 }
 0x111   : > { %vm1161_vm7 = vcmp.ge.f32.partialorder %v1157_v60, 0.0  ;;  %v1165_v62 = vmul.f32 0.01, %v1157_v60 }
 0x112   : > { %v1170_v63 = vsel %vm1162_vm5, %v1158_v58, %v1166_v61 }
 0x113   : > { %1176 = vst.msk [vmem:[%s274_s15 + $0x18] sm:$0x3f] %vm1175_vm6, %v1170_v63  ;;  %v1169_v0 = vsel %vm1161_vm7, %v1157_v60, %v1165_v62 }
 0x114   : > { %1174 = vst.msk [vmem:[%s274_s15 + $0x10] sm:$0xff] %vm1171_vm3, %v1169_v0 }
 0x115 PF: > { %s14_s19 = sadd.s32 1, %s1566_s19   ;;  %s1777_s15 = smov %s1558_s17 }
 0x116   : > { %p11_p9 = scmp.ge.s32.totalorder %s14_s19, 12   ;;  %s1778_s16 = smov %s1562_s18 }
 0x117   : > { %s1779_s17 = smov %s1782_s20  ;;  %s1780_s18 = smov %s1786_s21 }
 0x118   :  { %13 = sbr.rel (!%p11_p9) target bundleno = 3 (0x3), region = 76 }

// kernel: _lambda_.9
= control target key start
LH: loop header
LB: loop body
LE: loop exit
PB: predicated region body
PF: predicated region fallthrough
CT: control target
= control target key end

     0   :  { %s2609_s15 = smov 0   ;;  %s2611_s16 = smov 0   ;;  %s2957_s0 = inlined_call_operand.vmem [shape: f32[2,10,110,4], index: 0, kind: input, shape index: {}, may-alias: {0,1}]   ;;  %s2958_s1 = inlined_call_operand.vmem [shape: f32[2,10,110,4], index: 1, kind: input, shape index: {}, may-alias: {0,1}]   ;;  %s2959_s2 = inlined_call_operand.vmem [shape: f32[8,4,24], index: 2, kind: input, shape index: {}]   ;;  %s2960_s3 = inlined_call_operand.vmem [shape: f32[1,24], index: 3, kind: input, shape index: {}]   ;;  %s2961_s4 = inlined_call_operand.vmem [shape: f32[2,9,90,24], index: 4, kind: output, shape index: {}]  }
   0x1   :  { %s2613_s17 = smov 0   ;;  %s2615_s18 = smov 0  }
   0x2   :  { %s2617_s19 = smov 0  }
   0x3 LB: > { %s23_s20 = sadd.s32 1, %s2574_s17  ;;  %s26_s21 = sadd.s32 1, %s2578_s18  ;;  %s2582_s19 = sphi %s2617_s19, %s14_s19   ;;  %s2578_s18 = sphi %s2615_s18, %s2965_s18   ;;  %s2574_s17 = sphi %s2613_s17, %s2964_s17   ;;  %s2570_s16 = sphi %s2611_s16, %s2963_s16   ;;  %s2566_s15 = sphi %s2609_s15, %s2962_s15  }
   0x4   : > { %p24_p0 = scmp.ge.s32.totalorder %s23_s20, 9  ;;  %p1985_p1 = scmp.ge.s32.totalorder %s2582_s19, 1 }
   0x5   : > { %p202_p2 = scmp.lt.s32.totalorder %s2582_s19, 19 }
   0x6   : > { %s2967_s20 = smov (%p24_p0, %s23_s20), 0  ;;  %s2969_s21 = smov (!%p24_p0, %s26_s21), %s2578_s18 }
   0x7   : > { %p203_p3 = pnand %p1985_p1, %p202_p2  ;;  %p28_p4 = scmp.ge.s32.totalorder %s2969_s21, 2 }
   0x8   : > { %v1989_v0 = vld [vmem:[%s2959_s2 + $0x4] sm:$0xf] (!%p203_p3)  ;;  %vm339_vm0 = vcmask (!%p203_p3), 1043456   ;;  %v2044_v1 = vld [vmem:[%s2959_s2 + $0x10] sm:$0xf] (!%p203_p3)  ;;  %p246_p5 = scmp.lt.s32.totalorder (!%p203_p3), %s2570_s16, 1 }
   0x9   : > { %s2971_s21 = smov (%p28_p4, %s2969_s21), 0  ;;  %206 = sbr.rel (%p203_p3) target bundleno = 368 (0x170), region = 36 }
   0xa   : > { %2207 = vmatprep.subr.msk.mxu1 (!%p203_p3), %vm339_vm0, %v1989_v0  ;;  %2287 = vmatprep.subr.msk.mxu0 (!%p203_p3), %vm339_vm0, %v2044_v1  ;;  %p248_p6 = scmp.lt.s32.totalorder (!%p203_p3), %s2566_s15, 9  ;;  %v287_v2 = vld [vmem:[%s2959_s2] sm:$0xf] (!%p203_p3)  ;;  %s255_s28 = sadd.s32 (!%p203_p3), 1, %s2566_s15  ;;  %v2058_v3 = vld [vmem:[%s2959_s2 + $0x14] sm:$0xf] (!%p203_p3) }
   0xb   : > { %2208 = vmatpush3.msk.msra.mxu1 (!%p203_p3), %vm339_vm0, %v1989_v0  ;;  %2288 = vmatpush3.msk.msra.mxu0 (!%p203_p3), %vm339_vm0, %v2044_v1  ;;  %p258_p7 = scmp.lt.s32.totalorder (!%p203_p3), %s255_s28, 9  ;;  %vm302_vm1 = vcmask (!%p203_p3), 31744   ;;  %v2016_v7 = vld [vmem:[%s2959_s2 + $0x8] sm:$0xf] (!%p203_p3)  ;;  %v2072_v13 = vld [vmem:[%s2959_s2 + $0x18] sm:$0xf] (!%p203_p3) }
   0xc   : > { %2227 = vmatprep.subr.msk.mxu1 (!%p203_p3), %vm339_vm0, %v287_v2  ;;  %2307 = vmatprep.subr.msk.mxu0 (!%p203_p3), %vm339_vm0, %v2058_v3  ;;  %v2030_v34 = vld [vmem:[%s2959_s2 + $0xc] sm:$0xf] (!%p203_p3)  ;;  %v2086_v39 = vld [vmem:[%s2959_s2 + $0x1c] sm:$0xf] (!%p203_p3)  ;;  %p268_p8 = scmp.lt.s32.totalorder (!%p203_p3), %s2566_s15, 8  ;;  %vm1851_vm2 = vcmask (!%p203_p3), 195584  }
   0xd   : > { %vm1863_vm3 = vcmask (!%p203_p3), 189440  }
  0x10   : > { %s2973_s16 = smov (!%p246_p5, %s2570_s16), 1  ;;  %s2975_s28 = smov (!%p258_p7, %s255_s28), 9 }
  0x11   : > { %s249_s5 = scalar_select %p248_p6, %s2566_s15, 9 }
  0x12   : > { %s2452_s6 = smul.u32 140, %s2973_s16  ;;  %s2977_s15 = smov (!%p268_p8, %s2566_s15), 8 }
  0x13   : > { %s2451_s7 = smul.u32 14, %s249_s5 }
  0x14   : > { %s2453_s10 = smul.u32 14, %s2975_s28 }
  0x15   : > { %s252_s8 = sadd.s32 %s2452_s6, %s2451_s7  ;;  %s2454_s11 = smul.u32 12, %s2977_s15 }
  0x16   : > { %s1986_s9 = sshll.u32 %s252_s8, 3  ;;  %s262_s14 = sadd.s32 %s2453_s10, %s2452_s6 }
  0x17   : > { %s2668_s13 = scalar_lea.vmem %s2957_s0, %s1986_s9  ;;  %s1987_s22 = sshll.u32 %s262_s14, 3 }
  0x18   : > { %v288_v4 = vld [vmem:[%s2668_s13 + $0x1] sm:$0xff]  ;;  %v289_v5 = vld [vmem:[%s2668_s13 + $0x9] sm:$0xff]  ;;  %v290_v6 = vld [vmem:[%s2668_s13 + $0x11] sm:$0xff]  ;;  %s2681_s27 = scalar_lea.vmem %s2958_s1, %s1987_s22  ;;  %s2455_s10 = smul.u32 108, %s2973_s16 }
  0x19   : > { %2209 = vmatprep.mubr.msk.f32.mxu1 %vm302_vm1, %v288_v4  ;;  %v1012_v8 = vld [vmem:[%s2681_s27] sm:$0xff]  ;;  %v1013_v9 = vld [vmem:[%s2681_s27 + $0x8] sm:$0xff]  ;;  %v1014_v11 = vld [vmem:[%s2681_s27 + $0x10] sm:$0xff] }
  0x1a   : > { %2210 = vmatmul.mubr.msk.f32.vlgmr.msra.gmra.mrb[0].mxu1 %vm302_vm1, %v289_v5  ;;  %v291_v10 = vld [vmem:[%s2668_s13 + $0x19] sm:$0xff]  ;;  %2289 = vmatprep.mubr.msk.f32.mxu0 %vm302_vm1, %v1012_v8  ;;  %v292_v12 = vld [vmem:[%s2668_s13 + $0x21] sm:$0xff]  ;;  %v293_v15 = vld [vmem:[%s2668_s13 + $0x29] sm:$0xff]  ;;  %s272_s15 = sadd.s32 %s2455_s10, %s2454_s11 }
  0x1b   : > { %2228 = vmatpush3.msk.msra.mxu1 %vm339_vm0, %v287_v2  ;;  %2212 = vmatprep.mubr.msk.f32.mxu1 %vm302_vm1, %v290_v6  ;;  %v1015_v14 = vld [vmem:[%s2681_s27 + $0x18] sm:$0xff]  ;;  %v1016_v16 = vld [vmem:[%s2681_s27 + $0x20] sm:$0xff]  ;;  %v1017_v18 = vld [vmem:[%s2681_s27 + $0x28] sm:$0xff]  ;;  %s1988_s16 = sshll.u32 %s272_s15, 3 }
  0x1c   : > { %2247 = vmatprep.subr.msk.mxu1 %vm339_vm0, %v2016_v7  ;;  %2290 = vmatmul.mubr.msk.f32.vlgmr.msra.gmra.mrb[0].mxu0 %vm302_vm1, %v1013_v9  ;;  %v294_v17 = vld [vmem:[%s2668_s13 + $0x31] sm:$0xff]  ;;  %v295_v19 = vld [vmem:[%s2668_s13 + $0x39] sm:$0xff]  ;;  %v296_v21 = vld [vmem:[%s2668_s13 + $0x41] sm:$0xff]  ;;  %s2917_s14 = scalar_lea.vmem %s2961_s4, %s1988_s16 }
  0x1d   : > { %2308 = vmatpush3.msk.msra.mxu0 %vm339_vm0, %v2058_v3  ;;  %2292 = vmatprep.mubr.msk.f32.mxu0 %vm302_vm1, %v1014_v11  ;;  %v1018_v20 = vld [vmem:[%s2681_s27 + $0x30] sm:$0xff]  ;;  %v1019_v22 = vld [vmem:[%s2681_s27 + $0x38] sm:$0xff]  ;;  %v1020_v24 = vld [vmem:[%s2681_s27 + $0x40] sm:$0xff] }
  0x1e   : > { %2213 = vmatmul.mubr.msk.f32.gmra.mrb[2].mxu1 %vm302_vm1, %v291_v10  ;;  %2327 = vmatprep.subr.msk.mxu0 %vm339_vm0, %v2072_v13  ;;  %v297_v23 = vld [vmem:[%s2668_s13 + $0x49] sm:$0xff]  ;;  %v298_v25 = vld [vmem:[%s2668_s13 + $0x51] sm:$0xff]  ;;  %v299_v27 = vld [vmem:[%s2668_s13 + $0x59] sm:$0x3] }
  0x1f   : > { %2215 = vmatprep.mubr.msk.f32.mxu1 %vm302_vm1, %v292_v12  ;;  %v1021_v26 = vld [vmem:[%s2681_s27 + $0x48] sm:$0xff]  ;;  %v1022_v28 = vld [vmem:[%s2681_s27 + $0x50] sm:$0xff]  ;;  %v275_v29 = vld [vmem:[%s2668_s13] sm:$0xff] }
  0x20   : > { %2293 = vmatmul.mubr.msk.f32.gmra.mrb[2].mxu0 %vm302_vm1, %v1015_v14  ;;  %v1023_v30 = vld [vmem:[%s2681_s27 + $0x58] sm:$0x3]  ;;  %v276_v31 = vld [vmem:[%s2668_s13 + $0x8] sm:$0xff]  ;;  %v277_v33 = vld [vmem:[%s2668_s13 + $0x10] sm:$0xff] }
  0x21   : > { %2295 = vmatprep.mubr.msk.f32.mxu0 %vm302_vm1, %v1016_v16  ;;  %v1202_v32 = vld [vmem:[%s2681_s27 + $0x1] sm:$0xff]  ;;  %v1203_v35 = vld [vmem:[%s2681_s27 + $0x9] sm:$0xff]  ;;  %v278_v36 = vld [vmem:[%s2668_s13 + $0x18] sm:$0xff] }
  0x22   : > { %2216 = vmatmul.mubr.msk.f32.gmra.mrb[4].mxu1 %vm302_vm1, %v293_v15  ;;  %v1204_v37 = vld [vmem:[%s2681_s27 + $0x11] sm:$0xff]  ;;  %v279_v38 = vld [vmem:[%s2668_s13 + $0x20] sm:$0xff]  ;;  %v280_v41 = vld [vmem:[%s2668_s13 + $0x28] sm:$0xff] }
  0x23   : > { %2218 = vmatprep.mubr.msk.f32.mxu1 %vm302_vm1, %v294_v17  ;;  %v1205_v40 = vld [vmem:[%s2681_s27 + $0x19] sm:$0xff]  ;;  %v1206_v42 = vld [vmem:[%s2681_s27 + $0x21] sm:$0xff]  ;;  %v281_v43 = vld [vmem:[%s2668_s13 + $0x30] sm:$0xff] }
  0x24   : > { %2296 = vmatmul.mubr.msk.f32.gmra.mrb[4].mxu0 %vm302_vm1, %v1017_v18  ;;  %v1207_v44 = vld [vmem:[%s2681_s27 + $0x29] sm:$0xff]  ;;  %v282_v45 = vld [vmem:[%s2668_s13 + $0x38] sm:$0xff]  ;;  %v283_v47 = vld [vmem:[%s2668_s13 + $0x40] sm:$0xff] }
  0x25   : > { %2298 = vmatprep.mubr.msk.f32.mxu0 %vm302_vm1, %v1018_v20  ;;  %v1208_v46 = vld [vmem:[%s2681_s27 + $0x31] sm:$0xff]  ;;  %v1209_v48 = vld [vmem:[%s2681_s27 + $0x39] sm:$0xff]  ;;  %v284_v49 = vld [vmem:[%s2668_s13 + $0x48] sm:$0xff] }
  0x26   : > { %2219 = vmatmul.mubr.msk.f32.gmra.mrb[6].mxu1 %vm302_vm1, %v295_v19  ;;  %v1210_v50 = vld [vmem:[%s2681_s27 + $0x41] sm:$0xff]  ;;  %v285_v51 = vld [vmem:[%s2668_s13 + $0x50] sm:$0xff]  ;;  %v286_v53 = vld [vmem:[%s2668_s13 + $0x58] sm:$0x3] }
  0x27   : > { %2221 = vmatprep.mubr.msk.f32.mxu1 %vm302_vm1, %v296_v21  ;;  %v1211_v52 = vld [vmem:[%s2681_s27 + $0x49] sm:$0xff]  ;;  %v1212_v54 = vld [vmem:[%s2681_s27 + $0x51] sm:$0xff]  ;;  %v1213_v56 = vld [vmem:[%s2681_s27 + $0x59] sm:$0x3] }
  0x28   : > { %2299 = vmatmul.mubr.msk.f32.gmra.mrb[6].mxu0 %vm302_vm1, %v1019_v22  ;;  %v632_v55 = vld [vmem:[%s2668_s13 + $0xa] sm:$0xff]  ;;  %v633_v57 = vld [vmem:[%s2668_s13 + $0x12] sm:$0xff]  ;;  %v634_v59 = vld [vmem:[%s2668_s13 + $0x1a] sm:$0xff] }
  0x29   : > { %2301 = vmatprep.mubr.msk.f32.mxu0 %vm302_vm1, %v1020_v24  ;;  %v1392_v58 = vld [vmem:[%s2681_s27 + $0xa] sm:$0xff]  ;;  %v1393_v60 = vld [vmem:[%s2681_s27 + $0x12] sm:$0xff]  ;;  %v635_v61 = vld [vmem:[%s2668_s13 + $0x22] sm:$0xff] }
  0x2a   : > { %2222 = vmatmul.mubr.msk.f32.gmra.mrb[8].mxu1 %vm302_vm1, %v297_v23  ;;  %v1394_v62 = vld [vmem:[%s2681_s27 + $0x1a] sm:$0xff]  ;;  %v636_v63 = vld [vmem:[%s2668_s13 + $0x2a] sm:$0xff]  ;;  %v1395_v0 = vld [vmem:[%s2681_s27 + $0x22] sm:$0xff] }
  0x2b   : > { %2224 = vmatprep.mubr.msk.f32.mxu1 %vm302_vm1, %v298_v25  ;;  %v637_v1 = vld [vmem:[%s2668_s13 + $0x32] sm:$0xff]  ;;  %v1396_v2 = vld [vmem:[%s2681_s27 + $0x2a] sm:$0xff]  ;;  %v638_v3 = vld [vmem:[%s2668_s13 + $0x3a] sm:$0xff] }
  0x2c   : > { %2302 = vmatmul.mubr.msk.f32.gmra.mrb[8].mxu0 %vm302_vm1, %v1021_v26  ;;  %v1397_v4 = vld [vmem:[%s2681_s27 + $0x32] sm:$0xff]  ;;  %v639_v5 = vld [vmem:[%s2668_s13 + $0x42] sm:$0xff]  ;;  %v1398_v6 = vld [vmem:[%s2681_s27 + $0x3a] sm:$0xff] }
  0x2d   : > { %2304 = vmatprep.mubr.msk.f32.mxu0 %vm302_vm1, %v1022_v28  ;;  %v1399_v8 = vld [vmem:[%s2681_s27 + $0x42] sm:$0xff]  ;;  %v641_v9 = vld [vmem:[%s2668_s13 + $0x52] sm:$0xff]  ;;  %v1400_v10 = vld [vmem:[%s2681_s27 + $0x4a] sm:$0xff] }
  0x2e   : > { %2225 = vmatmul.mubr.msk.f32.gmra.mrb[10].mxu1 %vm302_vm1, %v299_v27  ;;  %v642_v11 = vld [vmem:[%s2668_s13 + $0x5a] sm:$0xff]  ;;  %v1401_v12 = vld [vmem:[%s2681_s27 + $0x52] sm:$0xff]  ;;  %v1403_v16 = vld [vmem:[%s2681_s27 + $0x62] sm:$0x3] }
  0x2f   : > { %2229 = vmatprep.mubr.msk.f32.mxu1 %vm302_vm1, %v275_v29  ;;  %v1402_v14 = vld [vmem:[%s2681_s27 + $0x5a] sm:$0xff]  ;;  %v822_v15 = vld [vmem:[%s2668_s13 + $0xb] sm:$0xff]  ;;  %v825_v21 = vld [vmem:[%s2668_s13 + $0x23] sm:$0xff] }
  0x30   : > { %2305 = vmatmul.mubr.msk.f32.gmra.mrb[10].mxu0 %vm302_vm1, %v1023_v30  ;;  %v823_v17 = vld [vmem:[%s2668_s13 + $0x13] sm:$0xff]  ;;  %v1582_v18 = vld [vmem:[%s2681_s27 + $0xb] sm:$0xff]  ;;  %v824_v19 = vld [vmem:[%s2668_s13 + $0x1b] sm:$0xff] }
  0x31   : > { %2309 = vmatprep.mubr.msk.f32.mxu0 %vm302_vm1, %v1202_v32  ;;  %v1583_v20 = vld [vmem:[%s2681_s27 + $0x13] sm:$0xff]  ;;  %v1584_v22 = vld [vmem:[%s2681_s27 + $0x1b] sm:$0xff]  ;;  %v826_v23 = vld [vmem:[%s2668_s13 + $0x2b] sm:$0xff] }
  0x32   : > { %2230 = vmatmul.mubr.msk.f32.vlgmr.msra.gmra.mrb[0].mxu1 %vm302_vm1, %v276_v31  ;;  %v1585_v24 = vld [vmem:[%s2681_s27 + $0x23] sm:$0xff]  ;;  %v827_v25 = vld [vmem:[%s2668_s13 + $0x33] sm:$0xff]  ;;  %v1586_v26 = vld [vmem:[%s2681_s27 + $0x2b] sm:$0xff] }
  0x33   : > { %2248 = vmatpush3.msk.msra.mxu1 %vm339_vm0, %v2016_v7  ;;  %2232 = vmatprep.mubr.msk.f32.mxu1 %vm302_vm1, %v277_v33  ;;  %v640_v7 = vld [vmem:[%s2668_s13 + $0x4a] sm:$0xff]  ;;  %v828_v27 = vld [vmem:[%s2668_s13 + $0x3b] sm:$0xff]  ;;  %v1587_v28 = vld [vmem:[%s2681_s27 + $0x33] sm:$0xff] }
  0x34   : > { %2267 = vmatprep.subr.msk.mxu1 %vm339_vm0, %v2030_v34  ;;  %2310 = vmatmul.mubr.msk.f32.vlgmr.msra.gmra.mrb[0].mxu0 %vm302_vm1, %v1203_v35  ;;  %v829_v29 = vld [vmem:[%s2668_s13 + $0x43] sm:$0xff]  ;;  %v1588_v30 = vld [vmem:[%s2681_s27 + $0x3b] sm:$0xff]  ;;  %v830_v31 = vld [vmem:[%s2668_s13 + $0x4b] sm:$0xff] }
  0x35   : > { %2328 = vmatpush3.msk.msra.mxu0 %vm339_vm0, %v2072_v13  ;;  %2312 = vmatprep.mubr.msk.f32.mxu0 %vm302_vm1, %v1204_v37  ;;  %v643_v13 = vld [vmem:[%s2668_s13 + $0x62] sm:$0x3]  ;;  %v831_v33 = vld [vmem:[%s2668_s13 + $0x53] sm:$0xff] }
  0x36   : > { %2233 = vmatmul.mubr.msk.f32.gmra.mrb[2].mxu1 %vm302_vm1, %v278_v36  ;;  %2347 = vmatprep.subr.msk.mxu0 %vm339_vm0, %v2086_v39  ;;  %v1589_v32 = vld [vmem:[%s2681_s27 + $0x43] sm:$0xff]  ;;  %v832_v35 = vld [vmem:[%s2668_s13 + $0x5b] sm:$0xff]  ;;  %v1591_v36 = vld [vmem:[%s2681_s27 + $0x53] sm:$0xff] }
  0x37   : > { %2235 = vmatprep.mubr.msk.f32.mxu1 %vm302_vm1, %v279_v38  ;;  %v833_v37 = vld [vmem:[%s2668_s13 + $0x63] sm:$0x3]  ;;  %v1592_v38 = vld [vmem:[%s2681_s27 + $0x5b] sm:$0xff] }
  0x38   : > { %2313 = vmatmul.mubr.msk.f32.gmra.mrb[2].mxu0 %vm302_vm1, %v1205_v40 }
  0x39   : > { %2315 = vmatprep.mubr.msk.f32.mxu0 %vm302_vm1, %v1206_v42 }
  0x3a   : > { %2236 = vmatmul.mubr.msk.f32.gmra.mrb[4].mxu1 %vm302_vm1, %v280_v41 }
  0x3b   : > { %2238 = vmatprep.mubr.msk.f32.mxu1 %vm302_vm1, %v281_v43  ;;  %v2892_v43 = vld [vmem:[%s2960_s3] ss:$0 sm:$0xff] }
  0x3c   : > { %2316 = vmatmul.mubr.msk.f32.gmra.mrb[4].mxu0 %vm302_vm1, %v1207_v44 }
  0x3d   : > { %2318 = vmatprep.mubr.msk.f32.mxu0 %vm302_vm1, %v1208_v46 }
  0x3e   : > { %2239 = vmatmul.mubr.msk.f32.gmra.mrb[6].mxu1 %vm302_vm1, %v282_v45 }
  0x3f   : > { %2241 = vmatprep.mubr.msk.f32.mxu1 %vm302_vm1, %v283_v47 }
  0x40   : > { %2319 = vmatmul.mubr.msk.f32.gmra.mrb[6].mxu0 %vm302_vm1, %v1209_v48 }
  0x41   : > { %2321 = vmatprep.mubr.msk.f32.mxu0 %vm302_vm1, %v1210_v50 }
  0x42   : > { %2242 = vmatmul.mubr.msk.f32.gmra.mrb[8].mxu1 %vm302_vm1, %v284_v49 }
  0x43   : > { %2244 = vmatprep.mubr.msk.f32.mxu1 %vm302_vm1, %v285_v51 }
  0x44   : > { %2322 = vmatmul.mubr.msk.f32.gmra.mrb[8].mxu0 %vm302_vm1, %v1211_v52 }
  0x45   : > { %2324 = vmatprep.mubr.msk.f32.mxu0 %vm302_vm1, %v1212_v54 }
  0x46   : > { %2245 = vmatmul.mubr.msk.f32.gmra.mrb[10].mxu1 %vm302_vm1, %v286_v53 }
  0x47   : > { %2249 = vmatprep.mubr.msk.f32.mxu1 %vm302_vm1, %v632_v55 }
  0x48   : > { %2325 = vmatmul.mubr.msk.f32.gmra.mrb[10].mxu0 %vm302_vm1, %v1213_v56 }
  0x49   : > { %2329 = vmatprep.mubr.msk.f32.mxu0 %vm302_vm1, %v1392_v58 }
  0x4a   : > { %2250 = vmatmul.mubr.msk.f32.vlgmr.msra.gmra.mrb[0].mxu1 %vm302_vm1, %v633_v57 }
  0x4b   : > { %2268 = vmatpush3.msk.msra.mxu1 %vm339_vm0, %v2030_v34  ;;  %2252 = vmatprep.mubr.msk.f32.mxu1 %vm302_vm1, %v634_v59  ;;  %v1590_v34 = vld [vmem:[%s2681_s27 + $0x4b] sm:$0xff] }
  0x4c   : > { %2330 = vmatmul.mubr.msk.f32.vlgmr.msra.gmra.mrb[0].mxu0 %vm302_vm1, %v1393_v60 }
  0x4d   : > { %2348 = vmatpush3.msk.msra.mxu0 %vm339_vm0, %v2086_v39  ;;  %2332 = vmatprep.mubr.msk.f32.mxu0 %vm302_vm1, %v1394_v62  ;;  %v1593_v39 = vld [vmem:[%s2681_s27 + $0x63] sm:$0x3] }
  0x4e   : > { %2253 = vmatmul.mubr.msk.f32.gmra.mrb[2].mxu1 %vm302_vm1, %v635_v61 }
  0x4f   : > { %2255 = vmatprep.mubr.msk.f32.mxu1 %vm302_vm1, %v636_v63 }
  0x50   : > { %2333 = vmatmul.mubr.msk.f32.gmra.mrb[2].mxu0 %vm302_vm1, %v1395_v0 }
  0x51   : > { %2335 = vmatprep.mubr.msk.f32.mxu0 %vm302_vm1, %v1396_v2 }
  0x52   : > { %2256 = vmatmul.mubr.msk.f32.gmra.mrb[4].mxu1 %vm302_vm1, %v637_v1 }
  0x53   : > { %2258 = vmatprep.mubr.msk.f32.mxu1 %vm302_vm1, %v638_v3 }
  0x54   : > { %2336 = vmatmul.mubr.msk.f32.gmra.mrb[4].mxu0 %vm302_vm1, %v1397_v4 }
  0x55   : > { %2338 = vmatprep.mubr.msk.f32.mxu0 %vm302_vm1, %v1398_v6 }
  0x56   : > { %2259 = vmatmul.mubr.msk.f32.gmra.mrb[6].mxu1 %vm302_vm1, %v639_v5 }
  0x57   : > { %2261 = vmatprep.mubr.msk.f32.mxu1 %vm302_vm1, %v640_v7 }
  0x58   : > { %2339 = vmatmul.mubr.msk.f32.gmra.mrb[6].mxu0 %vm302_vm1, %v1399_v8 }
  0x59   : > { %2341 = vmatprep.mubr.msk.f32.mxu0 %vm302_vm1, %v1400_v10 }
  0x5a   : > { %2262 = vmatmul.mubr.msk.f32.gmra.mrb[8].mxu1 %vm302_vm1, %v641_v9 }
  0x5b   : > { %2264 = vmatprep.mubr.msk.f32.mxu1 %vm302_vm1, %v642_v11 }
  0x5c   : > { %2342 = vmatmul.mubr.msk.f32.gmra.mrb[8].mxu0 %vm302_vm1, %v1401_v12 }
  0x5d   : > { %2344 = vmatprep.mubr.msk.f32.mxu0 %vm302_vm1, %v1402_v14 }
  0x5e   : > { %2265 = vmatmul.mubr.msk.f32.gmra.mrb[10].mxu1 %vm302_vm1, %v643_v13 }
  0x5f   : > { %2269 = vmatprep.mubr.msk.f32.mxu1 %vm302_vm1, %v822_v15 }
  0x60   : > { %2345 = vmatmul.mubr.msk.f32.gmra.mrb[10].mxu0 %vm302_vm1, %v1403_v16 }
  0x61   : > { %2349 = vmatprep.mubr.msk.f32.mxu0 %vm302_vm1, %v1582_v18 }
  0x62   : > { %2270 = vmatmul.mubr.msk.f32.vlgmr.msra.gmra.mrb[0].mxu1 %vm302_vm1, %v823_v17 }
  0x63   : > { %2272 = vmatprep.mubr.msk.f32.mxu1 %vm302_vm1, %v824_v19 }
  0x64   : > { %2350 = vmatmul.mubr.msk.f32.vlgmr.msra.gmra.mrb[0].mxu0 %vm302_vm1, %v1583_v20 }
  0x65   : > { %2352 = vmatprep.mubr.msk.f32.mxu0 %vm302_vm1, %v1584_v22 }
  0x66   : > { %2273 = vmatmul.mubr.msk.f32.gmra.mrb[2].mxu1 %vm302_vm1, %v825_v21 }
  0x67   : > { %2275 = vmatprep.mubr.msk.f32.mxu1 %vm302_vm1, %v826_v23 }
  0x68   : > { %2353 = vmatmul.mubr.msk.f32.gmra.mrb[2].mxu0 %vm302_vm1, %v1585_v24 }
  0x69   : > { %2355 = vmatprep.mubr.msk.f32.mxu0 %vm302_vm1, %v1586_v26 }
  0x6a   : > { %2276 = vmatmul.mubr.msk.f32.gmra.mrb[4].mxu1 %vm302_vm1, %v827_v25 }
  0x6b   : > { %2278 = vmatprep.mubr.msk.f32.mxu1 %vm302_vm1, %v828_v27 }
  0x6c   : > { %2356 = vmatmul.mubr.msk.f32.gmra.mrb[4].mxu0 %vm302_vm1, %v1587_v28 }
  0x6d   : > { %2358 = vmatprep.mubr.msk.f32.mxu0 %vm302_vm1, %v1588_v30 }
  0x6e   : > { %2279 = vmatmul.mubr.msk.f32.gmra.mrb[6].mxu1 %vm302_vm1, %v829_v29 }
  0x6f   : > { %2281 = vmatprep.mubr.msk.f32.mxu1 %vm302_vm1, %v830_v31 }
  0x70   : > { %2359 = vmatmul.mubr.msk.f32.gmra.mrb[6].mxu0 %vm302_vm1, %v1589_v32 }
  0x71   : > { %2361 = vmatprep.mubr.msk.f32.mxu0 %vm302_vm1, %v1590_v34 }
  0x72   : > { %2282 = vmatmul.mubr.msk.f32.gmra.mrb[8].mxu1 %vm302_vm1, %v831_v33 }
  0x73   : > { %2284 = vmatprep.mubr.msk.f32.mxu1 %vm302_vm1, %v832_v35 }
  0x74   : > { %2362 = vmatmul.mubr.msk.f32.gmra.mrb[8].mxu0 %vm302_vm1, %v1591_v36 }
  0x75   : > { %2364 = vmatprep.mubr.msk.f32.mxu0 %vm302_vm1, %v1592_v38 }
  0x76   : > { %2285 = vmatmul.mubr.msk.f32.gmra.mrb[10].mxu1 %vm302_vm1, %v833_v37 }
  0x78   : > { %2365 = vmatmul.mubr.msk.f32.gmra.mrb[10].mxu0 %vm302_vm1, %v1593_v39 }
 0x135   : > { %v2271_v40 = vpop.f32.mrb[0].mxu1 }
 0x136   : > { %v941_v41 = vpop.f32.mrb[1].mxu1 }
 0x137   : > { %v2351_v42 = vpop.f32.mrb[0].mxu0 }
 0x138   : > { %v2367_v44 = vadd.f32 %v2351_v42, %v2271_v40  ;;  %v1701_v45 = vpop.f32.mrb[1].mxu0 }
 0x139   : > { %v2274_v46 = vpop.f32.mrb[2].mxu1  ;;  %v2368_v47 = vadd.f32 %v1701_v45, %v941_v41 }
 0x13a   : > { %v951_v48 = vpop.f32.mrb[3].mxu1  ;;  %v1780_v49 = vadd.f32 %v2367_v44, %v2892_v43 }
 0x13b   : > { %v1779_v50 = vadd.f32 %v2368_v47, %v2892_v43  ;;  %v2354_v51 = vpop.f32.mrb[2].mxu0 }
 0x13c   : > { %v1792_v52 = vsub.f32 0.0, %v1780_v49  ;;  %v2369_v53 = vadd.f32 %v2354_v51, %v2274_v46  ;;  %v1711_v54 = vpop.f32.mrb[3].mxu0 }
 0x13d   : > { %v2277_v55 = vpop.f32.mrb[4].mxu1  ;;  %v1791_v56 = vsub.f32 0.0, %v1779_v50  ;;  %v2370_v57 = vadd.f32 %v1711_v54, %v951_v48 }
 0x13e   : > { %v961_v58 = vpop.f32.mrb[5].mxu1  ;;  %v1805_v59 = vmul.f32 1.442695, %v1792_v52  ;;  %v1782_v60 = vadd.f32 %v2369_v53, %v2892_v43 }
 0x13f   : > { %v1803_v61 = vmul.f32 1.442695, %v1791_v56  ;;  %v1781_v62 = vadd.f32 %v2370_v57, %v2892_v43  ;;  %v2357_v63 = vpop.f32.mrb[4].mxu0 }
 0x140   : > { %2496 = vpow2.f32 %v1805_v59  ;;  %v1794_v0 = vsub.f32 0.0, %v1782_v60  ;;  %v2371_v1 = vadd.f32 %v2357_v63, %v2277_v55  ;;  %v1721_v2 = vpop.f32.mrb[5].mxu0 }
 0x141   : > { %v2280_v3 = vpop.f32.mrb[6].mxu1  ;;  %2498 = vpow2.f32 %v1803_v61  ;;  %v1793_v4 = vsub.f32 0.0, %v1781_v62  ;;  %v2372_v5 = vadd.f32 %v1721_v2, %v961_v58 }
 0x142   : > { %v971_v6 = vpop.f32.mrb[7].mxu1  ;;  %v1809_v7 = vmul.f32 1.442695, %v1794_v0  ;;  %v1784_v8 = vadd.f32 %v2371_v1, %v2892_v43 }
 0x143   : > { %v1807_v9 = vmul.f32 1.442695, %v1793_v4  ;;  %v1783_v10 = vadd.f32 %v2372_v5, %v2892_v43  ;;  %v2360_v11 = vpop.f32.mrb[6].mxu0 }
 0x144   : > { %2500 = vpow2.f32 %v1809_v7  ;;  %v1796_v12 = vsub.f32 0.0, %v1784_v8  ;;  %v2373_v13 = vadd.f32 %v2360_v11, %v2280_v3  ;;  %v1731_v14 = vpop.f32.mrb[7].mxu0 }
 0x145   : > { %v2283_v15 = vpop.f32.mrb[8].mxu1  ;;  %2502 = vpow2.f32 %v1807_v9  ;;  %v1795_v16 = vsub.f32 0.0, %v1783_v10  ;;  %v2374_v17 = vadd.f32 %v1731_v14, %v971_v6 }
 0x146   : > { %v981_v18 = vpop.f32.mrb[9].mxu1  ;;  %v1813_v19 = vmul.f32 1.442695, %v1796_v12  ;;  %v1786_v20 = vadd.f32 %v2373_v13, %v2892_v43 }
 0x147   : > { %v1811_v21 = vmul.f32 1.442695, %v1795_v16  ;;  %v1785_v22 = vadd.f32 %v2374_v17, %v2892_v43  ;;  %v2363_v23 = vpop.f32.mrb[8].mxu0 }
 0x148   : > { %2504 = vpow2.f32 %v1813_v19  ;;  %v1798_v24 = vsub.f32 0.0, %v1786_v20  ;;  %v2375_v25 = vadd.f32 %v2363_v23, %v2283_v15  ;;  %v1741_v26 = vpop.f32.mrb[9].mxu0 }
 0x149   : > { %v2286_v27 = vpop.f32.mrb[10].mxu1  ;;  %2506 = vpow2.f32 %v1811_v21  ;;  %v1797_v28 = vsub.f32 0.0, %v1785_v22  ;;  %v2376_v29 = vadd.f32 %v1741_v26, %v981_v18 }
 0x14a   : > { %v991_v30 = vpop.f32.mrb[11].mxu1  ;;  %v2497_v31 = vpop.eup %2496  ;;  %v1817_v32 = vmul.f32 1.442695, %v1798_v24  ;;  %v1788_v33 = vadd.f32 %v2375_v25, %v2892_v43 }
 0x14b   : > { %v2499_v34 = vpop.eup %2498  ;;  %v1828_v35 = vadd.f32 1.0, %v2497_v31  ;;  %v1815_v36 = vmul.f32 1.442695, %v1797_v28  ;;  %v1787_v37 = vadd.f32 %v2376_v29, %v2892_v43  ;;  %v2366_v38 = vpop.f32.mrb[10].mxu0 }
 0x14c   : > { %v1827_v39 = vadd.f32 1.0, %v2499_v34  ;;  %2508 = vpow2.f32 %v1817_v32  ;;  %v1800_v40 = vsub.f32 0.0, %v1788_v33  ;;  %v2377_v41 = vadd.f32 %v2366_v38, %v2286_v27  ;;  %v1751_v42 = vpop.f32.mrb[11].mxu0 }
 0x14d   : > { %2510 = vrcp.f32 %v1828_v35  ;;  %v1799_v44 = vsub.f32 0.0, %v1787_v37  ;;  %v2378_v45 = vadd.f32 %v1751_v42, %v991_v30 }
 0x14e   : > { %v2501_v46 = vpop.eup %2500  ;;  %2512 = vrcp.f32 %v1827_v39  ;;  %v1821_v47 = vmul.f32 1.442695, %v1800_v40  ;;  %v1790_v48 = vadd.f32 %v2377_v41, %v2892_v43 }
 0x14f   : > { %v2503_v49 = vpop.eup %2502  ;;  %v1830_v50 = vadd.f32 1.0, %v2501_v46  ;;  %2514 = vpow2.f32 %v1815_v36  ;;  %v1819_v51 = vmul.f32 1.442695, %v1799_v44  ;;  %v1789_v52 = vadd.f32 %v2378_v45, %v2892_v43 }
 0x150   : > { %v1829_v53 = vadd.f32 1.0, %v2503_v49  ;;  %2516 = vpow2.f32 %v1821_v47  ;;  %v1802_v54 = vsub.f32 0.0, %v1790_v48 }
 0x151   : > { %2518 = vrcp.f32 %v1830_v50  ;;  %v1801_v55 = vsub.f32 0.0, %v1789_v52 }
 0x152   : > { %v2505_v56 = vpop.eup %2504  ;;  %2520 = vrcp.f32 %v1829_v53  ;;  %v1825_v57 = vmul.f32 1.442695, %v1802_v54 }
 0x153   : > { %v2507_v58 = vpop.eup %2506  ;;  %v1832_v59 = vadd.f32 1.0, %v2505_v56  ;;  %2522 = vpow2.f32 %v1819_v51  ;;  %v1823_v60 = vmul.f32 1.442695, %v1801_v55 }
 0x154   : > { %v1831_v61 = vadd.f32 1.0, %v2507_v58  ;;  %2524 = vpow2.f32 %v1825_v57 }
 0x155   : > { %2526 = vrcp.f32 %v1832_v59 }
 0x156   : > { %v2509_v43 = vpop.eup %2508  ;;  %2528 = vrcp.f32 %v1831_v61 }
 0x157   : > { %v2511_v62 = vpop.eup %2510  ;;  %v1834_v63 = vadd.f32 1.0, %v2509_v43  ;;  %2530 = vpow2.f32 %v1823_v60 }
 0x158   : > { %v2513_v0 = vpop.eup %2512  ;;  %1853 = vst.msk [vmem:[%s2917_s14 + $0x8] sm:$0xff] %vm1851_vm2, %v2511_v62 }
 0x159   : > { %v2515_v1 = vpop.eup %2514  ;;  %1852 = vst.msk [vmem:[%s2917_s14] sm:$0xff] %vm1851_vm2, %v2513_v0  ;;  %2532 = vrcp.f32 %v1834_v63 }
 0x15a   : > { %v2517_v2 = vpop.eup %2516  ;;  %v1833_v3 = vadd.f32 1.0, %v2515_v1 }
 0x15b   : > { %v2519_v4 = vpop.eup %2518  ;;  %v1836_v5 = vadd.f32 1.0, %v2517_v2 }
 0x15c   : > { %v2521_v6 = vpop.eup %2520  ;;  %1855 = vst.msk [vmem:[%s2917_s14 + $0x18] sm:$0xff] %vm1851_vm2, %v2519_v4  ;;  %2534 = vrcp.f32 %v1833_v3 }
 0x15d   : > { %v2523_v7 = vpop.eup %2522  ;;  %1854 = vst.msk [vmem:[%s2917_s14 + $0x10] sm:$0xff] %vm1851_vm2, %v2521_v6  ;;  %2536 = vrcp.f32 %v1836_v5 }
 0x15e   : > { %v2525_v8 = vpop.eup %2524  ;;  %v1835_v9 = vadd.f32 1.0, %v2523_v7 }
 0x15f   : > { %v2527_v10 = vpop.eup %2526  ;;  %v1838_v11 = vadd.f32 1.0, %v2525_v8 }
 0x160   : > { %v2529_v12 = vpop.eup %2528  ;;  %1857 = vst.msk [vmem:[%s2917_s14 + $0x28] sm:$0xff] %vm1851_vm2, %v2527_v10  ;;  %2538 = vrcp.f32 %v1835_v9 }
 0x161   : > { %v2531_v13 = vpop.eup %2530  ;;  %1856 = vst.msk [vmem:[%s2917_s14 + $0x20] sm:$0xff] %vm1851_vm2, %v2529_v12  ;;  %2540 = vrcp.f32 %v1838_v11 }
 0x162   : > { %v1837_v14 = vadd.f32 1.0, %v2531_v13 }
 0x163   : > { %v2533_v15 = vpop.eup %2532 }
 0x164   : > { %1859 = vst.msk [vmem:[%s2917_s14 + $0x38] sm:$0xff] %vm1851_vm2, %v2533_v15  ;;  %2542 = vrcp.f32 %v1837_v14 }
 0x166   : > { %v2535_v16 = vpop.eup %2534 }
 0x167   : > { %v2537_v17 = vpop.eup %2536  ;;  %1858 = vst.msk [vmem:[%s2917_s14 + $0x30] sm:$0xff] %vm1851_vm2, %v2535_v16 }
 0x168   : > { %1861 = vst.msk [vmem:[%s2917_s14 + $0x48] sm:$0xff] %vm1851_vm2, %v2537_v17 }
 0x16a   : > { %v2539_v18 = vpop.eup %2538 }
 0x16b   : > { %v2541_v19 = vpop.eup %2540  ;;  %1860 = vst.msk [vmem:[%s2917_s14 + $0x40] sm:$0xff] %vm1851_vm2, %v2539_v18 }
 0x16c   : > { %1864 = vst.msk [vmem:[%s2917_s14 + $0x58] sm:$0x3] %vm1863_vm3, %v2541_v19 }
 0x16e   : > { %v2543_v20 = vpop.eup %2542 }
 0x16f   : > { %1862 = vst.msk [vmem:[%s2917_s14 + $0x50] sm:$0xff] %vm1851_vm2, %v2543_v20 }
 0x170 PF: > { %s14_s19 = sadd.s32 1, %s2582_s19   ;;  %s2962_s15 = smov %s2574_s17 }
 0x171   : > { %p11_p9 = scmp.ge.s32.totalorder %s14_s19, 20   ;;  %s2963_s16 = smov %s2578_s18 }
 0x172   : > { %s2964_s17 = smov %s2967_s20  ;;  %s2965_s18 = smov %s2971_s21 }
 0x173   :  { %13 = sbr.rel (!%p11_p9) target bundleno = 3 (0x3), region = 76 }

</bundles_post_ra>
